<compile_context>
chip_gen: v7x
topology: tpu7x:2x2x1
jax: 0.10.0
libtpu: 0.0.40
codegen_flags: <defaults>
</compile_context>

<pallas_src>
import functools

import jax
import jax.numpy as jnp
from jax.experimental import pallas as pl
from jax.experimental.pallas import tpu as pltpu

BN_EPS = 1e-5


# ----------------------------------------------------------------------------- kernel


def hybrid_kernel(
    # batch-tiled activations
    x_ref, sen_ref, ver_ref,
    # kg branch (BN folded into first Linear)
    wk1_ref, bk1_ref, wk2_ref, bk2_ref,
    # sentence branch (BN folded into first Linear)
    ws1_ref, bs1_ref, ws2_ref, bs2_ref,
    # final layer: concat weight [W_t; W_s], veracity row, folded bias, (W->1) row, bias
    wf1_ref, wfv_ref, bf1_ref, wf2_ref, bf2_ref,
    # output
    out_ref,
):
    f32 = jnp.float32
    bf16 = jnp.bfloat16

    # ---- kg branch: (BN-folded) Linear -> ReLU -> Linear
    h = jnp.dot(x_ref[...], wk1_ref[...], preferred_element_type=f32) + bk1_ref[...]
    h = jnp.maximum(h, 0.0).astype(bf16)
    triplet = (jnp.dot(h, wk2_ref[...], preferred_element_type=f32)
               + bk2_ref[...]).astype(bf16)

    # ---- sentence branch: (BN-folded) Linear -> ReLU -> Linear
    h = jnp.dot(sen_ref[...], ws1_ref[...], preferred_element_type=f32) + bs1_ref[...]
    h = jnp.maximum(h, 0.0).astype(bf16)
    sent = (jnp.dot(h, ws2_ref[...], preferred_element_type=f32)
            + bs2_ref[...]).astype(bf16)

    # ---- final layer on z = concat([triplet, sent, ver], -1):
    #   single MXU dot against concat([W_t; W_s]); ver column as (TB,1)*(1,W) broadcast.
    z = jnp.concatenate([triplet, sent], axis=-1)               # (TB, 2W) bf16, lane-aligned
    h = (jnp.dot(z, wf1_ref[...], preferred_element_type=f32)
         + ver_ref[...] * wfv_ref[...]
         + bf1_ref[...])
    h = jnp.maximum(h, 0.0)
    # (W -> 1) projection on VPU/XLU instead of an N=1 MXU matmul.
    logit = jnp.sum(h * wf2_ref[...], axis=-1, keepdims=True) + bf2_ref[...]
    out_ref[...] = jax.nn.sigmoid(logit)


# ----------------------------------------------------------------------------- parameters


def _linear_params(key, fan_in, fan_out):
    # PyTorch nn.Linear default init: U(-1/sqrt(fan_in), 1/sqrt(fan_in)); weight stored transposed.
    kw, kb = jax.random.split(key)
    bound = 1.0 / jnp.sqrt(jnp.float32(fan_in))
    w = jax.random.uniform(kw, (fan_in, fan_out), jnp.float32, -bound, bound)
    b = jax.random.uniform(kb, (1, fan_out), jnp.float32, -bound, bound)
    return w, b


def _bn_params(width):
    # PyTorch BatchNorm1d default: gamma=1, beta=0, running_mean=0, running_var=1.
    return (
        jnp.ones((1, width), jnp.float32),   # gamma
        jnp.zeros((1, width), jnp.float32),  # beta
        jnp.zeros((1, width), jnp.float32),  # running_mean
        jnp.ones((1, width), jnp.float32),   # running_var
    )


def init_params(key, *, embedding_dim, embedding_dim_rel, sentence_dim,
                num_entities, num_relations, num_train):
    shallom_width = int(25.6 * embedding_dim)
    keys = jax.random.split(key, 16)
    p = {}
    # frozen "embedding tables" (dataset-derived in the original module)
    p["ent_emb"] = jax.random.normal(keys[0], (num_entities, embedding_dim), jnp.float32)
    p["rel_emb"] = jax.random.normal(keys[1], (num_relations, embedding_dim_rel), jnp.float32)
    p["sen_emb_train"] = jax.random.normal(keys[2], (num_train, sentence_dim), jnp.float32)
    p["ver_train"] = jax.random.uniform(keys[3], (num_train, 1), jnp.float32)

    # kg_classification_layer
    p["wk1"], p["bk1"] = _linear_params(keys[4], 2 * embedding_dim + embedding_dim_rel, shallom_width)
    p["gk"], p["bek"], p["mk"], p["vk"] = _bn_params(shallom_width)
    p["wk2"], p["bk2"] = _linear_params(keys[5], shallom_width, shallom_width)

    # sentence_classification_layer
    p["ws1"], p["bs1"] = _linear_params(keys[6], sentence_dim, shallom_width)
    p["gs"], p["bes"], p["ms"], p["vs"] = _bn_params(shallom_width)
    p["ws2"], p["bs2"] = _linear_params(keys[7], shallom_width, shallom_width)

    # final_classification_layer : Linear(2*W+1 -> W) then Linear(W -> 1)
    p["wf1"], p["bf1"] = _linear_params(keys[8], 2 * shallom_width + 1, shallom_width)
    p["gf"], p["bef"], p["mf"], p["vf"] = _bn_params(shallom_width)
    p["wf2"], p["bf2"] = _linear_params(keys[9], shallom_width, 1)
    p["shallom_width"] = shallom_width
    return p


def _fold_bn(w, b, gamma, beta, mean, var):
    # Fold eval-mode BatchNorm1d that FOLLOWS Linear(w, b) into the Linear itself.
    scale = gamma * jax.lax.rsqrt(var + BN_EPS)      # (1, width)
    return w * scale, (b - mean) * scale + beta


def prepare_kernel_params(p):
    """Fold BN into the preceding Linear offline; cast matmul operands to bf16 (epilogue stays f32)."""
    bf16 = jnp.bfloat16
    W = p["shallom_width"]
    k = {}
    # frozen embedding tables: bf16 halves gather traffic; veracity score stays f32.
    k["ent_emb"] = p["ent_emb"].astype(bf16)
    k["rel_emb"] = p["rel_emb"].astype(bf16)
    k["sen_emb_train"] = p["sen_emb_train"].astype(bf16)
    k["ver_train"] = p["ver_train"]

    wk1, bk1 = _fold_bn(p["wk1"], p["bk1"], p["gk"], p["bek"], p["mk"], p["vk"])
    k["wk1"], k["bk1"] = wk1.astype(bf16), bk1
    k["wk2"], k["bk2"] = p["wk2"].astype(bf16), p["bk2"]

    ws1, bs1 = _fold_bn(p["ws1"], p["bs1"], p["gs"], p["bes"], p["ms"], p["vs"])
    k["ws1"], k["bs1"] = ws1.astype(bf16), bs1
    k["ws2"], k["bs2"] = p["ws2"].astype(bf16), p["bs2"]

    wf1, bf1 = _fold_bn(p["wf1"], p["bf1"], p["gf"], p["bef"], p["mf"], p["vf"])
    k["wf1"] = wf1[:2 * W].astype(bf16)     # (2W, W): single MXU dot against concat([t, s])
    k["wfv"] = wf1[2 * W:]                  # (1, W):  veracity column, VPU broadcast (f32)
    k["bf1"] = bf1
    k["wf2"] = p["wf2"].reshape(1, -1)      # (1, W):  final projection as a VPU row (f32)
    k["bf2"] = p["bf2"]                     # (1, 1)
    return k


# ----------------------------------------------------------------------------- forward


def _round_up(x, m):
    return ((x + m - 1) // m) * m


@functools.partial(jax.jit, static_argnames=("batch_tile",))
def forward(kparams, e1_idx, rel_idx, e2_idx, sen_idx, batch_tile=256):
    # Embedding lookups + concat are glue (gathers), done in plain JAX on bf16 tables.
    head = jnp.take(kparams["ent_emb"], e1_idx, axis=0)
    rel = jnp.take(kparams["rel_emb"], rel_idx, axis=0)
    tail = jnp.take(kparams["ent_emb"], e2_idx, axis=0)
    x = jnp.concatenate([head, rel, tail], axis=1)                  # (B, 2*ed+ed_rel) bf16
    emb_sen = jnp.take(kparams["sen_emb_train"], sen_idx, axis=0)   # (B, sentence_dim) bf16
    ver = jnp.take(kparams["ver_train"], sen_idx, axis=0)           # (B, 1) f32
    # TODO(synk): the sentence-embedding gather could be fused into the kernel via
    #             PrefetchScalarGridSpec + pl.Element row index_map to avoid the HBM round-trip.

    B = x.shape[0]
    TB = min(batch_tile, _round_up(B, 8))        # batch tile (sublane-aligned)
    Bp = _round_up(B, TB)
    if Bp != B:
        pad = ((0, Bp - B), (0, 0))
        x, emb_sen, ver = jnp.pad(x, pad), jnp.pad(emb_sen, pad), jnp.pad(ver, pad)

    weight_names = ("wk1", "bk1", "wk2", "bk2", "ws1", "bs1", "ws2", "bs2",
                    "wf1", "wfv", "bf1", "wf2", "bf2")
    weights = tuple(kparams[n] for n in weight_names)

    def _batch_spec(ncols):
        return pl.BlockSpec((TB, ncols), lambda i: (i, 0))

    def _resident_spec(arr):
        # whole array, constant block index -> DMA'd once, stays VMEM-resident across the grid
        return pl.BlockSpec(arr.shape, lambda i: (0, 0))

    out = pl.pallas_call(
        hybrid_kernel,
        out_shape=jax.ShapeDtypeStruct((Bp, 1), jnp.float32),
        grid_spec=pltpu.PrefetchScalarGridSpec(
            num_scalar_prefetch=0,
            grid=(Bp // TB,),
            in_specs=[_batch_spec(x.shape[1]),
                      _batch_spec(emb_sen.shape[1]),
                      _batch_spec(1)]
                     + [_resident_spec(w) for w in weights],
            out_specs=pl.BlockSpec((TB, 1), lambda i: (i, 0)),
        ),
        compiler_params=pltpu.CompilerParams(
            dimension_semantics=("parallel",),
            vmem_limit_bytes=32 << 20,   # actual need ~10 MiB; safe on v7x's 64 MiB VMEM
        ),
    )(x, emb_sen, ver, *weights)
    return out[:B]


# ----------------------------------------------------------------------------- main


if __name__ == "__main__":
    # Small, module-consistent sizes.
    EMBEDDING_DIM = 20          # -> shallom_width = int(25.6 * 20) = 512
    EMBEDDING_DIM_REL = 20
    SENTENCE_DIM = 768 * 3      # hard-coded in the module
    NUM_ENTITIES = 32
    NUM_RELATIONS = 8
    NUM_TRAIN_SENTENCES = 16
    BATCH = 8

    key = jax.random.PRNGKey(0)
    pkey, ikey = jax.random.split(key)
    params = init_params(
        pkey,
        embedding_dim=EMBEDDING_DIM,
        embedding_dim_rel=EMBEDDING_DIM_REL,
        sentence_dim=SENTENCE_DIM,
        num_entities=NUM_ENTITIES,
        num_relations=NUM_RELATIONS,
        num_train=NUM_TRAIN_SENTENCES,
    )
    kparams = prepare_kernel_params(params)

    k1, k2, k3, k4 = jax.random.split(ikey, 4)
    e1_idx = jax.random.randint(k1, (BATCH,), 0, NUM_ENTITIES, dtype=jnp.int32)
    rel_idx = jax.random.randint(k2, (BATCH,), 0, NUM_RELATIONS, dtype=jnp.int32)
    e2_idx = jax.random.randint(k3, (BATCH,), 0, NUM_ENTITIES, dtype=jnp.int32)
    sen_idx = jax.random.randint(k4, (BATCH,), 0, NUM_TRAIN_SENTENCES, dtype=jnp.int32)

    out = forward(kparams, e1_idx, rel_idx, e2_idx, sen_idx)
    out = jax.block_until_ready(out)

    assert out.shape == (BATCH, 1), out.shape
    assert bool(jnp.all((out >= 0.0) & (out <= 1.0)))
    print("KERNEL_OK")
</pallas_src>

<mosaic_0001>
module attributes {stable_mosaic.version = 11 : i64} {
  func.func @hybrid_kernel(%arg0: i32, %arg1: memref<8x60xbf16, #tpu.memory_space<vmem>>, %arg2: memref<8x2304xbf16, #tpu.memory_space<vmem>>, %arg3: memref<8x1xf32, #tpu.memory_space<vmem>>, %arg4: memref<60x512xbf16, #tpu.memory_space<vmem>>, %arg5: memref<1x512xf32, #tpu.memory_space<vmem>>, %arg6: memref<512x512xbf16, #tpu.memory_space<vmem>>, %arg7: memref<1x512xf32, #tpu.memory_space<vmem>>, %arg8: memref<2304x512xbf16, #tpu.memory_space<vmem>>, %arg9: memref<1x512xf32, #tpu.memory_space<vmem>>, %arg10: memref<512x512xbf16, #tpu.memory_space<vmem>>, %arg11: memref<1x512xf32, #tpu.memory_space<vmem>>, %arg12: memref<1024x512xbf16, #tpu.memory_space<vmem>>, %arg13: memref<1x512xf32, #tpu.memory_space<vmem>>, %arg14: memref<1x512xf32, #tpu.memory_space<vmem>>, %arg15: memref<1x512xf32, #tpu.memory_space<vmem>>, %arg16: memref<1x1xf32, #tpu.memory_space<vmem>>, %arg17: memref<8x1xf32, #tpu.memory_space<vmem>>) attributes {dimension_semantics = [#tpu.dimension_semantics<parallel>], iteration_bounds = array<i64: 1>, scalar_prefetch = 0 : i64, scratch_operands = 0 : i64, tpu.core_type = #tpu.core_type<tc>, window_params = [{transform_indices = @transform_0, window_bounds = array<i64: 8, 60>}, {transform_indices = @transform_1, window_bounds = array<i64: 8, 2304>}, {transform_indices = @transform_2, window_bounds = array<i64: 8, 1>}, {pipeline_mode = #tpu.pipeline_mode<synchronous>, transform_indices = @transform_3, window_bounds = array<i64: 60, 512>}, {pipeline_mode = #tpu.pipeline_mode<synchronous>, transform_indices = @transform_4, window_bounds = array<i64: 1, 512>}, {pipeline_mode = #tpu.pipeline_mode<synchronous>, transform_indices = @transform_5, window_bounds = array<i64: 512, 512>}, {pipeline_mode = #tpu.pipeline_mode<synchronous>, transform_indices = @transform_6, window_bounds = array<i64: 1, 512>}, {pipeline_mode = #tpu.pipeline_mode<synchronous>, transform_indices = @transform_7, window_bounds = array<i64: 2304, 512>}, {pipeline_mode = #tpu.pipeline_mode<synchronous>, transform_indices = @transform_8, window_bounds = array<i64: 1, 512>}, {pipeline_mode = #tpu.pipeline_mode<synchronous>, transform_indices = @transform_9, window_bounds = array<i64: 512, 512>}, {pipeline_mode = #tpu.pipeline_mode<synchronous>, transform_indices = @transform_10, window_bounds = array<i64: 1, 512>}, {pipeline_mode = #tpu.pipeline_mode<synchronous>, transform_indices = @transform_11, window_bounds = array<i64: 1024, 512>}, {pipeline_mode = #tpu.pipeline_mode<synchronous>, transform_indices = @transform_12, window_bounds = array<i64: 1, 512>}, {pipeline_mode = #tpu.pipeline_mode<synchronous>, transform_indices = @transform_13, window_bounds = array<i64: 1, 512>}, {pipeline_mode = #tpu.pipeline_mode<synchronous>, transform_indices = @transform_14, window_bounds = array<i64: 1, 512>}, {pipeline_mode = #tpu.pipeline_mode<synchronous>, transform_indices = @transform_15, window_bounds = array<i64: 1, 1>}, {transform_indices = @transform_16, window_bounds = array<i64: 8, 1>}]} {
    %c0 = arith.constant 0 : index
    %c0_0 = arith.constant 0 : index
    %0 = vector.load %arg1[%c0, %c0_0] : memref<8x60xbf16, #tpu.memory_space<vmem>>, vector<8x60xbf16>
    %c0_1 = arith.constant 0 : index
    %c0_2 = arith.constant 0 : index
    %1 = vector.load %arg4[%c0_1, %c0_2] : memref<60x512xbf16, #tpu.memory_space<vmem>>, vector<60x512xbf16>
    %cst = arith.constant dense<0.000000e+00> : vector<8x512xf32>
    %2 = tpu.matmul %0, %1, %cst {dimension_numbers = #tpu.dot_dimension_numbers<[1], [0], [0], [1], [0, 0, 1, 1], [], []>} : vector<8x60xbf16>, vector<60x512xbf16>, vector<8x512xf32> -> vector<8x512xf32>
    %c0_3 = arith.constant 0 : index
    %c0_4 = arith.constant 0 : index
    %3 = vector.load %arg5[%c0_3, %c0_4] : memref<1x512xf32, #tpu.memory_space<vmem>>, vector<1x512xf32>
    %4 = vector.broadcast %3 : vector<1x512xf32> to vector<8x512xf32>
    %5 = arith.addf %2, %4 : vector<8x512xf32>
    %cst_5 = arith.constant 0.000000e+00 : f32
    %6 = vector.broadcast %cst_5 : f32 to vector<8x512xf32>
    %7 = arith.maximumf %5, %6 : vector<8x512xf32>
    %8 = arith.truncf %7 : vector<8x512xf32> to vector<8x512xbf16>
    %c0_6 = arith.constant 0 : index
    %c0_7 = arith.constant 0 : index
    %9 = vector.load %arg6[%c0_6, %c0_7] : memref<512x512xbf16, #tpu.memory_space<vmem>>, vector<512x512xbf16>
    %cst_8 = arith.constant dense<0.000000e+00> : vector<8x512xf32>
    %10 = tpu.matmul %8, %9, %cst_8 {dimension_numbers = #tpu.dot_dimension_numbers<[1], [0], [0], [1], [0, 0, 1, 1], [], []>} : vector<8x512xbf16>, vector<512x512xbf16>, vector<8x512xf32> -> vector<8x512xf32>
    %c0_9 = arith.constant 0 : index
    %c0_10 = arith.constant 0 : index
    %11 = vector.load %arg7[%c0_9, %c0_10] : memref<1x512xf32, #tpu.memory_space<vmem>>, vector<1x512xf32>
    %12 = vector.broadcast %11 : vector<1x512xf32> to vector<8x512xf32>
    %13 = arith.addf %10, %12 : vector<8x512xf32>
    %14 = arith.truncf %13 : vector<8x512xf32> to vector<8x512xbf16>
    %c0_11 = arith.constant 0 : index
    %c0_12 = arith.constant 0 : index
    %15 = vector.load %arg2[%c0_11, %c0_12] : memref<8x2304xbf16, #tpu.memory_space<vmem>>, vector<8x2304xbf16>
    %c0_13 = arith.constant 0 : index
    %c0_14 = arith.constant 0 : index
    %16 = vector.load %arg8[%c0_13, %c0_14] : memref<2304x512xbf16, #tpu.memory_space<vmem>>, vector<2304x512xbf16>
    %cst_15 = arith.constant dense<0.000000e+00> : vector<8x512xf32>
    %17 = tpu.matmul %15, %16, %cst_15 {dimension_numbers = #tpu.dot_dimension_numbers<[1], [0], [0], [1], [0, 0, 1, 1], [], []>} : vector<8x2304xbf16>, vector<2304x512xbf16>, vector<8x512xf32> -> vector<8x512xf32>
    %c0_16 = arith.constant 0 : index
    %c0_17 = arith.constant 0 : index
    %18 = vector.load %arg9[%c0_16, %c0_17] : memref<1x512xf32, #tpu.memory_space<vmem>>, vector<1x512xf32>
    %19 = vector.broadcast %18 : vector<1x512xf32> to vector<8x512xf32>
    %20 = arith.addf %17, %19 : vector<8x512xf32>
    %cst_18 = arith.constant 0.000000e+00 : f32
    %21 = vector.broadcast %cst_18 : f32 to vector<8x512xf32>
    %22 = arith.maximumf %20, %21 : vector<8x512xf32>
    %23 = arith.truncf %22 : vector<8x512xf32> to vector<8x512xbf16>
    %c0_19 = arith.constant 0 : index
    %c0_20 = arith.constant 0 : index
    %24 = vector.load %arg10[%c0_19, %c0_20] : memref<512x512xbf16, #tpu.memory_space<vmem>>, vector<512x512xbf16>
    %cst_21 = arith.constant dense<0.000000e+00> : vector<8x512xf32>
    %25 = tpu.matmul %23, %24, %cst_21 {dimension_numbers = #tpu.dot_dimension_numbers<[1], [0], [0], [1], [0, 0, 1, 1], [], []>} : vector<8x512xbf16>, vector<512x512xbf16>, vector<8x512xf32> -> vector<8x512xf32>
    %c0_22 = arith.constant 0 : index
    %c0_23 = arith.constant 0 : index
    %26 = vector.load %arg11[%c0_22, %c0_23] : memref<1x512xf32, #tpu.memory_space<vmem>>, vector<1x512xf32>
    %27 = vector.broadcast %26 : vector<1x512xf32> to vector<8x512xf32>
    %28 = arith.addf %25, %27 : vector<8x512xf32>
    %29 = arith.truncf %28 : vector<8x512xf32> to vector<8x512xbf16>
    %30 = tpu.concatenate %14, %29 in 1 : vector<8x512xbf16>, vector<8x512xbf16> -> vector<8x1024xbf16>
    %c0_24 = arith.constant 0 : index
    %c0_25 = arith.constant 0 : index
    %31 = vector.load %arg12[%c0_24, %c0_25] : memref<1024x512xbf16, #tpu.memory_space<vmem>>, vector<1024x512xbf16>
    %cst_26 = arith.constant dense<0.000000e+00> : vector<8x512xf32>
    %32 = tpu.matmul %30, %31, %cst_26 {dimension_numbers = #tpu.dot_dimension_numbers<[1], [0], [0], [1], [0, 0, 1, 1], [], []>} : vector<8x1024xbf16>, vector<1024x512xbf16>, vector<8x512xf32> -> vector<8x512xf32>
    %c0_27 = arith.constant 0 : index
    %c0_28 = arith.constant 0 : index
    %33 = vector.load %arg3[%c0_27, %c0_28] : memref<8x1xf32, #tpu.memory_space<vmem>>, vector<8x1xf32>
    %c0_29 = arith.constant 0 : index
    %c0_30 = arith.constant 0 : index
    %34 = vector.load %arg13[%c0_29, %c0_30] : memref<1x512xf32, #tpu.memory_space<vmem>>, vector<1x512xf32>
    %35 = vector.broadcast %33 : vector<8x1xf32> to vector<8x512xf32>
    %36 = vector.broadcast %34 : vector<1x512xf32> to vector<8x512xf32>
    %37 = arith.mulf %35, %36 : vector<8x512xf32>
    %38 = arith.addf %32, %37 : vector<8x512xf32>
    %c0_31 = arith.constant 0 : index
    %c0_32 = arith.constant 0 : index
    %39 = vector.load %arg14[%c0_31, %c0_32] : memref<1x512xf32, #tpu.memory_space<vmem>>, vector<1x512xf32>
    %40 = vector.broadcast %39 : vector<1x512xf32> to vector<8x512xf32>
    %41 = arith.addf %38, %40 : vector<8x512xf32>
    %cst_33 = arith.constant 0.000000e+00 : f32
    %42 = vector.broadcast %cst_33 : f32 to vector<8x512xf32>
    %43 = arith.maximumf %41, %42 : vector<8x512xf32>
    %c0_34 = arith.constant 0 : index
    %c0_35 = arith.constant 0 : index
    %44 = vector.load %arg15[%c0_34, %c0_35] : memref<1x512xf32, #tpu.memory_space<vmem>>, vector<1x512xf32>
    %45 = vector.broadcast %44 : vector<1x512xf32> to vector<8x512xf32>
    %46 = arith.mulf %43, %45 : vector<8x512xf32>
    %cst_36 = arith.constant dense<0.000000e+00> : vector<8xf32>
    %47 = vector.multi_reduction <add>, %46, %cst_36 [1] : vector<8x512xf32> to vector<8xf32>
    %48 = vector.shape_cast %47 : vector<8xf32> to vector<8x1xf32>
    %c0_37 = arith.constant 0 : index
    %c0_38 = arith.constant 0 : index
    %49 = vector.load %arg16[%c0_37, %c0_38] : memref<1x1xf32, #tpu.memory_space<vmem>>, vector<1x1xf32>
    %50 = vector.broadcast %49 : vector<1x1xf32> to vector<8x1xf32>
    %51 = arith.addf %48, %50 : vector<8x1xf32>
    %52 = arith.negf %51 : vector<8x1xf32>
    %53 = math.exp %52 : vector<8x1xf32>
    %cst_39 = arith.constant 1.000000e+00 : f32
    %54 = vector.broadcast %cst_39 : f32 to vector<8x1xf32>
    %55 = arith.addf %54, %53 : vector<8x1xf32>
    %56 = arith.divf %54, %55 : vector<8x1xf32>
    %c0_40 = arith.constant 0 : index
    %c0_41 = arith.constant 0 : index
    %57 = vector.load %arg17[%c0_40, %c0_41] : memref<8x1xf32, #tpu.memory_space<vmem>>, vector<8x1xf32>
    tpu.vector_store %arg17[%c0_40, %c0_41], %56 {strides = array<i32>} : memref<8x1xf32, #tpu.memory_space<vmem>>, vector<8x1xf32>,
    return
  }
  func.func @transform_0(%arg0: i32) -> (i32, i32) {
    %c0_i32 = arith.constant 0 : i32
    %c0_i32_0 = arith.constant 0 : i32
    return %arg0, %c0_i32 : i32, i32
  }
  func.func @transform_1(%arg0: i32) -> (i32, i32) {
    %c0_i32 = arith.constant 0 : i32
    %c0_i32_0 = arith.constant 0 : i32
    return %arg0, %c0_i32 : i32, i32
  }
  func.func @transform_2(%arg0: i32) -> (i32, i32) {
    %c0_i32 = arith.constant 0 : i32
    %c0_i32_0 = arith.constant 0 : i32
    return %arg0, %c0_i32 : i32, i32
  }
  func.func @transform_3(%arg0: i32) -> (i32, i32) {
    %c0_i32 = arith.constant 0 : i32
    %c0_i32_0 = arith.constant 0 : i32
    %c0_i32_1 = arith.constant 0 : i32
    return %c0_i32, %c0_i32_0 : i32, i32
  }
  func.func @transform_4(%arg0: i32) -> (i32, i32) {
    %c0_i32 = arith.constant 0 : i32
    %c0_i32_0 = arith.constant 0 : i32
    %c0_i32_1 = arith.constant 0 : i32
    return %c0_i32, %c0_i32_0 : i32, i32
  }
  func.func @transform_5(%arg0: i32) -> (i32, i32) {
    %c0_i32 = arith.constant 0 : i32
    %c0_i32_0 = arith.constant 0 : i32
    %c0_i32_1 = arith.constant 0 : i32
    return %c0_i32, %c0_i32_0 : i32, i32
  }
  func.func @transform_6(%arg0: i32) -> (i32, i32) {
    %c0_i32 = arith.constant 0 : i32
    %c0_i32_0 = arith.constant 0 : i32
    %c0_i32_1 = arith.constant 0 : i32
    return %c0_i32, %c0_i32_0 : i32, i32
  }
  func.func @transform_7(%arg0: i32) -> (i32, i32) {
    %c0_i32 = arith.constant 0 : i32
    %c0_i32_0 = arith.constant 0 : i32
    %c0_i32_1 = arith.constant 0 : i32
    return %c0_i32, %c0_i32_0 : i32, i32
  }
  func.func @transform_8(%arg0: i32) -> (i32, i32) {
    %c0_i32 = arith.constant 0 : i32
    %c0_i32_0 = arith.constant 0 : i32
    %c0_i32_1 = arith.constant 0 : i32
    return %c0_i32, %c0_i32_0 : i32, i32
  }
  func.func @transform_9(%arg0: i32) -> (i32, i32) {
    %c0_i32 = arith.constant 0 : i32
    %c0_i32_0 = arith.constant 0 : i32
    %c0_i32_1 = arith.constant 0 : i32
    return %c0_i32, %c0_i32_0 : i32, i32
  }
  func.func @transform_10(%arg0: i32) -> (i32, i32) {
    %c0_i32 = arith.constant 0 : i32
    %c0_i32_0 = arith.constant 0 : i32
    %c0_i32_1 = arith.constant 0 : i32
    return %c0_i32, %c0_i32_0 : i32, i32
  }
  func.func @transform_11(%arg0: i32) -> (i32, i32) {
    %c0_i32 = arith.constant 0 : i32
    %c0_i32_0 = arith.constant 0 : i32
    %c0_i32_1 = arith.constant 0 : i32
    return %c0_i32, %c0_i32_0 : i32, i32
  }
  func.func @transform_12(%arg0: i32) -> (i32, i32) {
    %c0_i32 = arith.constant 0 : i32
    %c0_i32_0 = arith.constant 0 : i32
    %c0_i32_1 = arith.constant 0 : i32
    return %c0_i32, %c0_i32_0 : i32, i32
  }
  func.func @transform_13(%arg0: i32) -> (i32, i32) {
    %c0_i32 = arith.constant 0 : i32
    %c0_i32_0 = arith.constant 0 : i32
    %c0_i32_1 = arith.constant 0 : i32
    return %c0_i32, %c0_i32_0 : i32, i32
  }
  func.func @transform_14(%arg0: i32) -> (i32, i32) {
    %c0_i32 = arith.constant 0 : i32
    %c0_i32_0 = arith.constant 0 : i32
    %c0_i32_1 = arith.constant 0 : i32
    return %c0_i32, %c0_i32_0 : i32, i32
  }
  func.func @transform_15(%arg0: i32) -> (i32, i32) {
    %c0_i32 = arith.constant 0 : i32
    %c0_i32_0 = arith.constant 0 : i32
    %c0_i32_1 = arith.constant 0 : i32
    return %c0_i32, %c0_i32_0 : i32, i32
  }
  func.func @transform_16(%arg0: i32) -> (i32, i32) {
    %c0_i32 = arith.constant 0 : i32
    %c0_i32_0 = arith.constant 0 : i32
    return %arg0, %c0_i32 : i32, i32
  }
}

</mosaic_0001>

<bundles_post_ra>
// kernel: forward.1
= control target key start
LH: loop header
LB: loop body
LE: loop exit
PB: predicated region body
PF: predicated region fallthrough
CT: control target
= control target key end

     0   :  { %s12323_s0 = inlined_call_operand.vmem [shape: bf16[8,60], index: 0, kind: input, shape index: {}]   ;;  %s12324_s1 = inlined_call_operand.vmem [shape: bf16[8,2304], index: 1, kind: input, shape index: {}]   ;;  %s12325_s2 = inlined_call_operand.vmem [shape: f32[8,1], index: 2, kind: input, shape index: {}]   ;;  %s12326_s3 = inlined_call_operand.hbm [shape: bf16[60,512], index: 3, kind: input, shape index: {}]   ;;  %s12327_s4 = inlined_call_operand.hbm [shape: f32[1,512], index: 4, kind: input, shape index: {}]   ;;  %s12328_s5 = inlined_call_operand.hbm [shape: bf16[512,512], index: 5, kind: input, shape index: {}]   ;;  %s12329_s6 = inlined_call_operand.hbm [shape: f32[1,512], index: 6, kind: input, shape index: {}]   ;;  %s12330_s7 = inlined_call_operand.hbm [shape: bf16[2304,512], index: 7, kind: input, shape index: {}]   ;;  %s12331_s8 = inlined_call_operand.hbm [shape: f32[1,512], index: 8, kind: input, shape index: {}]   ;;  %s12332_s9 = inlined_call_operand.hbm [shape: bf16[512,512], index: 9, kind: input, shape index: {}]   ;;  %s12333_s10 = inlined_call_operand.hbm [shape: f32[1,512], index: 10, kind: input, shape index: {}]   ;;  %s12334_s11 = inlined_call_operand.hbm [shape: bf16[1024,512], index: 11, kind: input, shape index: {}]   ;;  %s12335_s12 = inlined_call_operand.hbm [shape: f32[1,512], index: 12, kind: input, shape index: {}]   ;;  %s12336_s13 = inlined_call_operand.hbm [shape: f32[1,512], index: 13, kind: input, shape index: {}]   ;;  %s12337_s14 = inlined_call_operand.hbm [shape: f32[1,512], index: 14, kind: input, shape index: {}]   ;;  %s12338_s15 = inlined_call_operand.<no memory space> [shape: f32[1,1], index: 15, kind: input, shape index: {}]   ;;  %s12339_s16 = inlined_call_operand.vmem [shape: f32[8,1], index: 16, kind: output, shape index: {}]  }
   0x1   :  { %12340 = sst [smem:[#allocation29_spill]] %s12323_s0  ;;  %v21_v0 = vstv %s12338_s15 }
   0x2   :  { %22 = vst [vmem:[#allocation2] sm:$0x1] %v21_v0 }
   0x3   :  { %23 = vsyncpa [#allocation4], 0 }
   0x4   :  { %24 = vsyncpa [#allocation6], 0 }
   0x5   :  { %25 = vsyncpa [#allocation9], 0 }
   0x6   :  { %26 = vsyncpa [#allocation12], 0 }
   0x7   :  { %27 = vsyncpa [#allocation15], 0 }
   0x8   :  { %28 = vsyncpa [#allocation18], 0 }
   0x9   :  { %29 = vsyncpa [#allocation21], 0  ;;  %s11816_s23 = smov [#allocation5]   ;;  %s11817_s25 = smov [#allocation8]  }
   0xa   :  { %s54_s24 = sshll.u32 %s11816_s23, 4  ;;  %s76_s26 = sshll.u32 %s11817_s25, 4  ;;  %s55_s24 = int_to_ptr.vmem [resolvable:$true] %s54_s24  ;;  %s77_s26 = int_to_ptr.vmem [resolvable:$true] %s76_s26 }
   0xb   :  { %s11538_s29 = scalar_lea.hbm %s12327_s4, 64 }
   0xc   :  { %p11539_p0 = scmp.ne.s32.totalorder %s12327_s4, %s11538_s29  ;;  %p11542_p1 = scmp.lt.u32.totalorder %s11538_s29, %s12327_s4 }
   0xe   :  { %p11544_p2 = pnand %p11542_p1, %p11539_p0 }
  0x10   :  { %11547 = shalt.err (!%p11544_p2)
}
  0x11   :  { %s11548_s18 = scalar_lea.vmem %s55_s24, 64  ;;  %p11553_p4 = scmp.lt.s32.totalorder %s55_s24, %s55_s24 }
  0x12   :  { %p11549_p3 = scmp.ne.s32.totalorder %s55_s24, %s11548_s18  ;;  %p11554_p5 = scmp.lt.s32.totalorder %s11548_s18, %s11548_s18 }
  0x14   :  { %p11555_p6 = por %p11554_p5, %p11553_p4 }
  0x16   :  { %p11556_p7 = pnand %p11555_p6, %p11549_p3 }
  0x18   :  { %11559 = shalt.err (!%p11556_p7)
}
  0x19   :  { %57 = dma.hbm_to_vmem [thread:$0]  %s12327_s4, 64, %s55_s24, [#allocation6]  }
  0x1a   :  { %s11560_s23 = scalar_lea.hbm %s12329_s6, 64 }
  0x1b   :  { %p11561_p8 = scmp.ne.s32.totalorder %s12329_s6, %s11560_s23  ;;  %p11564_p9 = scmp.lt.u32.totalorder %s11560_s23, %s12329_s6 }
  0x1d   :  { %p11566_p10 = pnand %p11564_p9, %p11561_p8 }
  0x1f   :  { %11569 = shalt.err (!%p11566_p10)
}
  0x20   :  { %s11570_s30 = scalar_lea.vmem %s77_s26, 64  ;;  %p11575_p12 = scmp.lt.s32.totalorder %s77_s26, %s77_s26 }
  0x21   :  { %p11571_p11 = scmp.ne.s32.totalorder %s77_s26, %s11570_s30  ;;  %p11576_p13 = scmp.lt.s32.totalorder %s11570_s30, %s11570_s30 }
  0x23   :  { %p11577_p0 = por %p11576_p13, %p11575_p12 }
  0x25   :  { %p11578_p1 = pnand %p11577_p0, %p11571_p11 }
  0x27   :  { %11581 = shalt.err (!%p11578_p1)
}
  0x28   :  { %79 = dma.hbm_to_vmem [thread:$0]  %s12329_s6, 64, %s77_s26, [#allocation9]  }
  0x29   :  { %s11818_s15 = smov [#allocation11]   ;;  %s11819_s17 = smov [#allocation14]  }
  0x2a   :  { %s98_s0 = sshll.u32 %s11818_s15, 4  ;;  %s120_s18 = sshll.u32 %s11819_s17, 4  ;;  %s99_s0 = int_to_ptr.vmem [resolvable:$true] %s98_s0  ;;  %s121_s18 = int_to_ptr.vmem [resolvable:$true] %s120_s18 }
  0x2b   :  { %s11582_s21 = scalar_lea.hbm %s12331_s8, 64 }
  0x2c   :  { %p11583_p2 = scmp.ne.s32.totalorder %s12331_s8, %s11582_s21  ;;  %p11586_p3 = scmp.lt.u32.totalorder %s11582_s21, %s12331_s8 }
  0x2e   :  { %p11588_p4 = pnand %p11586_p3, %p11583_p2 }
  0x30   :  { %11591 = shalt.err (!%p11588_p4)
}
  0x31   :  { %s11592_s6 = scalar_lea.vmem %s99_s0, 64  ;;  %p11597_p6 = scmp.lt.s32.totalorder %s99_s0, %s99_s0 }
  0x32   :  { %p11593_p5 = scmp.ne.s32.totalorder %s99_s0, %s11592_s6  ;;  %p11598_p7 = scmp.lt.s32.totalorder %s11592_s6, %s11592_s6 }
  0x34   :  { %p11599_p8 = por %p11598_p7, %p11597_p6 }
  0x36   :  { %p11600_p9 = pnand %p11599_p8, %p11593_p5 }
  0x38   :  { %11603 = shalt.err (!%p11600_p9)
}
  0x39   :  { %101 = dma.hbm_to_vmem [thread:$0]  %s12331_s8, 64, %s99_s0, [#allocation12]  }
  0x3a   :  { %s11604_s4 = scalar_lea.hbm %s12333_s10, 64 }
  0x3b   :  { %p11605_p10 = scmp.ne.s32.totalorder %s12333_s10, %s11604_s4  ;;  %p11608_p11 = scmp.lt.u32.totalorder %s11604_s4, %s12333_s10 }
  0x3d   :  { %p11610_p12 = pnand %p11608_p11, %p11605_p10 }
  0x3f   :  { %11613 = shalt.err (!%p11610_p12)
}
  0x40   :  { %s11614_s20 = scalar_lea.vmem %s121_s18, 64  ;;  %p11619_p0 = scmp.lt.s32.totalorder %s121_s18, %s121_s18 }
  0x41   :  { %p11615_p13 = scmp.ne.s32.totalorder %s121_s18, %s11614_s20  ;;  %p11620_p1 = scmp.lt.s32.totalorder %s11614_s20, %s11614_s20 }
  0x43   :  { %p11621_p2 = por %p11620_p1, %p11619_p0 }
  0x45   :  { %p11622_p3 = pnand %p11621_p2, %p11615_p13 }
  0x47   :  { %11625 = shalt.err (!%p11622_p3)
}
  0x48   :  { %123 = dma.hbm_to_vmem [thread:$0]  %s12333_s10, 64, %s121_s18, [#allocation15]  }
  0x49   :  { %s11820_s21 = smov [#allocation17]   ;;  %s11821_s23 = smov [#allocation3]  }
  0x4a   :  { %s142_s22 = sshll.u32 %s11820_s21, 4  ;;  %s41_s25 = sshll.u32 %s11821_s23, 4  ;;  %s143_s22 = int_to_ptr.vmem [resolvable:$true] %s142_s22  ;;  %s11967_s25 = int_to_ptr.vmem [resolvable:$true] %s41_s25 }
  0x4b   :  { %s11626_s26 = scalar_lea.hbm %s12335_s12, 64 }
  0x4c   :  { %p11627_p4 = scmp.ne.s32.totalorder %s12335_s12, %s11626_s26  ;;  %p11630_p5 = scmp.lt.u32.totalorder %s11626_s26, %s12335_s12 }
  0x4e   :  { %p11632_p6 = pnand %p11630_p5, %p11627_p4 }
  0x50   :  { %11635 = shalt.err (!%p11632_p6)
}
  0x51   :  { %s11636_s10 = scalar_lea.vmem %s143_s22, 64  ;;  %p11641_p8 = scmp.lt.s32.totalorder %s143_s22, %s143_s22 }
  0x52   :  { %p11637_p7 = scmp.ne.s32.totalorder %s143_s22, %s11636_s10  ;;  %p11642_p9 = scmp.lt.s32.totalorder %s11636_s10, %s11636_s10 }
  0x54   :  { %p11643_p10 = por %p11642_p9, %p11641_p8 }
  0x56   :  { %p11644_p11 = pnand %p11643_p10, %p11637_p7 }
  0x58   :  { %11647 = shalt.err (!%p11644_p11)
}
  0x59   :  { %145 = dma.hbm_to_vmem [thread:$0]  %s12335_s12, 64, %s143_s22, [#allocation18]  }
  0x5a   :  { %s11648_s19 = scalar_lea.hbm %s12326_s3, 2048 }
  0x5b   :  { %p11649_p12 = scmp.ne.s32.totalorder %s12326_s3, %s11648_s19  ;;  %p11652_p13 = scmp.lt.u32.totalorder %s11648_s19, %s12326_s3 }
  0x5d   :  { %p11654_p0 = pnand %p11652_p13, %p11649_p12 }
  0x5f   :  { %11657 = shalt.err (!%p11654_p0)
}
  0x60   :  { %s11658_s23 = scalar_lea.vmem %s11967_s25, 2048  ;;  %p11663_p2 = scmp.lt.s32.totalorder %s11967_s25, %s11967_s25 }
  0x61   :  { %p11659_p1 = scmp.ne.s32.totalorder %s11967_s25, %s11658_s23  ;;  %p11664_p3 = scmp.lt.s32.totalorder %s11658_s23, %s11658_s23 }
  0x63   :  { %p11665_p4 = por %p11664_p3, %p11663_p2 }
  0x65   :  { %p11666_p5 = pnand %p11665_p4, %p11659_p1 }
  0x67   :  { %11669 = shalt.err (!%p11666_p5)
}
  0x68   :  { %s11822_s12 = smov 256   ;;  %s11823_s22 = smov 16  }
  0x69   :  { %47 = dma.hbm_to_vmem [thread:$0]  %s12326_s3, 2048, %s11967_s25, [#allocation4], %s11822_s12, %s11822_s12, %s11823_s22  }
  0x6a   :  { %s11824_s26 = smov [#allocation7]   ;;  %s11825_s29 = smov [#allocation10]  }
  0x6b   :  { %s63_s28 = sshll.u32 %s11824_s26, 4  ;;  %s85_s30 = sshll.u32 %s11825_s29, 4  ;;  %s64_s28 = int_to_ptr.vmem [resolvable:$true] %s63_s28  ;;  %s12001_s30 = int_to_ptr.vmem [resolvable:$true] %s85_s30 }
  0x6c   :  { %s11670_s18 = scalar_lea.hbm %s12328_s5, 16384 }
  0x6d   :  { %p11671_p6 = scmp.ne.s32.totalorder %s12328_s5, %s11670_s18  ;;  %p11674_p7 = scmp.lt.u32.totalorder %s11670_s18, %s12328_s5 }
  0x6f   :  { %p11676_p8 = pnand %p11674_p7, %p11671_p6 }
  0x71   :  { %11679 = shalt.err (!%p11676_p8)
}
  0x72   :  { %s11680_s3 = scalar_lea.vmem %s64_s28, 16384  ;;  %p11685_p10 = scmp.lt.s32.totalorder %s64_s28, %s64_s28 }
  0x73   :  { %p11681_p9 = scmp.ne.s32.totalorder %s64_s28, %s11680_s3  ;;  %p11686_p11 = scmp.lt.s32.totalorder %s11680_s3, %s11680_s3 }
  0x75   :  { %p11687_p12 = por %p11686_p11, %p11685_p10 }
  0x77   :  { %p11688_p13 = pnand %p11687_p12, %p11681_p9 }
  0x79   :  { %11691 = shalt.err (!%p11688_p13)
}
  0x7a   :  { %69 = dma.hbm_to_vmem [thread:$0]  %s12328_s5, 16384, %s64_s28, [#allocation6], %s11822_s12, %s11822_s12, %s11823_s22  }
  0x7b   :  { %s11692_s21 = scalar_lea.hbm %s12330_s7, 73728 }
  0x7c   :  { %p11693_p0 = scmp.ne.s32.totalorder %s12330_s7, %s11692_s21  ;;  %p11696_p1 = scmp.lt.u32.totalorder %s11692_s21, %s12330_s7 }
  0x7e   :  { %p11698_p2 = pnand %p11696_p1, %p11693_p0 }
  0x80   :  { %11701 = shalt.err (!%p11698_p2)
}
  0x81   :  { %s11702_s29 = scalar_lea.vmem %s12001_s30, 73728  ;;  %p11707_p4 = scmp.lt.s32.totalorder %s12001_s30, %s12001_s30 }
  0x82   :  { %p11703_p3 = scmp.ne.s32.totalorder %s12001_s30, %s11702_s29  ;;  %p11708_p5 = scmp.lt.s32.totalorder %s11702_s29, %s11702_s29 }
  0x84   :  { %p11709_p6 = por %p11708_p5, %p11707_p4 }
  0x86   :  { %p11710_p7 = pnand %p11709_p6, %p11703_p3 }
  0x88   :  { %11713 = shalt.err (!%p11710_p7)
}
  0x89   :  { %91 = dma.hbm_to_vmem [thread:$0]  %s12330_s7, 73728, %s12001_s30, [#allocation9], %s11822_s12, %s11822_s12, %s11823_s22  }
  0x8a   :  { %s11826_s4 = smov [#allocation13]   ;;  %s11827_s18 = smov [#allocation16]  }
  0x8b   :  { %s107_s10 = sshll.u32 %s11826_s4, 4  ;;  %s129_s24 = sshll.u32 %s11827_s18, 4  ;;  %s108_s10 = int_to_ptr.vmem [resolvable:$true] %s107_s10  ;;  %s12038_s24 = int_to_ptr.vmem [resolvable:$true] %s129_s24 }
  0x8c   :  { %s11714_s19 = scalar_lea.hbm %s12332_s9, 16384 }
  0x8d   :  { %p11715_p8 = scmp.ne.s32.totalorder %s12332_s9, %s11714_s19  ;;  %p11718_p9 = scmp.lt.u32.totalorder %s11714_s19, %s12332_s9 }
  0x8f   :  { %p11720_p10 = pnand %p11718_p9, %p11715_p8 }
  0x91   :  { %11723 = shalt.err (!%p11720_p10)
}
  0x92   :  { %s11724_s7 = scalar_lea.vmem %s108_s10, 16384  ;;  %p11729_p12 = scmp.lt.s32.totalorder %s108_s10, %s108_s10 }
  0x93   :  { %p11725_p11 = scmp.ne.s32.totalorder %s108_s10, %s11724_s7  ;;  %p11730_p13 = scmp.lt.s32.totalorder %s11724_s7, %s11724_s7 }
  0x95   :  { %p11731_p0 = por %p11730_p13, %p11729_p12 }
  0x97   :  { %p11732_p1 = pnand %p11731_p0, %p11725_p11 }
  0x99   :  { %11735 = shalt.err (!%p11732_p1)
}
  0x9a   :  { %113 = dma.hbm_to_vmem [thread:$0]  %s12332_s9, 16384, %s108_s10, [#allocation12], %s11822_s12, %s11822_s12, %s11823_s22  }
  0x9b   :  { %s11736_s27 = scalar_lea.hbm %s12334_s11, 32768 }
  0x9c   :  { %p11737_p2 = scmp.ne.s32.totalorder %s12334_s11, %s11736_s27  ;;  %p11740_p3 = scmp.lt.u32.totalorder %s11736_s27, %s12334_s11 }
  0x9e   :  { %p11742_p4 = pnand %p11740_p3, %p11737_p2 }
  0xa0   :  { %11745 = shalt.err (!%p11742_p4)
}
  0xa1   :  { %s11746_s28 = scalar_lea.vmem %s12038_s24, 32768  ;;  %p11751_p6 = scmp.lt.s32.totalorder %s12038_s24, %s12038_s24 }
  0xa2   :  { %p11747_p5 = scmp.ne.s32.totalorder %s12038_s24, %s11746_s28  ;;  %p11752_p7 = scmp.lt.s32.totalorder %s11746_s28, %s11746_s28 }
  0xa4   :  { %p11753_p8 = por %p11752_p7, %p11751_p6 }
  0xa6   :  { %p11754_p9 = pnand %p11753_p8, %p11747_p5 }
  0xa8   :  { %11757 = shalt.err (!%p11754_p9)
}
  0xa9   :  { %135 = dma.hbm_to_vmem [thread:$0]  %s12334_s11, 32768, %s12038_s24, [#allocation15], %s11822_s12, %s11822_s12, %s11823_s22  }
  0xaa   :  { %s11828_s10 = smov [#allocation19]   ;;  %s11829_s15 = smov [#allocation20]  }
  0xab   :  { %s152_s18 = sshll.u32 %s11828_s10, 4  ;;  %s162_s17 = sshll.u32 %s11829_s15, 4  ;;  %s153_s18 = int_to_ptr.vmem [resolvable:$true] %s152_s18  ;;  %s163_s17 = int_to_ptr.vmem [resolvable:$true] %s162_s17 }
  0xac   :  { %s11758_s25 = scalar_lea.hbm %s12336_s13, 64 }
  0xad   :  { %p11759_p10 = scmp.ne.s32.totalorder %s12336_s13, %s11758_s25  ;;  %p11762_p11 = scmp.lt.u32.totalorder %s11758_s25, %s12336_s13 }
  0xaf   :  { %p11764_p12 = pnand %p11762_p11, %p11759_p10 }
  0xb1   :  { %11767 = shalt.err (!%p11764_p12)
}
  0xb2   :  { %s11768_s11 = scalar_lea.vmem %s153_s18, 64  ;;  %p11773_p0 = scmp.lt.s32.totalorder %s153_s18, %s153_s18 }
  0xb3   :  { %p11769_p13 = scmp.ne.s32.totalorder %s153_s18, %s11768_s11  ;;  %p11774_p1 = scmp.lt.s32.totalorder %s11768_s11, %s11768_s11 }
  0xb5   :  { %p11775_p2 = por %p11774_p1, %p11773_p0 }
  0xb7   :  { %p11776_p3 = pnand %p11775_p2, %p11769_p13 }
  0xb9   :  { %11779 = shalt.err (!%p11776_p3)
}
  0xba   :  { %155 = dma.hbm_to_vmem [thread:$0]  %s12336_s13, 64, %s153_s18, [#allocation18]  }
  0xbb   :  { %s11780_s21 = scalar_lea.hbm %s12337_s14, 64 }
  0xbc   :  { %p11781_p4 = scmp.ne.s32.totalorder %s12337_s14, %s11780_s21  ;;  %p11784_p5 = scmp.lt.u32.totalorder %s11780_s21, %s12337_s14 }
  0xbe   :  { %p11786_p6 = pnand %p11784_p5, %p11781_p4 }
  0xc0   :  { %11789 = shalt.err (!%p11786_p6)
}
  0xc1   :  { %s11790_s29 = scalar_lea.vmem %s163_s17, 64  ;;  %p11795_p8 = scmp.lt.s32.totalorder %s163_s17, %s163_s17 }
  0xc2   :  { %p11791_p7 = scmp.ne.s32.totalorder %s163_s17, %s11790_s29  ;;  %p11796_p9 = scmp.lt.s32.totalorder %s11790_s29, %s11790_s29 }
  0xc4   :  { %p11797_p10 = por %p11796_p9, %p11795_p8 }
  0xc6   :  { %p11798_p11 = pnand %p11797_p10, %p11791_p7 }
  0xc8   :  { %11801 = shalt.err (!%p11798_p11)
}
  0xc9   :  { %165 = dma.hbm_to_vmem [thread:$0]  %s12337_s14, 64, %s163_s17, [#allocation21]  }
  0xca   :  { %11802 = dma.done.wait [#allocation4], 2048  }
  0xcb   :  { %11803 = vsyncadd [#allocation4], 4294965248 }
  0xcc   :  { %11804 = dma.done.wait [#allocation6], 16448  }
  0xcd   :  { %11805 = vsyncadd [#allocation6], 4294950848 }
  0xce   :  { %11806 = dma.done.wait [#allocation9], 73792  }
  0xcf   :  { %11807 = vsyncadd [#allocation9], 4294893504 }
  0xd0   :  { %11808 = dma.done.wait [#allocation12], 16448  }
  0xd1   :  { %11809 = vsyncadd [#allocation12], 4294950848 }
  0xd2   :  { %11810 = dma.done.wait [#allocation15], 32832  }
  0xd3   :  { %11811 = vsyncadd [#allocation15], 4294934464 }
  0xd4   :  { %11812 = dma.done.wait [#allocation18], 128  }
  0xd5   :  { %11813 = vsyncadd [#allocation18], 4294967168 }
  0xd6   :  { %11814 = dma.done.wait [#allocation21], 64  }
  0xd7   :  { %11815 = vsyncadd [#allocation21], 4294967232  ;;  %v11830_v1 = vmov 0   ;;  %v9859_v2 = vld [vmem:[#allocation3 + $0x4] ss:$16 sps:$4 sm:$0xff]   ;;  %vm324_vm0 = vcmask 1045504  }
  0xd8   :  { %369 = vmatprep.mubr.bf16.mxu0 %v11830_v1  ;;  %410 = vmatprep.mubr.bf16.mxu1 %v11830_v1  ;;  %v9861_v3 = vld [vmem:[#allocation3] ss:$16 sps:$4 sm:$0xff]   ;;  %v9862_v4 = vld [vmem:[#allocation3 + $0x24] ss:$16 sps:$4 sm:$0xff]   ;;  %v9871_v9 = vld [vmem:[#allocation3 + $0xc] ss:$16 sps:$4 sm:$0xff]  }
  0xd9   :  { %9858 = vset.pattern.permute.xlu0 %v11830_v1  ;;  %337 = vmatprep.subr.bf16.mxu0 %v9859_v2  ;;  %v9864_v5 = vld [vmem:[#allocation3 + $0x20] ss:$16 sps:$4 sm:$0xff]   ;;  %v9865_v6 = vld [vmem:[#allocation3 + $0x44] ss:$16 sps:$4 sm:$0xff]   ;;  %v9873_v10 = vld [vmem:[#allocation3 + $0x8] ss:$16 sps:$4 sm:$0xff]  }
  0xda   :  { %338 = vmatpush1.bf16.msra.mxu0 %v9861_v3  ;;  %v9867_v7 = vld [vmem:[#allocation3 + $0x40] ss:$16 sps:$4 sm:$0xff]   ;;  %v9868_v8 = vld [vmem:[#allocation3 + $0x64] ss:$16 sps:$4 sm:$0x3f]   ;;  %378 = vmatprep.subr.bf16.mxu1 %v9871_v9  ;;  %s12341_s9 = sld [smem:[#allocation29_spill]] }
  0xdb   :  { %339 = vmatprep.subr.bf16.mxu0 %v9862_v4  ;;  %v9874_v11 = vld [vmem:[#allocation3 + $0x2c] ss:$16 sps:$4 sm:$0xff]   ;;  %v9870_v12 = vld [vmem:[#allocation3 + $0x60] ss:$16 sps:$4 sm:$0x3f]   ;;  %379 = vmatpush1.bf16.msra.mxu1 %v9873_v10  ;;  %vm320_vm1 = vcmask 490496  }
  0xdc   :  { %v9876_v13 = vld [vmem:[#allocation3 + $0x28] ss:$16 sps:$4 sm:$0xff]   ;;  %380 = vmatprep.subr.bf16.mxu1 %v9874_v11  ;;  %v9877_v14 = vld [vmem:[#allocation3 + $0x4c] ss:$16 sps:$4 sm:$0xff]   ;;  %v326_v15 = vsel %vm324_vm0, %v9870_v12, 0  ;;  %vm8610_vm2 = vcmask 7168  }
  0xdd   :  { %v9885_v16 = vld [vmem:[#allocation7 + $0x4] ss:$16 sps:$4 sm:$0xff]   ;;  %v9880_v18 = vld [vmem:[#allocation3 + $0x6c] ss:$16 sps:$4 sm:$0x3f]  }
  0xde   :  { %340 = vmatpush1.bf16.msra.mxu0 %v9864_v5  ;;  %v9879_v17 = vld [vmem:[#allocation3 + $0x48] ss:$16 sps:$4 sm:$0xff]   ;;  %v9883_v21 = vld [vmem:[#allocation7] ss:$16 sps:$4 sm:$0xff]   ;;  %v9888_v24 = vld [vmem:[#allocation7 + $0xc] ss:$16 sps:$4 sm:$0xff]  }
  0xdf   :  { %341 = vmatprep.subr.bf16.mxu0 %v9865_v6  ;;  %381 = vmatpush1.bf16.msra.mxu1 %v9876_v13  ;;  %v9882_v20 = vld [vmem:[#allocation3 + $0x68] ss:$16 sps:$4 sm:$0x3f]   ;;  %v9889_v25 = vld [vmem:[#allocation7 + $0x20] ss:$16 sps:$4 sm:$0xff]  }
  0xe0   :  { %v205_v19 = vld [vmem:[%s12341_s9] sm:$0xf]  ;;  %382 = vmatprep.subr.bf16.mxu1 %v9877_v14  ;;  %v9891_v22 = vld [vmem:[#allocation7 + $0x24] ss:$16 sps:$4 sm:$0xff]   ;;  %v332_v23 = vsel %vm324_vm0, %v9882_v20, 0 }
  0xe1   :  { %v9897_v26 = vld [vmem:[#allocation7 + $0x44] ss:$16 sps:$4 sm:$0xff]   ;;  %v9886_v27 = vld [vmem:[#allocation7 + $0x8] ss:$16 sps:$4 sm:$0xff]   ;;  %v9894_v28 = vld [vmem:[#allocation7 + $0x2c] ss:$16 sps:$4 sm:$0xff]  }
  0xe2   :  { %342 = vmatpush1.bf16.msra.mxu0 %v9867_v7  ;;  %v9895_v29 = vld [vmem:[#allocation7 + $0x40] ss:$16 sps:$4 sm:$0xff]   ;;  %v9903_v30 = vld [vmem:[#allocation7 + $0x64] ss:$16 sps:$4 sm:$0xff]   ;;  %v9892_v31 = vld [vmem:[#allocation7 + $0x28] ss:$16 sps:$4 sm:$0xff]  }
  0xe3   :  { %8639 = vmatprep.subr.msk.bf16.mxu0 %vm324_vm0, %v9868_v8  ;;  %383 = vmatpush1.bf16.msra.mxu1 %v9879_v17  ;;  %v9900_v32 = vld [vmem:[#allocation7 + $0x4c] ss:$16 sps:$4 sm:$0xff]   ;;  %v9901_v33 = vld [vmem:[#allocation7 + $0x60] ss:$16 sps:$4 sm:$0xff]   ;;  %v9909_v34 = vld [vmem:[#allocation7 + $0x84] ss:$16 sps:$4 sm:$0xff]  }
  0xe4   :  { %8641 = vmatprep.subr.msk.bf16.mxu1 %vm324_vm0, %v9880_v18  ;;  %v9898_v35 = vld [vmem:[#allocation7 + $0x48] ss:$16 sps:$4 sm:$0xff]   ;;  %v9906_v36 = vld [vmem:[#allocation7 + $0x6c] ss:$16 sps:$4 sm:$0xff]   ;;  %v9907_v37 = vld [vmem:[#allocation7 + $0x80] ss:$16 sps:$4 sm:$0xff]  }
  0xe5   :  { %v9915_v38 = vld [vmem:[#allocation7 + $0xa4] ss:$16 sps:$4 sm:$0xff]   ;;  %v9904_v39 = vld [vmem:[#allocation7 + $0x68] ss:$16 sps:$4 sm:$0xff]   ;;  %v9912_v40 = vld [vmem:[#allocation7 + $0x8c] ss:$16 sps:$4 sm:$0xff]  }
  0xe6   :  { %344 = vmatpush1.bf16.msra.mxu0 %v326_v15  ;;  %v9913_v41 = vld [vmem:[#allocation7 + $0xa0] ss:$16 sps:$4 sm:$0xff]   ;;  %v9921_v42 = vld [vmem:[#allocation7 + $0xc4] ss:$16 sps:$4 sm:$0xff]   ;;  %v9910_v43 = vld [vmem:[#allocation7 + $0x88] ss:$16 sps:$4 sm:$0xff]  }
  0xe7   :  { %1217 = vmatprep.subr.bf16.mxu0 %v9885_v16  ;;  %385 = vmatpush1.bf16.msra.mxu1 %v332_v23  ;;  %v9918_v44 = vld [vmem:[#allocation7 + $0xac] ss:$16 sps:$4 sm:$0xff]   ;;  %v9919_v45 = vld [vmem:[#allocation7 + $0xc0] ss:$16 sps:$4 sm:$0xff]   ;;  %v9927_v46 = vld [vmem:[#allocation7 + $0xe4] ss:$16 sps:$4 sm:$0xff]   ;;  %v224_v23 = vlaneseq }
  0xe8   :  { %1299 = vmatprep.subr.bf16.mxu1 %v9888_v24  ;;  %v9916_v47 = vld [vmem:[#allocation7 + $0xa8] ss:$16 sps:$4 sm:$0xff]   ;;  %v9924_v48 = vld [vmem:[#allocation7 + $0xcc] ss:$16 sps:$4 sm:$0xff]   ;;  %v9925_v49 = vld [vmem:[#allocation7 + $0xe0] ss:$16 sps:$4 sm:$0xff]  }
  0xe9   :  { %8640 = vmatmul.mubr.msk.bf16.vlgmr.msra.gmra.mrb[0].mxu0 %vm320_vm1, %v205_v19  ;;  %v9933_v50 = vld [vmem:[#allocation7 + $0x104] ss:$16 sps:$4 sm:$0xff]   ;;  %v9922_v51 = vld [vmem:[#allocation7 + $0xc8] ss:$16 sps:$4 sm:$0xff]   ;;  %v9930_v52 = vld [vmem:[#allocation7 + $0xec] ss:$16 sps:$4 sm:$0xff]  }
  0xea   :  { %1218 = vmatpush1.bf16.msra.mxu0 %v9883_v21  ;;  %8642 = vmatmul.mubr.msk.bf16.vlgmr.msra.gmra.mrb[0].mxu1 %vm320_vm1, %v205_v19  ;;  %v9928_v53 = vld [vmem:[#allocation7 + $0xe8] ss:$16 sps:$4 sm:$0xff]   ;;  %v9931_v54 = vld [vmem:[#allocation7 + $0x100] ss:$16 sps:$4 sm:$0xff]   ;;  %v9936_v55 = vld [vmem:[#allocation7 + $0x10c] ss:$16 sps:$4 sm:$0xff]  }
  0xeb   :  { %1219 = vmatprep.subr.bf16.mxu0 %v9891_v22  ;;  %1300 = vmatpush1.bf16.msra.mxu1 %v9886_v27  ;;  %v9939_v56 = vld [vmem:[#allocation7 + $0x124] ss:$16 sps:$4 sm:$0xff]   ;;  %v9937_v57 = vld [vmem:[#allocation7 + $0x120] ss:$16 sps:$4 sm:$0xff]   ;;  %v9934_v59 = vld [vmem:[#allocation7 + $0x108] ss:$16 sps:$4 sm:$0xff]  }
  0xec   :  { %1301 = vmatprep.subr.bf16.mxu1 %v9894_v28  ;;  %v9945_v58 = vld [vmem:[#allocation7 + $0x144] ss:$16 sps:$4 sm:$0xff]   ;;  %v9942_v60 = vld [vmem:[#allocation7 + $0x12c] ss:$16 sps:$4 sm:$0xff]   ;;  %v9943_v61 = vld [vmem:[#allocation7 + $0x140] ss:$16 sps:$4 sm:$0xff]  }
  0xed   :  { %v9951_v62 = vld [vmem:[#allocation7 + $0x164] ss:$16 sps:$4 sm:$0xff]   ;;  %v9940_v63 = vld [vmem:[#allocation7 + $0x128] ss:$16 sps:$4 sm:$0xff]   ;;  %v9948_v0 = vld [vmem:[#allocation7 + $0x14c] ss:$16 sps:$4 sm:$0xff]  }
  0xee   :  { %1220 = vmatpush1.bf16.msra.mxu0 %v9889_v25  ;;  %v9949_v1 = vld [vmem:[#allocation7 + $0x160] ss:$16 sps:$4 sm:$0xff]   ;;  %v9957_v2 = vld [vmem:[#allocation7 + $0x184] ss:$16 sps:$4 sm:$0xff]   ;;  %v9946_v3 = vld [vmem:[#allocation7 + $0x148] ss:$16 sps:$4 sm:$0xff]  }
  0xef   :  { %1221 = vmatprep.subr.bf16.mxu0 %v9897_v26  ;;  %1302 = vmatpush1.bf16.msra.mxu1 %v9892_v31  ;;  %v9954_v4 = vld [vmem:[#allocation7 + $0x16c] ss:$16 sps:$4 sm:$0xff]   ;;  %v9955_v5 = vld [vmem:[#allocation7 + $0x180] ss:$16 sps:$4 sm:$0xff]   ;;  %v9963_v6 = vld [vmem:[#allocation7 + $0x1a4] ss:$16 sps:$4 sm:$0xff]  }
  0xf0   :  { %1303 = vmatprep.subr.bf16.mxu1 %v9900_v32  ;;  %v9952_v7 = vld [vmem:[#allocation7 + $0x168] ss:$16 sps:$4 sm:$0xff]   ;;  %v9960_v8 = vld [vmem:[#allocation7 + $0x18c] ss:$16 sps:$4 sm:$0xff]   ;;  %v9961_v9 = vld [vmem:[#allocation7 + $0x1a0] ss:$16 sps:$4 sm:$0xff]  }
  0xf1   :  { %v9958_v10 = vld [vmem:[#allocation7 + $0x188] ss:$16 sps:$4 sm:$0xff]   ;;  %v9966_v11 = vld [vmem:[#allocation7 + $0x1ac] ss:$16 sps:$4 sm:$0xff]   ;;  %v9969_v13 = vld [vmem:[#allocation7 + $0x1c4] ss:$16 sps:$4 sm:$0xff]  }
  0xf2   :  { %1222 = vmatpush1.bf16.msra.mxu0 %v9895_v29  ;;  %v9964_v12 = vld [vmem:[#allocation7 + $0x1a8] ss:$16 sps:$4 sm:$0xff]   ;;  %v9972_v14 = vld [vmem:[#allocation7 + $0x1cc] ss:$16 sps:$4 sm:$0xff]   ;;  %v9967_v15 = vld [vmem:[#allocation7 + $0x1c0] ss:$16 sps:$4 sm:$0xff]  }
  0xf3   :  { %1223 = vmatprep.subr.bf16.mxu0 %v9903_v30  ;;  %1304 = vmatpush1.bf16.msra.mxu1 %v9898_v35  ;;  %v9970_v16 = vld [vmem:[#allocation7 + $0x1c8] ss:$16 sps:$4 sm:$0xff]   ;;  %v9975_v17 = vld [vmem:[#allocation7 + $0x1e4] ss:$16 sps:$4 sm:$0xff]   ;;  %v9978_v18 = vld [vmem:[#allocation7 + $0x1ec] ss:$16 sps:$4 sm:$0xff]  }
  0xf4   :  { %1305 = vmatprep.subr.bf16.mxu1 %v9906_v36  ;;  %v9973_v19 = vld [vmem:[#allocation7 + $0x1e0] ss:$16 sps:$4 sm:$0xff]   ;;  %v9976_v20 = vld [vmem:[#allocation7 + $0x1e8] ss:$16 sps:$4 sm:$0xff]   ;;  %v9981_v21 = vld [vmem:[#allocation7 + $0x204] ss:$16 sps:$4 sm:$0xff]  }
  0xf5   :  { %v9984_v22 = vld [vmem:[#allocation7 + $0x20c] ss:$16 sps:$4 sm:$0xff]   ;;  %v12108_v24 = vshrl.u32 %v224_v23, 7  ;;  %v10041_v23 = vld [vmem:[#allocation7 + $0x344] ss:$16 sps:$4 sm:$0xff]  }
  0xf6   :  { %1224 = vmatpush1.bf16.msra.mxu0 %v9901_v33  ;;  %v12113_v26 = vld [vmem:[#allocation5] sm:$0xf] }
  0xf7   :  { %1225 = vmatprep.subr.bf16.mxu0 %v9909_v34  ;;  %1306 = vmatpush1.bf16.msra.mxu1 %v9904_v39  ;;  %v12111_v25 = vsub.s32 0, %v12108_v24  ;;  %v12116_v27 = vsub.s32 1, %v12108_v24  ;;  %v12123_v31 = vsub.s32 3, %v12108_v24 }
  0xf8   :  { %1307 = vmatprep.subr.bf16.mxu1 %v9912_v40 }
  0xf9   :  { %v227_v28 = vrot.slane %v12113_v26, %v12111_v25  ;;  %v231_v29 = vrot.slane %v12113_v26, %v12116_v27  ;;  %v239_v39 = vrot.slane %v12113_v26, %v12123_v31 }
  0xfa   :  { %1226 = vmatpush1.bf16.msra.mxu0 %v9907_v37 }
  0xfb   :  { %1227 = vmatprep.subr.bf16.mxu0 %v9915_v38  ;;  %1308 = vmatpush1.bf16.msra.mxu1 %v9910_v43 }
  0xfc   :  { %1309 = vmatprep.subr.bf16.mxu1 %v9918_v44 }
  0xfe   :  { %1228 = vmatpush1.bf16.msra.mxu0 %v9913_v41  ;;  %v9979_v41 = vld [vmem:[#allocation7 + $0x200] ss:$16 sps:$4 sm:$0xff]  }
  0xff   :  { %1229 = vmatprep.subr.bf16.mxu0 %v9921_v42  ;;  %1310 = vmatpush1.bf16.msra.mxu1 %v9916_v47  ;;  %v9982_v42 = vld [vmem:[#allocation7 + $0x208] ss:$16 sps:$4 sm:$0xff]  }
 0x100   :  { %1311 = vmatprep.subr.bf16.mxu1 %v9924_v48 }
 0x102   :  { %1230 = vmatpush1.bf16.msra.mxu0 %v9919_v45  ;;  %v9987_v45 = vld [vmem:[#allocation7 + $0x224] ss:$16 sps:$4 sm:$0xff]  }
 0x103   :  { %1231 = vmatprep.subr.bf16.mxu0 %v9927_v46  ;;  %1312 = vmatpush1.bf16.msra.mxu1 %v9922_v51  ;;  %v9990_v46 = vld [vmem:[#allocation7 + $0x22c] ss:$16 sps:$4 sm:$0xff]   ;;  %v9985_v51 = vld [vmem:[#allocation7 + $0x220] ss:$16 sps:$4 sm:$0xff]  }
 0x104   :  { %1313 = vmatprep.subr.bf16.mxu1 %v9930_v52  ;;  %v9988_v52 = vld [vmem:[#allocation7 + $0x228] ss:$16 sps:$4 sm:$0xff]  }
 0x106   :  { %1232 = vmatpush1.bf16.msra.mxu0 %v9925_v49 }
 0x107   :  { %1233 = vmatprep.subr.bf16.mxu0 %v9933_v50  ;;  %1314 = vmatpush1.bf16.msra.mxu1 %v9928_v53 }
 0x108   :  { %1315 = vmatprep.subr.bf16.mxu1 %v9936_v55  ;;  %v9996_v55 = vld [vmem:[#allocation7 + $0x24c] ss:$16 sps:$4 sm:$0xff]  }
 0x10a   :  { %1234 = vmatpush1.bf16.msra.mxu0 %v9931_v54  ;;  %v9993_v54 = vld [vmem:[#allocation7 + $0x244] ss:$16 sps:$4 sm:$0xff]  }
 0x10b   :  { %1235 = vmatprep.subr.bf16.mxu0 %v9939_v56  ;;  %1316 = vmatpush1.bf16.msra.mxu1 %v9934_v59  ;;  %v9999_v59 = vld [vmem:[#allocation7 + $0x264] ss:$16 sps:$4 sm:$0xff]  }
 0x10c   :  { %1317 = vmatprep.subr.bf16.mxu1 %v9942_v60  ;;  %v10002_v60 = vld [vmem:[#allocation7 + $0x26c] ss:$16 sps:$4 sm:$0xff]  }
 0x10e   :  { %1236 = vmatpush1.bf16.msra.mxu0 %v9937_v57  ;;  %v9991_v57 = vld [vmem:[#allocation7 + $0x240] ss:$16 sps:$4 sm:$0xff]  }
 0x10f   :  { %1237 = vmatprep.subr.bf16.mxu0 %v9945_v58  ;;  %1318 = vmatpush1.bf16.msra.mxu1 %v9940_v63  ;;  %v9994_v58 = vld [vmem:[#allocation7 + $0x248] ss:$16 sps:$4 sm:$0xff]   ;;  %v10005_v63 = vld [vmem:[#allocation7 + $0x284] ss:$16 sps:$4 sm:$0xff]  }
 0x110   :  { %1319 = vmatprep.subr.bf16.mxu1 %v9948_v0  ;;  %v10008_v0 = vld [vmem:[#allocation7 + $0x28c] ss:$16 sps:$4 sm:$0xff]  }
 0x112   :  { %1238 = vmatpush1.bf16.msra.mxu0 %v9943_v61  ;;  %v9997_v61 = vld [vmem:[#allocation7 + $0x260] ss:$16 sps:$4 sm:$0xff]  }
 0x113   :  { %1239 = vmatprep.subr.bf16.mxu0 %v9951_v62  ;;  %1320 = vmatpush1.bf16.msra.mxu1 %v9946_v3  ;;  %v10000_v62 = vld [vmem:[#allocation7 + $0x268] ss:$16 sps:$4 sm:$0xff]   ;;  %v10011_v3 = vld [vmem:[#allocation7 + $0x2a4] ss:$16 sps:$4 sm:$0xff]  }
 0x114   :  { %1321 = vmatprep.subr.bf16.mxu1 %v9954_v4  ;;  %v10014_v4 = vld [vmem:[#allocation7 + $0x2ac] ss:$16 sps:$4 sm:$0xff]  }
 0x116   :  { %1240 = vmatpush1.bf16.msra.mxu0 %v9949_v1  ;;  %v10003_v1 = vld [vmem:[#allocation7 + $0x280] ss:$16 sps:$4 sm:$0xff]  }
 0x117   :  { %1241 = vmatprep.subr.bf16.mxu0 %v9957_v2  ;;  %1322 = vmatpush1.bf16.msra.mxu1 %v9952_v7  ;;  %v10006_v2 = vld [vmem:[#allocation7 + $0x288] ss:$16 sps:$4 sm:$0xff]   ;;  %v10017_v7 = vld [vmem:[#allocation7 + $0x2c4] ss:$16 sps:$4 sm:$0xff]  }
 0x118   :  { %1323 = vmatprep.subr.bf16.mxu1 %v9960_v8  ;;  %v10020_v8 = vld [vmem:[#allocation7 + $0x2cc] ss:$16 sps:$4 sm:$0xff]  }
 0x11a   :  { %1242 = vmatpush1.bf16.msra.mxu0 %v9955_v5  ;;  %v10009_v5 = vld [vmem:[#allocation7 + $0x2a0] ss:$16 sps:$4 sm:$0xff]  }
 0x11b   :  { %1243 = vmatprep.subr.bf16.mxu0 %v9963_v6  ;;  %1324 = vmatpush1.bf16.msra.mxu1 %v9958_v10  ;;  %v10012_v6 = vld [vmem:[#allocation7 + $0x2a8] ss:$16 sps:$4 sm:$0xff]  }
 0x11c   :  { %1325 = vmatprep.subr.bf16.mxu1 %v9966_v11  ;;  %v10018_v10 = vld [vmem:[#allocation7 + $0x2c8] ss:$16 sps:$4 sm:$0xff]   ;;  %v10023_v11 = vld [vmem:[#allocation7 + $0x2e4] ss:$16 sps:$4 sm:$0xff]  }
 0x11e   :  { %1244 = vmatpush1.bf16.msra.mxu0 %v9961_v9  ;;  %v10015_v9 = vld [vmem:[#allocation7 + $0x2c0] ss:$16 sps:$4 sm:$0xff]  }
 0x11f   :  { %1326 = vmatpush1.bf16.msra.mxu1 %v9964_v12  ;;  %1245 = vmatprep.subr.bf16.mxu0 %v9969_v13  ;;  %v10026_v12 = vld [vmem:[#allocation7 + $0x2ec] ss:$16 sps:$4 sm:$0xff]   ;;  %v10021_v13 = vld [vmem:[#allocation7 + $0x2e0] ss:$16 sps:$4 sm:$0xff]  }
 0x120   :  { %1327 = vmatprep.subr.bf16.mxu1 %v9972_v14  ;;  %v10024_v14 = vld [vmem:[#allocation7 + $0x2e8] ss:$16 sps:$4 sm:$0xff]  }
 0x122   :  { %1246 = vmatpush1.bf16.msra.mxu0 %v9967_v15  ;;  %v10029_v15 = vld [vmem:[#allocation7 + $0x304] ss:$16 sps:$4 sm:$0xff]  }
 0x123   :  { %1328 = vmatpush1.bf16.msra.mxu1 %v9970_v16  ;;  %1247 = vmatprep.subr.bf16.mxu0 %v9975_v17  ;;  %v10032_v16 = vld [vmem:[#allocation7 + $0x30c] ss:$16 sps:$4 sm:$0xff]   ;;  %v10027_v17 = vld [vmem:[#allocation7 + $0x300] ss:$16 sps:$4 sm:$0xff]  }
 0x124   :  { %1329 = vmatprep.subr.bf16.mxu1 %v9978_v18  ;;  %v10030_v18 = vld [vmem:[#allocation7 + $0x308] ss:$16 sps:$4 sm:$0xff]  }
 0x126   :  { %1248 = vmatpush1.bf16.msra.mxu0 %v9973_v19  ;;  %v10035_v19 = vld [vmem:[#allocation7 + $0x324] ss:$16 sps:$4 sm:$0xff]  }
 0x127   :  { %1330 = vmatpush1.bf16.msra.mxu1 %v9976_v20  ;;  %1258 = vmatprep.subr.bf16.mxu0 %v9981_v21  ;;  %v10038_v20 = vld [vmem:[#allocation7 + $0x32c] ss:$16 sps:$4 sm:$0xff]   ;;  %v10033_v21 = vld [vmem:[#allocation7 + $0x320] ss:$16 sps:$4 sm:$0xff]  }
 0x128   :  { %1340 = vmatprep.subr.bf16.mxu1 %v9984_v22  ;;  %v10036_v22 = vld [vmem:[#allocation7 + $0x328] ss:$16 sps:$4 sm:$0xff]  }
 0x1bc   :  { %v371_v30 = vpop.f32.mrb[0].mxu0 }
 0x1bd   :  { %v372_v32 = vadd.f32 %v371_v30, %v227_v28  ;;  %v373_v33 = vpop.f32.mrb[1].mxu0  ;;  %v12127_v43 = vpop.f32.mrb[0].mxu1  ;;  %v10044_v28 = vld [vmem:[#allocation7 + $0x34c] ss:$16 sps:$4 sm:$0xff]   ;;  %v10042_v30 = vld [vmem:[#allocation7 + $0x348] ss:$16 sps:$4 sm:$0xff]  }
 0x1be   :  { %v374_v34 = vadd.f32 %v373_v33, %v231_v29  ;;  %v375_v35 = vpop.f32.mrb[2].mxu0  ;;  %v414_v47 = vpop.f32.mrb[1].mxu1  ;;  %v10039_v29 = vld [vmem:[#allocation7 + $0x340] ss:$16 sps:$4 sm:$0xff]   ;;  %v10050_v33 = vld [vmem:[#allocation7 + $0x36c] ss:$16 sps:$4 sm:$0xff]  }
 0x1bf   :  { %v419_v36 = vmax.f32 %v372_v32, 0.0  ;;  %v376_v37 = vpop.f32.mrb[3].mxu0  ;;  %v415_v48 = vadd.f32 %v414_v47, %v239_v39  ;;  %v416_v49 = vpop.f32.mrb[2].mxu1  ;;  %v10047_v32 = vld [vmem:[#allocation7 + $0x364] ss:$16 sps:$4 sm:$0xff]  }
 0x1c0   :  { %v420_v38 = vmax.f32 %v374_v34, 0.0  ;;  %v417_v50 = vpop.f32.mrb[3].mxu1  ;;  %v10045_v34 = vld [vmem:[#allocation7 + $0x360] ss:$16 sps:$4 sm:$0xff]   ;;  %v10048_v35 = vld [vmem:[#allocation7 + $0x368] ss:$16 sps:$4 sm:$0xff]  }
 0x1c1   :  { %v423_v44 = vpack.c.bf16 %v419_v36, %v419_v36  ;;  %v422_v53 = vmax.f32 %v415_v48, 0.0  ;;  %v10053_v36 = vld [vmem:[#allocation7 + $0x384] ss:$16 sps:$4 sm:$0xff]   ;;  %v10056_v37 = vld [vmem:[#allocation7 + $0x38c] ss:$16 sps:$4 sm:$0xff]  }
 0x1c2   :  { %v424_v40 = vpack.c.bf16 %v420_v38, %v420_v38  ;;  %v12130_v38 = vsub.s32 2, %v12108_v24  ;;  %v10051_v39 = vld [vmem:[#allocation7 + $0x380] ss:$16 sps:$4 sm:$0xff]   ;;  %v10065_v47 = vld [vmem:[#allocation7 + $0x3c4] ss:$16 sps:$4 sm:$0xff]  }
 0x1c3   :  { %v426_v56 = vpack.c.bf16 %v422_v53, %v422_v53  ;;  %v10068_v24 = vld [vmem:[#allocation7 + $0x3cc] ss:$16 sps:$4 sm:$0xff]   ;;  %v10063_v49 = vld [vmem:[#allocation7 + $0x3c0] ss:$16 sps:$4 sm:$0xff]   ;;  %v10066_v50 = vld [vmem:[#allocation7 + $0x3c8] ss:$16 sps:$4 sm:$0xff]  }
 0x1c4   :  { %1249 = vmatprep.mubr.bf16.mxu0 %v424_v40  ;;  %1331 = vmatprep.mubr.bf16.mxu1 %v424_v40  ;;  %v10054_v40 = vld [vmem:[#allocation7 + $0x388] ss:$16 sps:$4 sm:$0xff]   ;;  %v10069_v53 = vld [vmem:[#allocation7 + $0x3e0] ss:$16 sps:$4 sm:$0xff]  }
 0x1c5   :  { %1250 = vmatmul.mubr.bf16.vlgmr.msra.gmra.mrb[4].mxu0 %v423_v44  ;;  %1332 = vmatmul.mubr.bf16.vlgmr.msra.gmra.mrb[4].mxu1 %v423_v44  ;;  %v235_v44 = vrot.slane %v12113_v26, %v12130_v38 }
 0x1c6   :  { %1259 = vmatpush1.bf16.msra.mxu0 %v9979_v41  ;;  %1341 = vmatpush1.bf16.msra.mxu1 %v9982_v42  ;;  %v10059_v41 = vld [vmem:[#allocation7 + $0x3a4] ss:$16 sps:$4 sm:$0xff]   ;;  %v10062_v42 = vld [vmem:[#allocation7 + $0x3ac] ss:$16 sps:$4 sm:$0xff]  }
 0x1c7   :  { %1260 = vmatprep.subr.bf16.mxu0 %v9987_v45  ;;  %1342 = vmatprep.subr.bf16.mxu1 %v9990_v46  ;;  %v10057_v45 = vld [vmem:[#allocation7 + $0x3a0] ss:$16 sps:$4 sm:$0xff]   ;;  %v10060_v46 = vld [vmem:[#allocation7 + $0x3a8] ss:$16 sps:$4 sm:$0xff]   ;;  %v413_v48 = vadd.f32 %v12127_v43, %v235_v44 }
 0x1c8   :  { %1290 = vmatprep.mubr.bf16.mxu0 %v426_v56  ;;  %1372 = vmatprep.mubr.bf16.mxu1 %v426_v56  ;;  %v10080_v56 = vld [vmem:[#allocation10 + $0xc] ss:$16 sps:$4 sm:$0xff]   ;;  %v10143_v44 = vld [vmem:[#allocation10 + $0x164] ss:$16 sps:$4 sm:$0xff]  }
 0x1c9   :  { %v421_v26 = vmax.f32 %v413_v48, 0.0  ;;  %v12138_v43 = vld [vmem:[%s12324_s1] sm:$0xff] }
 0x1ca   :  { %1261 = vmatpush1.bf16.msra.mxu0 %v9985_v51  ;;  %1343 = vmatpush1.bf16.msra.mxu1 %v9988_v52  ;;  %v10071_v51 = vld [vmem:[#allocation7 + $0x3e4] ss:$16 sps:$4 sm:$0xff]   ;;  %v10074_v52 = vld [vmem:[#allocation7 + $0x3ec] ss:$16 sps:$4 sm:$0xff]   ;;  %v10152_v48 = vld [vmem:[#allocation10 + $0x18c] ss:$16 sps:$4 sm:$0xff]  }
 0x1cb   :  { %1262 = vmatprep.subr.bf16.mxu0 %v9993_v54  ;;  %1344 = vmatprep.subr.bf16.mxu1 %v9996_v55  ;;  %v10072_v54 = vld [vmem:[#allocation7 + $0x3e8] ss:$16 sps:$4 sm:$0xff]  }
 0x1cc   :  { %v10077_v55 = vld [vmem:[#allocation10 + $0x4] ss:$16 sps:$4 sm:$0xff]  }
 0x1ce   :  { %1263 = vmatpush1.bf16.msra.mxu0 %v9991_v57  ;;  %1345 = vmatpush1.bf16.msra.mxu1 %v9994_v58  ;;  %v425_v57 = vpack.c.bf16 %v421_v26, %v421_v26  ;;  %v10075_v58 = vld [vmem:[#allocation10] ss:$16 sps:$4 sm:$0xff]   ;;  %v10156_v26 = vld [vmem:[#allocation10 + $0x1a8] ss:$16 sps:$4 sm:$0xff]  }
 0x1cf   :  { %1264 = vmatprep.subr.bf16.mxu0 %v9999_v59  ;;  %1346 = vmatprep.subr.bf16.mxu1 %v10002_v60  ;;  %v10078_v59 = vld [vmem:[#allocation10 + $0x8] ss:$16 sps:$4 sm:$0xff]   ;;  %v10083_v60 = vld [vmem:[#allocation10 + $0x24] ss:$16 sps:$4 sm:$0xff]  }
 0x1d2   :  { %1265 = vmatpush1.bf16.msra.mxu0 %v9997_v61  ;;  %1347 = vmatpush1.bf16.msra.mxu1 %v10000_v62  ;;  %v10086_v61 = vld [vmem:[#allocation10 + $0x2c] ss:$16 sps:$4 sm:$0xff]   ;;  %v8772_v62 = vcombine.high %v12138_v43, %v12138_v43 }
 0x1d3   :  { %1266 = vmatprep.subr.bf16.mxu0 %v10005_v63  ;;  %1348 = vmatprep.subr.bf16.mxu1 %v10008_v0  ;;  %v10081_v63 = vld [vmem:[#allocation10 + $0x20] ss:$16 sps:$4 sm:$0xff]   ;;  %v10084_v0 = vld [vmem:[#allocation10 + $0x28] ss:$16 sps:$4 sm:$0xff]  }
 0x1d6   :  { %1267 = vmatpush1.bf16.msra.mxu0 %v10003_v1  ;;  %1349 = vmatpush1.bf16.msra.mxu1 %v10006_v2  ;;  %v10089_v1 = vld [vmem:[#allocation10 + $0x44] ss:$16 sps:$4 sm:$0xff]   ;;  %v10092_v2 = vld [vmem:[#allocation10 + $0x4c] ss:$16 sps:$4 sm:$0xff]  }
 0x1d7   :  { %1268 = vmatprep.subr.bf16.mxu0 %v10011_v3  ;;  %1350 = vmatprep.subr.bf16.mxu1 %v10014_v4  ;;  %v10087_v3 = vld [vmem:[#allocation10 + $0x40] ss:$16 sps:$4 sm:$0xff]   ;;  %v10090_v4 = vld [vmem:[#allocation10 + $0x48] ss:$16 sps:$4 sm:$0xff]  }
 0x1da   :  { %1269 = vmatpush1.bf16.msra.mxu0 %v10009_v5  ;;  %1351 = vmatpush1.bf16.msra.mxu1 %v10012_v6  ;;  %v10095_v5 = vld [vmem:[#allocation10 + $0x64] ss:$16 sps:$4 sm:$0xff]   ;;  %v10098_v6 = vld [vmem:[#allocation10 + $0x6c] ss:$16 sps:$4 sm:$0xff]  }
 0x1db   :  { %1270 = vmatprep.subr.bf16.mxu0 %v10017_v7  ;;  %1352 = vmatprep.subr.bf16.mxu1 %v10020_v8  ;;  %v10093_v7 = vld [vmem:[#allocation10 + $0x60] ss:$16 sps:$4 sm:$0xff]   ;;  %v10096_v8 = vld [vmem:[#allocation10 + $0x68] ss:$16 sps:$4 sm:$0xff]  }
 0x1de   :  { %1271 = vmatpush1.bf16.msra.mxu0 %v10015_v9  ;;  %1353 = vmatpush1.bf16.msra.mxu1 %v10018_v10  ;;  %v10101_v9 = vld [vmem:[#allocation10 + $0x84] ss:$16 sps:$4 sm:$0xff]   ;;  %v10104_v10 = vld [vmem:[#allocation10 + $0x8c] ss:$16 sps:$4 sm:$0xff]  }
 0x1df   :  { %1272 = vmatprep.subr.bf16.mxu0 %v10023_v11  ;;  %1354 = vmatprep.subr.bf16.mxu1 %v10026_v12  ;;  %v10099_v11 = vld [vmem:[#allocation10 + $0x80] ss:$16 sps:$4 sm:$0xff]   ;;  %v10102_v12 = vld [vmem:[#allocation10 + $0x88] ss:$16 sps:$4 sm:$0xff]  }
 0x1e2   :  { %1273 = vmatpush1.bf16.msra.mxu0 %v10021_v13  ;;  %1355 = vmatpush1.bf16.msra.mxu1 %v10024_v14  ;;  %v10107_v13 = vld [vmem:[#allocation10 + $0xa4] ss:$16 sps:$4 sm:$0xff]   ;;  %v10110_v14 = vld [vmem:[#allocation10 + $0xac] ss:$16 sps:$4 sm:$0xff]  }
 0x1e3   :  { %1274 = vmatprep.subr.bf16.mxu0 %v10029_v15  ;;  %1356 = vmatprep.subr.bf16.mxu1 %v10032_v16  ;;  %v10105_v15 = vld [vmem:[#allocation10 + $0xa0] ss:$16 sps:$4 sm:$0xff]   ;;  %v10108_v16 = vld [vmem:[#allocation10 + $0xa8] ss:$16 sps:$4 sm:$0xff]  }
 0x1e6   :  { %1275 = vmatpush1.bf16.msra.mxu0 %v10027_v17  ;;  %1357 = vmatpush1.bf16.msra.mxu1 %v10030_v18  ;;  %v10113_v17 = vld [vmem:[#allocation10 + $0xc4] ss:$16 sps:$4 sm:$0xff]   ;;  %v10116_v18 = vld [vmem:[#allocation10 + $0xcc] ss:$16 sps:$4 sm:$0xff]  }
 0x1e7   :  { %1276 = vmatprep.subr.bf16.mxu0 %v10035_v19  ;;  %1358 = vmatprep.subr.bf16.mxu1 %v10038_v20  ;;  %v10111_v19 = vld [vmem:[#allocation10 + $0xc0] ss:$16 sps:$4 sm:$0xff]   ;;  %v10114_v20 = vld [vmem:[#allocation10 + $0xc8] ss:$16 sps:$4 sm:$0xff]  }
 0x1ea   :  { %1277 = vmatpush1.bf16.msra.mxu0 %v10033_v21  ;;  %1359 = vmatpush1.bf16.msra.mxu1 %v10036_v22  ;;  %v10119_v21 = vld [vmem:[#allocation10 + $0xe4] ss:$16 sps:$4 sm:$0xff]   ;;  %v10122_v22 = vld [vmem:[#allocation10 + $0xec] ss:$16 sps:$4 sm:$0xff]  }
 0x1eb   :  { %1278 = vmatprep.subr.bf16.mxu0 %v10041_v23  ;;  %1360 = vmatprep.subr.bf16.mxu1 %v10044_v28  ;;  %v10117_v23 = vld [vmem:[#allocation10 + $0xe0] ss:$16 sps:$4 sm:$0xff]   ;;  %v10120_v28 = vld [vmem:[#allocation10 + $0xe8] ss:$16 sps:$4 sm:$0xff]  }
 0x1ee   :  { %1279 = vmatpush1.bf16.msra.mxu0 %v10039_v29  ;;  %1361 = vmatpush1.bf16.msra.mxu1 %v10042_v30  ;;  %v10125_v29 = vld [vmem:[#allocation10 + $0x104] ss:$16 sps:$4 sm:$0xff]   ;;  %v10128_v30 = vld [vmem:[#allocation10 + $0x10c] ss:$16 sps:$4 sm:$0xff]  }
 0x1ef   :  { %1280 = vmatprep.subr.bf16.mxu0 %v10047_v32  ;;  %1362 = vmatprep.subr.bf16.mxu1 %v10050_v33  ;;  %v10123_v32 = vld [vmem:[#allocation10 + $0x100] ss:$16 sps:$4 sm:$0xff]   ;;  %v10126_v33 = vld [vmem:[#allocation10 + $0x108] ss:$16 sps:$4 sm:$0xff]  }
 0x1f2   :  { %1281 = vmatpush1.bf16.msra.mxu0 %v10045_v34  ;;  %1363 = vmatpush1.bf16.msra.mxu1 %v10048_v35  ;;  %v10131_v34 = vld [vmem:[#allocation10 + $0x124] ss:$16 sps:$4 sm:$0xff]   ;;  %v10134_v35 = vld [vmem:[#allocation10 + $0x12c] ss:$16 sps:$4 sm:$0xff]  }
 0x1f3   :  { %1282 = vmatprep.subr.bf16.mxu0 %v10053_v36  ;;  %1364 = vmatprep.subr.bf16.mxu1 %v10056_v37  ;;  %v10129_v36 = vld [vmem:[#allocation10 + $0x120] ss:$16 sps:$4 sm:$0xff]   ;;  %v10132_v37 = vld [vmem:[#allocation10 + $0x128] ss:$16 sps:$4 sm:$0xff]  }
 0x1f6   :  { %1283 = vmatpush1.bf16.msra.mxu0 %v10051_v39  ;;  %1365 = vmatpush1.bf16.msra.mxu1 %v10054_v40  ;;  %v10137_v39 = vld [vmem:[#allocation10 + $0x144] ss:$16 sps:$4 sm:$0xff]   ;;  %v10140_v40 = vld [vmem:[#allocation10 + $0x14c] ss:$16 sps:$4 sm:$0xff]  }
 0x1f7   :  { %1284 = vmatprep.subr.bf16.mxu0 %v10059_v41  ;;  %1366 = vmatprep.subr.bf16.mxu1 %v10062_v42  ;;  %v10135_v41 = vld [vmem:[#allocation10 + $0x140] ss:$16 sps:$4 sm:$0xff]   ;;  %v10138_v42 = vld [vmem:[#allocation10 + $0x148] ss:$16 sps:$4 sm:$0xff]  }
 0x1fa   :  { %1285 = vmatpush1.bf16.msra.mxu0 %v10057_v45  ;;  %1367 = vmatpush1.bf16.msra.mxu1 %v10060_v46  ;;  %v10146_v45 = vld [vmem:[#allocation10 + $0x16c] ss:$16 sps:$4 sm:$0xff]   ;;  %v10141_v46 = vld [vmem:[#allocation10 + $0x160] ss:$16 sps:$4 sm:$0xff]  }
 0x1fb   :  { %1286 = vmatprep.subr.bf16.mxu0 %v10065_v47  ;;  %1368 = vmatprep.subr.bf16.mxu1 %v10068_v24  ;;  %v10144_v47 = vld [vmem:[#allocation10 + $0x168] ss:$16 sps:$4 sm:$0xff]   ;;  %v10149_v24 = vld [vmem:[#allocation10 + $0x184] ss:$16 sps:$4 sm:$0xff]  }
 0x1fe   :  { %1287 = vmatpush1.bf16.msra.mxu0 %v10063_v49  ;;  %1369 = vmatpush1.bf16.msra.mxu1 %v10066_v50  ;;  %v10147_v49 = vld [vmem:[#allocation10 + $0x180] ss:$16 sps:$4 sm:$0xff]   ;;  %v10150_v50 = vld [vmem:[#allocation10 + $0x188] ss:$16 sps:$4 sm:$0xff]  }
 0x1ff   :  { %1288 = vmatprep.subr.bf16.mxu0 %v10071_v51  ;;  %1370 = vmatprep.subr.bf16.mxu1 %v10074_v52  ;;  %v10155_v51 = vld [vmem:[#allocation10 + $0x1a4] ss:$16 sps:$4 sm:$0xff]   ;;  %v10158_v52 = vld [vmem:[#allocation10 + $0x1ac] ss:$16 sps:$4 sm:$0xff]  }
 0x202   :  { %1289 = vmatpush1.bf16.msra.mxu0 %v10069_v53  ;;  %1371 = vmatpush1.bf16.msra.mxu1 %v10072_v54  ;;  %v10153_v53 = vld [vmem:[#allocation10 + $0x1a0] ss:$16 sps:$4 sm:$0xff]   ;;  %v10161_v54 = vld [vmem:[#allocation10 + $0x1c4] ss:$16 sps:$4 sm:$0xff]  }
 0x203   :  { %4935 = vmatprep.subr.bf16.mxu0 %v10077_v55  ;;  %5304 = vmatprep.subr.bf16.mxu1 %v10080_v56  ;;  %v10164_v55 = vld [vmem:[#allocation10 + $0x1cc] ss:$16 sps:$4 sm:$0xff]   ;;  %v10159_v56 = vld [vmem:[#allocation10 + $0x1c0] ss:$16 sps:$4 sm:$0xff]  }
 0x205   :  { %1291 = vmatmul.mubr.bf16.vlgmr.msra.gmra.mrb[4].mxu0 %v425_v57  ;;  %1373 = vmatmul.mubr.bf16.vlgmr.msra.gmra.mrb[4].mxu1 %v425_v57  ;;  %v10162_v57 = vld [vmem:[#allocation10 + $0x1c8] ss:$16 sps:$4 sm:$0xff]  }
 0x206   :  { %4936 = vmatpush1.bf16.msra.mxu0 %v10075_v58  ;;  %5305 = vmatpush1.bf16.msra.mxu1 %v10078_v59  ;;  %v10167_v58 = vld [vmem:[#allocation10 + $0x1e4] ss:$16 sps:$4 sm:$0xff]   ;;  %v10170_v59 = vld [vmem:[#allocation10 + $0x1ec] ss:$16 sps:$4 sm:$0xff]  }
 0x207   :  { %4937 = vmatprep.subr.bf16.mxu0 %v10083_v60  ;;  %5306 = vmatprep.subr.bf16.mxu1 %v10086_v61  ;;  %v10165_v60 = vld [vmem:[#allocation10 + $0x1e0] ss:$16 sps:$4 sm:$0xff]   ;;  %v10168_v61 = vld [vmem:[#allocation10 + $0x1e8] ss:$16 sps:$4 sm:$0xff]  }
 0x208   :  { %4967 = vmatprep.mubr.bf16.mxu0 %v8772_v62  ;;  %5336 = vmatprep.mubr.bf16.mxu1 %v8772_v62  ;;  %v10175_v62 = vld [vmem:[#allocation10 + $0x204] ss:$16 sps:$4 sm:$0xff]  }
 0x20a   :  { %4938 = vmatpush1.bf16.msra.mxu0 %v10081_v63  ;;  %5307 = vmatpush1.bf16.msra.mxu1 %v10084_v0  ;;  %v10178_v63 = vld [vmem:[#allocation10 + $0x20c] ss:$16 sps:$4 sm:$0xff]  }
 0x20b   :  { %4939 = vmatprep.subr.bf16.mxu0 %v10089_v1  ;;  %5308 = vmatprep.subr.bf16.mxu1 %v10092_v2  ;;  %v12145_v0 = vld [vmem:[%s12324_s1 + $0x8] sm:$0xff]  ;;  %v8771_v1 = vcombine.low %v12138_v43, %v12138_v43 }
 0x20c   :  { %v10173_v2 = vld [vmem:[#allocation10 + $0x200] ss:$16 sps:$4 sm:$0xff]   ;;  %v10187_v43 = vld [vmem:[#allocation10 + $0x244] ss:$16 sps:$4 sm:$0xff]  }
 0x20e   :  { %4940 = vmatpush1.bf16.msra.mxu0 %v10087_v3  ;;  %5309 = vmatpush1.bf16.msra.mxu1 %v10090_v4  ;;  %v10176_v3 = vld [vmem:[#allocation10 + $0x208] ss:$16 sps:$4 sm:$0xff]   ;;  %v10181_v4 = vld [vmem:[#allocation10 + $0x224] ss:$16 sps:$4 sm:$0xff]  }
 0x20f   :  { %4941 = vmatprep.subr.bf16.mxu0 %v10095_v5  ;;  %5310 = vmatprep.subr.bf16.mxu1 %v10098_v6  ;;  %v10184_v5 = vld [vmem:[#allocation10 + $0x22c] ss:$16 sps:$4 sm:$0xff]   ;;  %v8774_v6 = vcombine.high %v12145_v0, %v12145_v0 }
 0x212   :  { %4942 = vmatpush1.bf16.msra.mxu0 %v10093_v7  ;;  %5311 = vmatpush1.bf16.msra.mxu1 %v10096_v8  ;;  %v10179_v7 = vld [vmem:[#allocation10 + $0x220] ss:$16 sps:$4 sm:$0xff]   ;;  %v10182_v8 = vld [vmem:[#allocation10 + $0x228] ss:$16 sps:$4 sm:$0xff]  }
 0x213   :  { %4943 = vmatprep.subr.bf16.mxu0 %v10101_v9  ;;  %5312 = vmatprep.subr.bf16.mxu1 %v10104_v10  ;;  %v10190_v9 = vld [vmem:[#allocation10 + $0x24c] ss:$16 sps:$4 sm:$0xff]   ;;  %v10185_v10 = vld [vmem:[#allocation10 + $0x240] ss:$16 sps:$4 sm:$0xff]  }
 0x216   :  { %4944 = vmatpush1.bf16.msra.mxu0 %v10099_v11  ;;  %5313 = vmatpush1.bf16.msra.mxu1 %v10102_v12  ;;  %v10188_v11 = vld [vmem:[#allocation10 + $0x248] ss:$16 sps:$4 sm:$0xff]   ;;  %v10193_v12 = vld [vmem:[#allocation10 + $0x264] ss:$16 sps:$4 sm:$0xff]  }
 0x217   :  { %4945 = vmatprep.subr.bf16.mxu0 %v10107_v13  ;;  %5314 = vmatprep.subr.bf16.mxu1 %v10110_v14  ;;  %v10196_v13 = vld [vmem:[#allocation10 + $0x26c] ss:$16 sps:$4 sm:$0xff]   ;;  %v10191_v14 = vld [vmem:[#allocation10 + $0x260] ss:$16 sps:$4 sm:$0xff]  }
 0x21a   :  { %4946 = vmatpush1.bf16.msra.mxu0 %v10105_v15  ;;  %5315 = vmatpush1.bf16.msra.mxu1 %v10108_v16  ;;  %v10194_v15 = vld [vmem:[#allocation10 + $0x268] ss:$16 sps:$4 sm:$0xff]   ;;  %v10199_v16 = vld [vmem:[#allocation10 + $0x284] ss:$16 sps:$4 sm:$0xff]  }
 0x21b   :  { %4947 = vmatprep.subr.bf16.mxu0 %v10113_v17  ;;  %5316 = vmatprep.subr.bf16.mxu1 %v10116_v18  ;;  %v10202_v17 = vld [vmem:[#allocation10 + $0x28c] ss:$16 sps:$4 sm:$0xff]   ;;  %v10197_v18 = vld [vmem:[#allocation10 + $0x280] ss:$16 sps:$4 sm:$0xff]  }
 0x21e   :  { %4948 = vmatpush1.bf16.msra.mxu0 %v10111_v19  ;;  %5317 = vmatpush1.bf16.msra.mxu1 %v10114_v20  ;;  %v10200_v19 = vld [vmem:[#allocation10 + $0x288] ss:$16 sps:$4 sm:$0xff]   ;;  %v10205_v20 = vld [vmem:[#allocation10 + $0x2a4] ss:$16 sps:$4 sm:$0xff]  }
 0x21f   :  { %4949 = vmatprep.subr.bf16.mxu0 %v10119_v21  ;;  %5318 = vmatprep.subr.bf16.mxu1 %v10122_v22  ;;  %v10208_v21 = vld [vmem:[#allocation10 + $0x2ac] ss:$16 sps:$4 sm:$0xff]   ;;  %v10203_v22 = vld [vmem:[#allocation10 + $0x2a0] ss:$16 sps:$4 sm:$0xff]  }
 0x222   :  { %4950 = vmatpush1.bf16.msra.mxu0 %v10117_v23  ;;  %5319 = vmatpush1.bf16.msra.mxu1 %v10120_v28  ;;  %v10206_v23 = vld [vmem:[#allocation10 + $0x2a8] ss:$16 sps:$4 sm:$0xff]   ;;  %v10211_v28 = vld [vmem:[#allocation10 + $0x2c4] ss:$16 sps:$4 sm:$0xff]  }
 0x223   :  { %4951 = vmatprep.subr.bf16.mxu0 %v10125_v29  ;;  %5320 = vmatprep.subr.bf16.mxu1 %v10128_v30  ;;  %v10214_v29 = vld [vmem:[#allocation10 + $0x2cc] ss:$16 sps:$4 sm:$0xff]   ;;  %v10209_v30 = vld [vmem:[#allocation10 + $0x2c0] ss:$16 sps:$4 sm:$0xff]  }
 0x226   :  { %4952 = vmatpush1.bf16.msra.mxu0 %v10123_v32  ;;  %5321 = vmatpush1.bf16.msra.mxu1 %v10126_v33  ;;  %v10212_v32 = vld [vmem:[#allocation10 + $0x2c8] ss:$16 sps:$4 sm:$0xff]   ;;  %v10217_v33 = vld [vmem:[#allocation10 + $0x2e4] ss:$16 sps:$4 sm:$0xff]  }
 0x227   :  { %4953 = vmatprep.subr.bf16.mxu0 %v10131_v34  ;;  %5322 = vmatprep.subr.bf16.mxu1 %v10134_v35  ;;  %v10220_v34 = vld [vmem:[#allocation10 + $0x2ec] ss:$16 sps:$4 sm:$0xff]   ;;  %v10215_v35 = vld [vmem:[#allocation10 + $0x2e0] ss:$16 sps:$4 sm:$0xff]  }
 0x22a   :  { %4954 = vmatpush1.bf16.msra.mxu0 %v10129_v36  ;;  %5323 = vmatpush1.bf16.msra.mxu1 %v10132_v37  ;;  %v10218_v36 = vld [vmem:[#allocation10 + $0x2e8] ss:$16 sps:$4 sm:$0xff]   ;;  %v10223_v37 = vld [vmem:[#allocation10 + $0x304] ss:$16 sps:$4 sm:$0xff]  }
 0x22b   :  { %4955 = vmatprep.subr.bf16.mxu0 %v10137_v39  ;;  %5324 = vmatprep.subr.bf16.mxu1 %v10140_v40  ;;  %v10226_v39 = vld [vmem:[#allocation10 + $0x30c] ss:$16 sps:$4 sm:$0xff]   ;;  %v10221_v40 = vld [vmem:[#allocation10 + $0x300] ss:$16 sps:$4 sm:$0xff]  }
 0x22e   :  { %4956 = vmatpush1.bf16.msra.mxu0 %v10135_v41  ;;  %5325 = vmatpush1.bf16.msra.mxu1 %v10138_v42  ;;  %v10224_v41 = vld [vmem:[#allocation10 + $0x308] ss:$16 sps:$4 sm:$0xff]   ;;  %v10229_v42 = vld [vmem:[#allocation10 + $0x324] ss:$16 sps:$4 sm:$0xff]  }
 0x22f   :  { %4957 = vmatprep.subr.bf16.mxu0 %v10143_v44  ;;  %5326 = vmatprep.subr.bf16.mxu1 %v10146_v45  ;;  %v10232_v44 = vld [vmem:[#allocation10 + $0x32c] ss:$16 sps:$4 sm:$0xff]   ;;  %v10227_v45 = vld [vmem:[#allocation10 + $0x320] ss:$16 sps:$4 sm:$0xff]  }
 0x232   :  { %4958 = vmatpush1.bf16.msra.mxu0 %v10141_v46  ;;  %5327 = vmatpush1.bf16.msra.mxu1 %v10144_v47  ;;  %v10230_v46 = vld [vmem:[#allocation10 + $0x328] ss:$16 sps:$4 sm:$0xff]   ;;  %v10235_v47 = vld [vmem:[#allocation10 + $0x344] ss:$16 sps:$4 sm:$0xff]  }
 0x233   :  { %4959 = vmatprep.subr.bf16.mxu0 %v10149_v24  ;;  %5328 = vmatprep.subr.bf16.mxu1 %v10152_v48  ;;  %v10238_v24 = vld [vmem:[#allocation10 + $0x34c] ss:$16 sps:$4 sm:$0xff]   ;;  %v10233_v48 = vld [vmem:[#allocation10 + $0x340] ss:$16 sps:$4 sm:$0xff]  }
 0x236   :  { %4960 = vmatpush1.bf16.msra.mxu0 %v10147_v49  ;;  %5329 = vmatpush1.bf16.msra.mxu1 %v10150_v50  ;;  %v10236_v49 = vld [vmem:[#allocation10 + $0x348] ss:$16 sps:$4 sm:$0xff]   ;;  %v10241_v50 = vld [vmem:[#allocation10 + $0x364] ss:$16 sps:$4 sm:$0xff]  }
 0x237   :  { %4961 = vmatprep.subr.bf16.mxu0 %v10155_v51  ;;  %5330 = vmatprep.subr.bf16.mxu1 %v10158_v52  ;;  %v10244_v51 = vld [vmem:[#allocation10 + $0x36c] ss:$16 sps:$4 sm:$0xff]   ;;  %v10239_v52 = vld [vmem:[#allocation10 + $0x360] ss:$16 sps:$4 sm:$0xff]  }
 0x23a   :  { %4962 = vmatpush1.bf16.msra.mxu0 %v10153_v53  ;;  %5331 = vmatpush1.bf16.msra.mxu1 %v10156_v26  ;;  %v10242_v53 = vld [vmem:[#allocation10 + $0x368] ss:$16 sps:$4 sm:$0xff]   ;;  %v10247_v26 = vld [vmem:[#allocation10 + $0x384] ss:$16 sps:$4 sm:$0xff]  }
 0x23b   :  { %4963 = vmatprep.subr.bf16.mxu0 %v10161_v54  ;;  %5332 = vmatprep.subr.bf16.mxu1 %v10164_v55  ;;  %v10250_v54 = vld [vmem:[#allocation10 + $0x38c] ss:$16 sps:$4 sm:$0xff]   ;;  %v10245_v55 = vld [vmem:[#allocation10 + $0x380] ss:$16 sps:$4 sm:$0xff]  }
 0x23e   :  { %4964 = vmatpush1.bf16.msra.mxu0 %v10159_v56  ;;  %5333 = vmatpush1.bf16.msra.mxu1 %v10162_v57  ;;  %v10248_v56 = vld [vmem:[#allocation10 + $0x388] ss:$16 sps:$4 sm:$0xff]   ;;  %v10253_v57 = vld [vmem:[#allocation10 + $0x3a4] ss:$16 sps:$4 sm:$0xff]  }
 0x23f   :  { %4965 = vmatprep.subr.bf16.mxu0 %v10167_v58  ;;  %5334 = vmatprep.subr.bf16.mxu1 %v10170_v59  ;;  %v10256_v58 = vld [vmem:[#allocation10 + $0x3ac] ss:$16 sps:$4 sm:$0xff]   ;;  %v10251_v59 = vld [vmem:[#allocation10 + $0x3a0] ss:$16 sps:$4 sm:$0xff]  }
 0x242   :  { %4966 = vmatpush1.bf16.msra.mxu0 %v10165_v60  ;;  %5335 = vmatpush1.bf16.msra.mxu1 %v10168_v61  ;;  %v10254_v60 = vld [vmem:[#allocation10 + $0x3a8] ss:$16 sps:$4 sm:$0xff]   ;;  %v10259_v61 = vld [vmem:[#allocation10 + $0x3c4] ss:$16 sps:$4 sm:$0xff]  }
 0x243   :  { %4976 = vmatprep.subr.bf16.mxu0 %v10175_v62  ;;  %5345 = vmatprep.subr.bf16.mxu1 %v10178_v63  ;;  %v10262_v62 = vld [vmem:[#allocation10 + $0x3cc] ss:$16 sps:$4 sm:$0xff]   ;;  %v10257_v63 = vld [vmem:[#allocation10 + $0x3c0] ss:$16 sps:$4 sm:$0xff]  }
 0x245   :  { %4968 = vmatmul.mubr.bf16.vlgmr.msra.gmra.mrb[8].mxu0 %v8771_v1  ;;  %5337 = vmatmul.mubr.bf16.vlgmr.msra.gmra.mrb[8].mxu1 %v8771_v1  ;;  %v10260_v1 = vld [vmem:[#allocation10 + $0x3c8] ss:$16 sps:$4 sm:$0xff]  }
 0x246   :  { %4977 = vmatpush1.bf16.msra.mxu0 %v10173_v2  ;;  %5346 = vmatpush1.bf16.msra.mxu1 %v10176_v3  ;;  %v10265_v2 = vld [vmem:[#allocation10 + $0x3e4] ss:$16 sps:$4 sm:$0xff]   ;;  %v10268_v3 = vld [vmem:[#allocation10 + $0x3ec] ss:$16 sps:$4 sm:$0xff]  }
 0x247   :  { %4978 = vmatprep.subr.bf16.mxu0 %v10181_v4  ;;  %5347 = vmatprep.subr.bf16.mxu1 %v10184_v5  ;;  %v10263_v4 = vld [vmem:[#allocation10 + $0x3e0] ss:$16 sps:$4 sm:$0xff]   ;;  %v10266_v5 = vld [vmem:[#allocation10 + $0x3e8] ss:$16 sps:$4 sm:$0xff]  }
 0x248   :  { %5008 = vmatprep.mubr.bf16.mxu0 %v8774_v6  ;;  %5377 = vmatprep.mubr.bf16.mxu1 %v8774_v6  ;;  %v10273_v6 = vld [vmem:[#allocation10 + $0x404] ss:$16 sps:$4 sm:$0xff]  }
 0x24a   :  { %4979 = vmatpush1.bf16.msra.mxu0 %v10179_v7  ;;  %5348 = vmatpush1.bf16.msra.mxu1 %v10182_v8  ;;  %v10276_v7 = vld [vmem:[#allocation10 + $0x40c] ss:$16 sps:$4 sm:$0xff]  }
 0x24b   :  { %4980 = vmatprep.subr.bf16.mxu0 %v10187_v43  ;;  %5349 = vmatprep.subr.bf16.mxu1 %v10190_v9  ;;  %v12154_v8 = vld [vmem:[%s12324_s1 + $0x10] sm:$0xff]  ;;  %v8773_v43 = vcombine.low %v12145_v0, %v12145_v0  ;;  %v10271_v9 = vld [vmem:[#allocation10 + $0x400] ss:$16 sps:$4 sm:$0xff]  }
 0x24c   :  { %v10285_v0 = vld [vmem:[#allocation10 + $0x444] ss:$16 sps:$4 sm:$0xff]  }
 0x24e   :  { %4981 = vmatpush1.bf16.msra.mxu0 %v10185_v10  ;;  %5350 = vmatpush1.bf16.msra.mxu1 %v10188_v11  ;;  %v10274_v10 = vld [vmem:[#allocation10 + $0x408] ss:$16 sps:$4 sm:$0xff]   ;;  %v10279_v11 = vld [vmem:[#allocation10 + $0x424] ss:$16 sps:$4 sm:$0xff]  }
 0x24f   :  { %4982 = vmatprep.subr.bf16.mxu0 %v10193_v12  ;;  %5351 = vmatprep.subr.bf16.mxu1 %v10196_v13  ;;  %v10282_v12 = vld [vmem:[#allocation10 + $0x42c] ss:$16 sps:$4 sm:$0xff]   ;;  %v8776_v13 = vcombine.high %v12154_v8, %v12154_v8 }
 0x252   :  { %4983 = vmatpush1.bf16.msra.mxu0 %v10191_v14  ;;  %5352 = vmatpush1.bf16.msra.mxu1 %v10194_v15  ;;  %v10277_v14 = vld [vmem:[#allocation10 + $0x420] ss:$16 sps:$4 sm:$0xff]   ;;  %v10280_v15 = vld [vmem:[#allocation10 + $0x428] ss:$16 sps:$4 sm:$0xff]  }
 0x253   :  { %4984 = vmatprep.subr.bf16.mxu0 %v10199_v16  ;;  %5353 = vmatprep.subr.bf16.mxu1 %v10202_v17  ;;  %v10288_v16 = vld [vmem:[#allocation10 + $0x44c] ss:$16 sps:$4 sm:$0xff]   ;;  %v10283_v17 = vld [vmem:[#allocation10 + $0x440] ss:$16 sps:$4 sm:$0xff]  }
 0x256   :  { %4985 = vmatpush1.bf16.msra.mxu0 %v10197_v18  ;;  %5354 = vmatpush1.bf16.msra.mxu1 %v10200_v19  ;;  %v10286_v18 = vld [vmem:[#allocation10 + $0x448] ss:$16 sps:$4 sm:$0xff]   ;;  %v10291_v19 = vld [vmem:[#allocation10 + $0x464] ss:$16 sps:$4 sm:$0xff]  }
 0x257   :  { %4986 = vmatprep.subr.bf16.mxu0 %v10205_v20  ;;  %5355 = vmatprep.subr.bf16.mxu1 %v10208_v21  ;;  %v10294_v20 = vld [vmem:[#allocation10 + $0x46c] ss:$16 sps:$4 sm:$0xff]   ;;  %v10289_v21 = vld [vmem:[#allocation10 + $0x460] ss:$16 sps:$4 sm:$0xff]  }
 0x25a   :  { %4987 = vmatpush1.bf16.msra.mxu0 %v10203_v22  ;;  %5356 = vmatpush1.bf16.msra.mxu1 %v10206_v23  ;;  %v10292_v22 = vld [vmem:[#allocation10 + $0x468] ss:$16 sps:$4 sm:$0xff]   ;;  %v10297_v23 = vld [vmem:[#allocation10 + $0x484] ss:$16 sps:$4 sm:$0xff]  }
 0x25b   :  { %4988 = vmatprep.subr.bf16.mxu0 %v10211_v28  ;;  %5357 = vmatprep.subr.bf16.mxu1 %v10214_v29  ;;  %v10300_v28 = vld [vmem:[#allocation10 + $0x48c] ss:$16 sps:$4 sm:$0xff]   ;;  %v10295_v29 = vld [vmem:[#allocation10 + $0x480] ss:$16 sps:$4 sm:$0xff]  }
 0x25e   :  { %4989 = vmatpush1.bf16.msra.mxu0 %v10209_v30  ;;  %5358 = vmatpush1.bf16.msra.mxu1 %v10212_v32  ;;  %v10298_v30 = vld [vmem:[#allocation10 + $0x488] ss:$16 sps:$4 sm:$0xff]   ;;  %v10303_v32 = vld [vmem:[#allocation10 + $0x4a4] ss:$16 sps:$4 sm:$0xff]  }
 0x25f   :  { %4990 = vmatprep.subr.bf16.mxu0 %v10217_v33  ;;  %5359 = vmatprep.subr.bf16.mxu1 %v10220_v34  ;;  %v10306_v33 = vld [vmem:[#allocation10 + $0x4ac] ss:$16 sps:$4 sm:$0xff]   ;;  %v10301_v34 = vld [vmem:[#allocation10 + $0x4a0] ss:$16 sps:$4 sm:$0xff]  }
 0x262   :  { %4991 = vmatpush1.bf16.msra.mxu0 %v10215_v35  ;;  %5360 = vmatpush1.bf16.msra.mxu1 %v10218_v36  ;;  %v10304_v35 = vld [vmem:[#allocation10 + $0x4a8] ss:$16 sps:$4 sm:$0xff]   ;;  %v10309_v36 = vld [vmem:[#allocation10 + $0x4c4] ss:$16 sps:$4 sm:$0xff]  }
 0x263   :  { %4992 = vmatprep.subr.bf16.mxu0 %v10223_v37  ;;  %5361 = vmatprep.subr.bf16.mxu1 %v10226_v39  ;;  %v10312_v37 = vld [vmem:[#allocation10 + $0x4cc] ss:$16 sps:$4 sm:$0xff]   ;;  %v10307_v39 = vld [vmem:[#allocation10 + $0x4c0] ss:$16 sps:$4 sm:$0xff]  }
 0x266   :  { %4993 = vmatpush1.bf16.msra.mxu0 %v10221_v40  ;;  %5362 = vmatpush1.bf16.msra.mxu1 %v10224_v41  ;;  %v10310_v40 = vld [vmem:[#allocation10 + $0x4c8] ss:$16 sps:$4 sm:$0xff]   ;;  %v10315_v41 = vld [vmem:[#allocation10 + $0x4e4] ss:$16 sps:$4 sm:$0xff]  }
 0x267   :  { %4994 = vmatprep.subr.bf16.mxu0 %v10229_v42  ;;  %5363 = vmatprep.subr.bf16.mxu1 %v10232_v44  ;;  %v10318_v42 = vld [vmem:[#allocation10 + $0x4ec] ss:$16 sps:$4 sm:$0xff]   ;;  %v10313_v44 = vld [vmem:[#allocation10 + $0x4e0] ss:$16 sps:$4 sm:$0xff]  }
 0x26a   :  { %4995 = vmatpush1.bf16.msra.mxu0 %v10227_v45  ;;  %5364 = vmatpush1.bf16.msra.mxu1 %v10230_v46  ;;  %v10316_v45 = vld [vmem:[#allocation10 + $0x4e8] ss:$16 sps:$4 sm:$0xff]   ;;  %v10321_v46 = vld [vmem:[#allocation10 + $0x504] ss:$16 sps:$4 sm:$0xff]  }
 0x26b   :  { %4996 = vmatprep.subr.bf16.mxu0 %v10235_v47  ;;  %5365 = vmatprep.subr.bf16.mxu1 %v10238_v24  ;;  %v10324_v47 = vld [vmem:[#allocation10 + $0x50c] ss:$16 sps:$4 sm:$0xff]   ;;  %v10319_v24 = vld [vmem:[#allocation10 + $0x500] ss:$16 sps:$4 sm:$0xff]  }
 0x26e   :  { %4997 = vmatpush1.bf16.msra.mxu0 %v10233_v48  ;;  %5366 = vmatpush1.bf16.msra.mxu1 %v10236_v49  ;;  %v10322_v48 = vld [vmem:[#allocation10 + $0x508] ss:$16 sps:$4 sm:$0xff]   ;;  %v10327_v49 = vld [vmem:[#allocation10 + $0x524] ss:$16 sps:$4 sm:$0xff]  }
 0x26f   :  { %4998 = vmatprep.subr.bf16.mxu0 %v10241_v50  ;;  %5367 = vmatprep.subr.bf16.mxu1 %v10244_v51  ;;  %v10330_v50 = vld [vmem:[#allocation10 + $0x52c] ss:$16 sps:$4 sm:$0xff]   ;;  %v10325_v51 = vld [vmem:[#allocation10 + $0x520] ss:$16 sps:$4 sm:$0xff]  }
 0x272   :  { %4999 = vmatpush1.bf16.msra.mxu0 %v10239_v52  ;;  %5368 = vmatpush1.bf16.msra.mxu1 %v10242_v53  ;;  %v10328_v52 = vld [vmem:[#allocation10 + $0x528] ss:$16 sps:$4 sm:$0xff]   ;;  %v10333_v53 = vld [vmem:[#allocation10 + $0x544] ss:$16 sps:$4 sm:$0xff]  }
 0x273   :  { %5000 = vmatprep.subr.bf16.mxu0 %v10247_v26  ;;  %5369 = vmatprep.subr.bf16.mxu1 %v10250_v54  ;;  %v10336_v26 = vld [vmem:[#allocation10 + $0x54c] ss:$16 sps:$4 sm:$0xff]   ;;  %v10331_v54 = vld [vmem:[#allocation10 + $0x540] ss:$16 sps:$4 sm:$0xff]  }
 0x276   :  { %5001 = vmatpush1.bf16.msra.mxu0 %v10245_v55  ;;  %5370 = vmatpush1.bf16.msra.mxu1 %v10248_v56  ;;  %v10334_v55 = vld [vmem:[#allocation10 + $0x548] ss:$16 sps:$4 sm:$0xff]   ;;  %v10339_v56 = vld [vmem:[#allocation10 + $0x564] ss:$16 sps:$4 sm:$0xff]  }
 0x277   :  { %5002 = vmatprep.subr.bf16.mxu0 %v10253_v57  ;;  %5371 = vmatprep.subr.bf16.mxu1 %v10256_v58  ;;  %v10342_v57 = vld [vmem:[#allocation10 + $0x56c] ss:$16 sps:$4 sm:$0xff]   ;;  %v10337_v58 = vld [vmem:[#allocation10 + $0x560] ss:$16 sps:$4 sm:$0xff]  }
 0x27a   :  { %5003 = vmatpush1.bf16.msra.mxu0 %v10251_v59  ;;  %5372 = vmatpush1.bf16.msra.mxu1 %v10254_v60  ;;  %v10340_v59 = vld [vmem:[#allocation10 + $0x568] ss:$16 sps:$4 sm:$0xff]   ;;  %v10345_v60 = vld [vmem:[#allocation10 + $0x584] ss:$16 sps:$4 sm:$0xff]  }
 0x27b   :  { %5004 = vmatprep.subr.bf16.mxu0 %v10259_v61  ;;  %5373 = vmatprep.subr.bf16.mxu1 %v10262_v62  ;;  %v10348_v61 = vld [vmem:[#allocation10 + $0x58c] ss:$16 sps:$4 sm:$0xff]   ;;  %v10343_v62 = vld [vmem:[#allocation10 + $0x580] ss:$16 sps:$4 sm:$0xff]  }
 0x27e   :  { %5005 = vmatpush1.bf16.msra.mxu0 %v10257_v63  ;;  %5374 = vmatpush1.bf16.msra.mxu1 %v10260_v1  ;;  %v10346_v63 = vld [vmem:[#allocation10 + $0x588] ss:$16 sps:$4 sm:$0xff]   ;;  %v10351_v1 = vld [vmem:[#allocation10 + $0x5a4] ss:$16 sps:$4 sm:$0xff]  }
 0x27f   :  { %5006 = vmatprep.subr.bf16.mxu0 %v10265_v2  ;;  %5375 = vmatprep.subr.bf16.mxu1 %v10268_v3  ;;  %v10354_v2 = vld [vmem:[#allocation10 + $0x5ac] ss:$16 sps:$4 sm:$0xff]   ;;  %v10349_v3 = vld [vmem:[#allocation10 + $0x5a0] ss:$16 sps:$4 sm:$0xff]  }
 0x282   :  { %5007 = vmatpush1.bf16.msra.mxu0 %v10263_v4  ;;  %5376 = vmatpush1.bf16.msra.mxu1 %v10266_v5  ;;  %v10352_v4 = vld [vmem:[#allocation10 + $0x5a8] ss:$16 sps:$4 sm:$0xff]   ;;  %v10357_v5 = vld [vmem:[#allocation10 + $0x5c4] ss:$16 sps:$4 sm:$0xff]  }
 0x283   :  { %5017 = vmatprep.subr.bf16.mxu0 %v10273_v6  ;;  %5386 = vmatprep.subr.bf16.mxu1 %v10276_v7  ;;  %v10360_v6 = vld [vmem:[#allocation10 + $0x5cc] ss:$16 sps:$4 sm:$0xff]   ;;  %v10355_v7 = vld [vmem:[#allocation10 + $0x5c0] ss:$16 sps:$4 sm:$0xff]  }
 0x285   :  { %5009 = vmatmul.mubr.bf16.vlgmr.msra.gmra.mrb[8].mxu0 %v8773_v43  ;;  %5378 = vmatmul.mubr.bf16.vlgmr.msra.gmra.mrb[8].mxu1 %v8773_v43  ;;  %v10358_v43 = vld [vmem:[#allocation10 + $0x5c8] ss:$16 sps:$4 sm:$0xff]  }
 0x286   :  { %5018 = vmatpush1.bf16.msra.mxu0 %v10271_v9  ;;  %5387 = vmatpush1.bf16.msra.mxu1 %v10274_v10  ;;  %v10363_v9 = vld [vmem:[#allocation10 + $0x5e4] ss:$16 sps:$4 sm:$0xff]   ;;  %v10366_v10 = vld [vmem:[#allocation10 + $0x5ec] ss:$16 sps:$4 sm:$0xff]  }
 0x287   :  { %5019 = vmatprep.subr.bf16.mxu0 %v10279_v11  ;;  %5388 = vmatprep.subr.bf16.mxu1 %v10282_v12  ;;  %v10361_v11 = vld [vmem:[#allocation10 + $0x5e0] ss:$16 sps:$4 sm:$0xff]   ;;  %v10364_v12 = vld [vmem:[#allocation10 + $0x5e8] ss:$16 sps:$4 sm:$0xff]  }
 0x288   :  { %5049 = vmatprep.mubr.bf16.mxu0 %v8776_v13  ;;  %5418 = vmatprep.mubr.bf16.mxu1 %v8776_v13  ;;  %v10371_v13 = vld [vmem:[#allocation10 + $0x604] ss:$16 sps:$4 sm:$0xff]  }
 0x28a   :  { %5020 = vmatpush1.bf16.msra.mxu0 %v10277_v14  ;;  %5389 = vmatpush1.bf16.msra.mxu1 %v10280_v15  ;;  %v10374_v14 = vld [vmem:[#allocation10 + $0x60c] ss:$16 sps:$4 sm:$0xff]  }
 0x28b   :  { %5021 = vmatprep.subr.bf16.mxu0 %v10285_v0  ;;  %5390 = vmatprep.subr.bf16.mxu1 %v10288_v16  ;;  %v12163_v15 = vld [vmem:[%s12324_s1 + $0x18] sm:$0xff]  ;;  %v8775_v0 = vcombine.low %v12154_v8, %v12154_v8 }
 0x28c   :  { %v10369_v16 = vld [vmem:[#allocation10 + $0x600] ss:$16 sps:$4 sm:$0xff]   ;;  %v10383_v8 = vld [vmem:[#allocation10 + $0x644] ss:$16 sps:$4 sm:$0xff]  }
 0x28e   :  { %5022 = vmatpush1.bf16.msra.mxu0 %v10283_v17  ;;  %5391 = vmatpush1.bf16.msra.mxu1 %v10286_v18  ;;  %v10372_v17 = vld [vmem:[#allocation10 + $0x608] ss:$16 sps:$4 sm:$0xff]   ;;  %v10377_v18 = vld [vmem:[#allocation10 + $0x624] ss:$16 sps:$4 sm:$0xff]  }
 0x28f   :  { %5023 = vmatprep.subr.bf16.mxu0 %v10291_v19  ;;  %5392 = vmatprep.subr.bf16.mxu1 %v10294_v20  ;;  %v10380_v19 = vld [vmem:[#allocation10 + $0x62c] ss:$16 sps:$4 sm:$0xff]   ;;  %v8778_v20 = vcombine.high %v12163_v15, %v12163_v15 }
 0x292   :  { %5024 = vmatpush1.bf16.msra.mxu0 %v10289_v21  ;;  %5393 = vmatpush1.bf16.msra.mxu1 %v10292_v22  ;;  %v10375_v21 = vld [vmem:[#allocation10 + $0x620] ss:$16 sps:$4 sm:$0xff]   ;;  %v10378_v22 = vld [vmem:[#allocation10 + $0x628] ss:$16 sps:$4 sm:$0xff]  }
 0x293   :  { %5025 = vmatprep.subr.bf16.mxu0 %v10297_v23  ;;  %5394 = vmatprep.subr.bf16.mxu1 %v10300_v28  ;;  %v10386_v23 = vld [vmem:[#allocation10 + $0x64c] ss:$16 sps:$4 sm:$0xff]   ;;  %v10381_v28 = vld [vmem:[#allocation10 + $0x640] ss:$16 sps:$4 sm:$0xff]  }
 0x296   :  { %5026 = vmatpush1.bf16.msra.mxu0 %v10295_v29  ;;  %5395 = vmatpush1.bf16.msra.mxu1 %v10298_v30  ;;  %v10384_v29 = vld [vmem:[#allocation10 + $0x648] ss:$16 sps:$4 sm:$0xff]   ;;  %v10389_v30 = vld [vmem:[#allocation10 + $0x664] ss:$16 sps:$4 sm:$0xff]  }
 0x297   :  { %5027 = vmatprep.subr.bf16.mxu0 %v10303_v32  ;;  %5396 = vmatprep.subr.bf16.mxu1 %v10306_v33  ;;  %v10392_v32 = vld [vmem:[#allocation10 + $0x66c] ss:$16 sps:$4 sm:$0xff]   ;;  %v10387_v33 = vld [vmem:[#allocation10 + $0x660] ss:$16 sps:$4 sm:$0xff]  }
 0x29a   :  { %5028 = vmatpush1.bf16.msra.mxu0 %v10301_v34  ;;  %5397 = vmatpush1.bf16.msra.mxu1 %v10304_v35  ;;  %v10390_v34 = vld [vmem:[#allocation10 + $0x668] ss:$16 sps:$4 sm:$0xff]   ;;  %v10395_v35 = vld [vmem:[#allocation10 + $0x684] ss:$16 sps:$4 sm:$0xff]  }
 0x29b   :  { %5029 = vmatprep.subr.bf16.mxu0 %v10309_v36  ;;  %5398 = vmatprep.subr.bf16.mxu1 %v10312_v37  ;;  %v10398_v36 = vld [vmem:[#allocation10 + $0x68c] ss:$16 sps:$4 sm:$0xff]   ;;  %v10393_v37 = vld [vmem:[#allocation10 + $0x680] ss:$16 sps:$4 sm:$0xff]  }
 0x29e   :  { %5030 = vmatpush1.bf16.msra.mxu0 %v10307_v39  ;;  %5399 = vmatpush1.bf16.msra.mxu1 %v10310_v40  ;;  %v10396_v39 = vld [vmem:[#allocation10 + $0x688] ss:$16 sps:$4 sm:$0xff]   ;;  %v555_v40 = vld [vmem:[#allocation8] sm:$0xf] }
 0x29f   :  { %5031 = vmatprep.subr.bf16.mxu0 %v10315_v41  ;;  %5400 = vmatprep.subr.bf16.mxu1 %v10318_v42  ;;  %v10401_v41 = vld [vmem:[#allocation10 + $0x6a4] ss:$16 sps:$4 sm:$0xff]   ;;  %v10404_v42 = vld [vmem:[#allocation10 + $0x6ac] ss:$16 sps:$4 sm:$0xff]  }
 0x2a2   :  { %5032 = vmatpush1.bf16.msra.mxu0 %v10313_v44  ;;  %5401 = vmatpush1.bf16.msra.mxu1 %v10316_v45  ;;  %v568_v44 = vrot.slane %v555_v40, %v12130_v38  ;;  %v10399_v45 = vld [vmem:[#allocation10 + $0x6a0] ss:$16 sps:$4 sm:$0xff]  }
 0x2a3   :  { %5033 = vmatprep.subr.bf16.mxu0 %v10321_v46  ;;  %5402 = vmatprep.subr.bf16.mxu1 %v10324_v47  ;;  %v10402_v46 = vld [vmem:[#allocation10 + $0x6a8] ss:$16 sps:$4 sm:$0xff]   ;;  %v10407_v47 = vld [vmem:[#allocation10 + $0x6c4] ss:$16 sps:$4 sm:$0xff]   ;;  %v10467_v40 = vld [vmem:[#allocation10 + $0x800] ss:$16 sps:$4 sm:$0xff]  }
 0x2a6   :  { %5034 = vmatpush1.bf16.msra.mxu0 %v10319_v24  ;;  %5403 = vmatpush1.bf16.msra.mxu1 %v10322_v48  ;;  %v10410_v24 = vld [vmem:[#allocation10 + $0x6cc] ss:$16 sps:$4 sm:$0xff]  }
 0x2a7   :  { %5035 = vmatprep.subr.bf16.mxu0 %v10327_v49  ;;  %5404 = vmatprep.subr.bf16.mxu1 %v10330_v50 }
 0x2aa   :  { %5036 = vmatpush1.bf16.msra.mxu0 %v10325_v51  ;;  %5405 = vmatpush1.bf16.msra.mxu1 %v10328_v52 }
 0x2ab   :  { %5037 = vmatprep.subr.bf16.mxu0 %v10333_v53  ;;  %5406 = vmatprep.subr.bf16.mxu1 %v10336_v26 }
 0x2ae   :  { %5038 = vmatpush1.bf16.msra.mxu0 %v10331_v54  ;;  %5407 = vmatpush1.bf16.msra.mxu1 %v10334_v55  ;;  %v10405_v54 = vld [vmem:[#allocation10 + $0x6c0] ss:$16 sps:$4 sm:$0xff]   ;;  %v10408_v55 = vld [vmem:[#allocation10 + $0x6c8] ss:$16 sps:$4 sm:$0xff]  }
 0x2af   :  { %5039 = vmatprep.subr.bf16.mxu0 %v10339_v56  ;;  %5408 = vmatprep.subr.bf16.mxu1 %v10342_v57 }
 0x2b2   :  { %5040 = vmatpush1.bf16.msra.mxu0 %v10337_v58  ;;  %5409 = vmatpush1.bf16.msra.mxu1 %v10340_v59  ;;  %v10413_v58 = vld [vmem:[#allocation10 + $0x6e4] ss:$16 sps:$4 sm:$0xff]   ;;  %v10416_v59 = vld [vmem:[#allocation10 + $0x6ec] ss:$16 sps:$4 sm:$0xff]  }
 0x2b3   :  { %5041 = vmatprep.subr.bf16.mxu0 %v10345_v60  ;;  %5410 = vmatprep.subr.bf16.mxu1 %v10348_v61  ;;  %v10411_v60 = vld [vmem:[#allocation10 + $0x6e0] ss:$16 sps:$4 sm:$0xff]   ;;  %v10414_v61 = vld [vmem:[#allocation10 + $0x6e8] ss:$16 sps:$4 sm:$0xff]  }
 0x2b6   :  { %5042 = vmatpush1.bf16.msra.mxu0 %v10343_v62  ;;  %5411 = vmatpush1.bf16.msra.mxu1 %v10346_v63  ;;  %v10419_v62 = vld [vmem:[#allocation10 + $0x704] ss:$16 sps:$4 sm:$0xff]   ;;  %v10422_v63 = vld [vmem:[#allocation10 + $0x70c] ss:$16 sps:$4 sm:$0xff]  }
 0x2b7   :  { %5043 = vmatprep.subr.bf16.mxu0 %v10351_v1  ;;  %5412 = vmatprep.subr.bf16.mxu1 %v10354_v2  ;;  %v10417_v1 = vld [vmem:[#allocation10 + $0x700] ss:$16 sps:$4 sm:$0xff]   ;;  %v10420_v2 = vld [vmem:[#allocation10 + $0x708] ss:$16 sps:$4 sm:$0xff]  }
 0x2ba   :  { %5044 = vmatpush1.bf16.msra.mxu0 %v10349_v3  ;;  %5413 = vmatpush1.bf16.msra.mxu1 %v10352_v4  ;;  %v10425_v3 = vld [vmem:[#allocation10 + $0x724] ss:$16 sps:$4 sm:$0xff]   ;;  %v10428_v4 = vld [vmem:[#allocation10 + $0x72c] ss:$16 sps:$4 sm:$0xff]  }
 0x2bb   :  { %5045 = vmatprep.subr.bf16.mxu0 %v10357_v5  ;;  %5414 = vmatprep.subr.bf16.mxu1 %v10360_v6  ;;  %v10423_v5 = vld [vmem:[#allocation10 + $0x720] ss:$16 sps:$4 sm:$0xff]   ;;  %v10426_v6 = vld [vmem:[#allocation10 + $0x728] ss:$16 sps:$4 sm:$0xff]  }
 0x2be   :  { %5046 = vmatpush1.bf16.msra.mxu0 %v10355_v7  ;;  %5415 = vmatpush1.bf16.msra.mxu1 %v10358_v43  ;;  %v10431_v7 = vld [vmem:[#allocation10 + $0x744] ss:$16 sps:$4 sm:$0xff]   ;;  %v10434_v43 = vld [vmem:[#allocation10 + $0x74c] ss:$16 sps:$4 sm:$0xff]  }
 0x2bf   :  { %5047 = vmatprep.subr.bf16.mxu0 %v10363_v9  ;;  %5416 = vmatprep.subr.bf16.mxu1 %v10366_v10  ;;  %v10429_v9 = vld [vmem:[#allocation10 + $0x740] ss:$16 sps:$4 sm:$0xff]   ;;  %v10432_v10 = vld [vmem:[#allocation10 + $0x748] ss:$16 sps:$4 sm:$0xff]  }
 0x2c2   :  { %5048 = vmatpush1.bf16.msra.mxu0 %v10361_v11  ;;  %5417 = vmatpush1.bf16.msra.mxu1 %v10364_v12  ;;  %v10437_v11 = vld [vmem:[#allocation10 + $0x764] ss:$16 sps:$4 sm:$0xff]   ;;  %v10440_v12 = vld [vmem:[#allocation10 + $0x76c] ss:$16 sps:$4 sm:$0xff]  }
 0x2c3   :  { %5058 = vmatprep.subr.bf16.mxu0 %v10371_v13  ;;  %5427 = vmatprep.subr.bf16.mxu1 %v10374_v14  ;;  %v10435_v13 = vld [vmem:[#allocation10 + $0x760] ss:$16 sps:$4 sm:$0xff]   ;;  %v10438_v14 = vld [vmem:[#allocation10 + $0x768] ss:$16 sps:$4 sm:$0xff]  }
 0x2c5   :  { %5050 = vmatmul.mubr.bf16.vlgmr.msra.gmra.mrb[8].mxu0 %v8775_v0  ;;  %5419 = vmatmul.mubr.bf16.vlgmr.msra.gmra.mrb[8].mxu1 %v8775_v0  ;;  %v10443_v0 = vld [vmem:[#allocation10 + $0x784] ss:$16 sps:$4 sm:$0xff]  }
 0x2c6   :  { %5059 = vmatpush1.bf16.msra.mxu0 %v10369_v16  ;;  %5428 = vmatpush1.bf16.msra.mxu1 %v10372_v17  ;;  %v10446_v16 = vld [vmem:[#allocation10 + $0x78c] ss:$16 sps:$4 sm:$0xff]   ;;  %v10441_v17 = vld [vmem:[#allocation10 + $0x780] ss:$16 sps:$4 sm:$0xff]  }
 0x2c7   :  { %5060 = vmatprep.subr.bf16.mxu0 %v10377_v18  ;;  %5429 = vmatprep.subr.bf16.mxu1 %v10380_v19  ;;  %v10444_v18 = vld [vmem:[#allocation10 + $0x788] ss:$16 sps:$4 sm:$0xff]   ;;  %v10449_v19 = vld [vmem:[#allocation10 + $0x7a4] ss:$16 sps:$4 sm:$0xff]  }
 0x2c8   :  { %5090 = vmatprep.mubr.bf16.mxu0 %v8778_v20  ;;  %5459 = vmatprep.mubr.bf16.mxu1 %v8778_v20  ;;  %v10452_v20 = vld [vmem:[#allocation10 + $0x7ac] ss:$16 sps:$4 sm:$0xff]  }
 0x2ca   :  { %5061 = vmatpush1.bf16.msra.mxu0 %v10375_v21  ;;  %5430 = vmatpush1.bf16.msra.mxu1 %v10378_v22  ;;  %v10447_v21 = vld [vmem:[#allocation10 + $0x7a0] ss:$16 sps:$4 sm:$0xff]   ;;  %v10450_v22 = vld [vmem:[#allocation10 + $0x7a8] ss:$16 sps:$4 sm:$0xff]  }
 0x2cb   :  { %5062 = vmatprep.subr.bf16.mxu0 %v10383_v8  ;;  %5431 = vmatprep.subr.bf16.mxu1 %v10386_v23  ;;  %v10455_v8 = vld [vmem:[#allocation10 + $0x7c4] ss:$16 sps:$4 sm:$0xff]   ;;  %v10458_v23 = vld [vmem:[#allocation10 + $0x7cc] ss:$16 sps:$4 sm:$0xff]  }
 0x2ce   :  { %5063 = vmatpush1.bf16.msra.mxu0 %v10381_v28  ;;  %5432 = vmatpush1.bf16.msra.mxu1 %v10384_v29  ;;  %v10453_v28 = vld [vmem:[#allocation10 + $0x7c0] ss:$16 sps:$4 sm:$0xff]   ;;  %v10456_v29 = vld [vmem:[#allocation10 + $0x7c8] ss:$16 sps:$4 sm:$0xff]  }
 0x2cf   :  { %5064 = vmatprep.subr.bf16.mxu0 %v10389_v30  ;;  %5433 = vmatprep.subr.bf16.mxu1 %v10392_v32  ;;  %v10461_v30 = vld [vmem:[#allocation10 + $0x7e4] ss:$16 sps:$4 sm:$0xff]   ;;  %v10464_v32 = vld [vmem:[#allocation10 + $0x7ec] ss:$16 sps:$4 sm:$0xff]  }
 0x2d2   :  { %5065 = vmatpush1.bf16.msra.mxu0 %v10387_v33  ;;  %5434 = vmatpush1.bf16.msra.mxu1 %v10390_v34  ;;  %v10459_v33 = vld [vmem:[#allocation10 + $0x7e0] ss:$16 sps:$4 sm:$0xff]   ;;  %v10462_v34 = vld [vmem:[#allocation10 + $0x7e8] ss:$16 sps:$4 sm:$0xff]  }
 0x2d3   :  { %5066 = vmatprep.subr.bf16.mxu0 %v10395_v35  ;;  %5435 = vmatprep.subr.bf16.mxu1 %v10398_v36  ;;  %v10469_v35 = vld [vmem:[#allocation10 + $0x804] ss:$16 sps:$4 sm:$0xff]   ;;  %v10472_v36 = vld [vmem:[#allocation10 + $0x80c] ss:$16 sps:$4 sm:$0xff]  }
 0x2d6   :  { %5067 = vmatpush1.bf16.msra.mxu0 %v10393_v37  ;;  %5436 = vmatpush1.bf16.msra.mxu1 %v10396_v39  ;;  %v8777_v37 = vcombine.low %v12163_v15, %v12163_v15  ;;  %v12183_v39 = vld [vmem:[%s12324_s1 + $0x20] sm:$0xff]  ;;  %v10473_v15 = vld [vmem:[#allocation10 + $0x820] ss:$16 sps:$4 sm:$0xff]  }
 0x2d7   :  { %5068 = vmatprep.subr.bf16.mxu0 %v10401_v41  ;;  %5437 = vmatprep.subr.bf16.mxu1 %v10404_v42  ;;  %v10470_v41 = vld [vmem:[#allocation10 + $0x808] ss:$16 sps:$4 sm:$0xff]   ;;  %v10475_v42 = vld [vmem:[#allocation10 + $0x824] ss:$16 sps:$4 sm:$0xff]  }
 0x2d8   :  { %v12170_v48 = vpop.f32.mrb[4].mxu0  ;;  %v1374_v49 = vpop.f32.mrb[4].mxu1 }
 0x2d9   :  { %v12172_v50 = vadd.f32 %v1374_v49, %v568_v44  ;;  %v12174_v51 = vpop.f32.mrb[5].mxu0  ;;  %v12176_v52 = vpop.f32.mrb[5].mxu1  ;;  %v10478_v44 = vld [vmem:[#allocation10 + $0x82c] ss:$16 sps:$4 sm:$0xff]   ;;  %v10479_v49 = vld [vmem:[#allocation10 + $0x840] ss:$16 sps:$4 sm:$0xff]  }
 0x2da   :  { %v1296_v53 = vpop.f32.mrb[6].mxu0  ;;  %v1378_v26 = vpop.f32.mrb[6].mxu1  ;;  %5069 = vmatpush1.bf16.msra.mxu0 %v10399_v45  ;;  %5438 = vmatpush1.bf16.msra.mxu1 %v10402_v46  ;;  %v8780_v45 = vcombine.high %v12183_v39, %v12183_v39  ;;  %v10476_v46 = vld [vmem:[#allocation10 + $0x828] ss:$16 sps:$4 sm:$0xff]  }
 0x2db   :  { %v1297_v56 = vpop.f32.mrb[7].mxu0  ;;  %v1379_v57 = vpop.f32.mrb[7].mxu1  ;;  %5070 = vmatprep.subr.bf16.mxu0 %v10407_v47  ;;  %5439 = vmatprep.subr.bf16.mxu1 %v10410_v24  ;;  %v10481_v47 = vld [vmem:[#allocation10 + $0x844] ss:$16 sps:$4 sm:$0xff]   ;;  %v10484_v24 = vld [vmem:[#allocation10 + $0x84c] ss:$16 sps:$4 sm:$0xff]  }
 0x2dc   :  { %v10482_v53 = vld [vmem:[#allocation10 + $0x848] ss:$16 sps:$4 sm:$0xff]   ;;  %v10487_v26 = vld [vmem:[#allocation10 + $0x864] ss:$16 sps:$4 sm:$0xff]  }
 0x2dd   :  { %v10488_v56 = vld [vmem:[#allocation10 + $0x868] ss:$16 sps:$4 sm:$0xff]   ;;  %v10493_v57 = vld [vmem:[#allocation10 + $0x884] ss:$16 sps:$4 sm:$0xff]  }
 0x2de   :  { %5071 = vmatpush1.bf16.msra.mxu0 %v10405_v54  ;;  %5440 = vmatpush1.bf16.msra.mxu1 %v10408_v55  ;;  %v10490_v54 = vld [vmem:[#allocation10 + $0x86c] ss:$16 sps:$4 sm:$0xff]   ;;  %v10485_v55 = vld [vmem:[#allocation10 + $0x860] ss:$16 sps:$4 sm:$0xff]  }
 0x2df   :  { %5072 = vmatprep.subr.bf16.mxu0 %v10413_v58  ;;  %5441 = vmatprep.subr.bf16.mxu1 %v10416_v59  ;;  %v10496_v58 = vld [vmem:[#allocation10 + $0x88c] ss:$16 sps:$4 sm:$0xff]   ;;  %v10491_v59 = vld [vmem:[#allocation10 + $0x880] ss:$16 sps:$4 sm:$0xff]  }
 0x2e2   :  { %5073 = vmatpush1.bf16.msra.mxu0 %v10411_v60  ;;  %5442 = vmatpush1.bf16.msra.mxu1 %v10414_v61  ;;  %v10494_v60 = vld [vmem:[#allocation10 + $0x888] ss:$16 sps:$4 sm:$0xff]   ;;  %v10499_v61 = vld [vmem:[#allocation10 + $0x8a4] ss:$16 sps:$4 sm:$0xff]  }
 0x2e3   :  { %5074 = vmatprep.subr.bf16.mxu0 %v10419_v62  ;;  %5443 = vmatprep.subr.bf16.mxu1 %v10422_v63  ;;  %v10502_v62 = vld [vmem:[#allocation10 + $0x8ac] ss:$16 sps:$4 sm:$0xff]   ;;  %v10497_v63 = vld [vmem:[#allocation10 + $0x8a0] ss:$16 sps:$4 sm:$0xff]  }
 0x2e6   :  { %5075 = vmatpush1.bf16.msra.mxu0 %v10417_v1  ;;  %5444 = vmatpush1.bf16.msra.mxu1 %v10420_v2  ;;  %v10500_v1 = vld [vmem:[#allocation10 + $0x8a8] ss:$16 sps:$4 sm:$0xff]   ;;  %v10505_v2 = vld [vmem:[#allocation10 + $0x8c4] ss:$16 sps:$4 sm:$0xff]  }
 0x2e7   :  { %5076 = vmatprep.subr.bf16.mxu0 %v10425_v3  ;;  %5445 = vmatprep.subr.bf16.mxu1 %v10428_v4  ;;  %v10508_v3 = vld [vmem:[#allocation10 + $0x8cc] ss:$16 sps:$4 sm:$0xff]   ;;  %v10503_v4 = vld [vmem:[#allocation10 + $0x8c0] ss:$16 sps:$4 sm:$0xff]  }
 0x2ea   :  { %5077 = vmatpush1.bf16.msra.mxu0 %v10423_v5  ;;  %5446 = vmatpush1.bf16.msra.mxu1 %v10426_v6  ;;  %v10506_v5 = vld [vmem:[#allocation10 + $0x8c8] ss:$16 sps:$4 sm:$0xff]   ;;  %v10511_v6 = vld [vmem:[#allocation10 + $0x8e4] ss:$16 sps:$4 sm:$0xff]  }
 0x2eb   :  { %5078 = vmatprep.subr.bf16.mxu0 %v10431_v7  ;;  %5447 = vmatprep.subr.bf16.mxu1 %v10434_v43  ;;  %v10514_v7 = vld [vmem:[#allocation10 + $0x8ec] ss:$16 sps:$4 sm:$0xff]   ;;  %v10509_v43 = vld [vmem:[#allocation10 + $0x8e0] ss:$16 sps:$4 sm:$0xff]  }
 0x2ee   :  { %5079 = vmatpush1.bf16.msra.mxu0 %v10429_v9  ;;  %5448 = vmatpush1.bf16.msra.mxu1 %v10432_v10  ;;  %v10512_v9 = vld [vmem:[#allocation10 + $0x8e8] ss:$16 sps:$4 sm:$0xff]   ;;  %v10517_v10 = vld [vmem:[#allocation10 + $0x904] ss:$16 sps:$4 sm:$0xff]  }
 0x2ef   :  { %5080 = vmatprep.subr.bf16.mxu0 %v10437_v11  ;;  %5449 = vmatprep.subr.bf16.mxu1 %v10440_v12  ;;  %v10520_v11 = vld [vmem:[#allocation10 + $0x90c] ss:$16 sps:$4 sm:$0xff]   ;;  %v10515_v12 = vld [vmem:[#allocation10 + $0x900] ss:$16 sps:$4 sm:$0xff]  }
 0x2f2   :  { %5081 = vmatpush1.bf16.msra.mxu0 %v10435_v13  ;;  %5450 = vmatpush1.bf16.msra.mxu1 %v10438_v14  ;;  %v10518_v13 = vld [vmem:[#allocation10 + $0x908] ss:$16 sps:$4 sm:$0xff]   ;;  %v10523_v14 = vld [vmem:[#allocation10 + $0x924] ss:$16 sps:$4 sm:$0xff]  }
 0x2f3   :  { %5082 = vmatprep.subr.bf16.mxu0 %v10443_v0  ;;  %5451 = vmatprep.subr.bf16.mxu1 %v10446_v16  ;;  %v10526_v0 = vld [vmem:[#allocation10 + $0x92c] ss:$16 sps:$4 sm:$0xff]   ;;  %v10521_v16 = vld [vmem:[#allocation10 + $0x920] ss:$16 sps:$4 sm:$0xff]  }
 0x2f6   :  { %5083 = vmatpush1.bf16.msra.mxu0 %v10441_v17  ;;  %5452 = vmatpush1.bf16.msra.mxu1 %v10444_v18  ;;  %v10524_v17 = vld [vmem:[#allocation10 + $0x928] ss:$16 sps:$4 sm:$0xff]   ;;  %v10529_v18 = vld [vmem:[#allocation10 + $0x944] ss:$16 sps:$4 sm:$0xff]  }
 0x2f7   :  { %5084 = vmatprep.subr.bf16.mxu0 %v10449_v19  ;;  %5453 = vmatprep.subr.bf16.mxu1 %v10452_v20  ;;  %v10532_v19 = vld [vmem:[#allocation10 + $0x94c] ss:$16 sps:$4 sm:$0xff]   ;;  %v10527_v20 = vld [vmem:[#allocation10 + $0x940] ss:$16 sps:$4 sm:$0xff]  }
 0x2fa   :  { %5085 = vmatpush1.bf16.msra.mxu0 %v10447_v21  ;;  %5454 = vmatpush1.bf16.msra.mxu1 %v10450_v22  ;;  %v10530_v21 = vld [vmem:[#allocation10 + $0x948] ss:$16 sps:$4 sm:$0xff]   ;;  %v10535_v22 = vld [vmem:[#allocation10 + $0x964] ss:$16 sps:$4 sm:$0xff]  }
 0x2fb   :  { %5086 = vmatprep.subr.bf16.mxu0 %v10455_v8  ;;  %5455 = vmatprep.subr.bf16.mxu1 %v10458_v23  ;;  %v10538_v8 = vld [vmem:[#allocation10 + $0x96c] ss:$16 sps:$4 sm:$0xff]   ;;  %v10533_v23 = vld [vmem:[#allocation10 + $0x960] ss:$16 sps:$4 sm:$0xff]  }
 0x2fe   :  { %5087 = vmatpush1.bf16.msra.mxu0 %v10453_v28  ;;  %5456 = vmatpush1.bf16.msra.mxu1 %v10456_v29  ;;  %v10536_v28 = vld [vmem:[#allocation10 + $0x968] ss:$16 sps:$4 sm:$0xff]   ;;  %v10541_v29 = vld [vmem:[#allocation10 + $0x984] ss:$16 sps:$4 sm:$0xff]  }
 0x2ff   :  { %5088 = vmatprep.subr.bf16.mxu0 %v10461_v30  ;;  %5457 = vmatprep.subr.bf16.mxu1 %v10464_v32  ;;  %v10544_v30 = vld [vmem:[#allocation10 + $0x98c] ss:$16 sps:$4 sm:$0xff]   ;;  %v10539_v32 = vld [vmem:[#allocation10 + $0x980] ss:$16 sps:$4 sm:$0xff]  }
 0x302   :  { %5089 = vmatpush1.bf16.msra.mxu0 %v10459_v33  ;;  %5458 = vmatpush1.bf16.msra.mxu1 %v10462_v34  ;;  %v10542_v33 = vld [vmem:[#allocation10 + $0x988] ss:$16 sps:$4 sm:$0xff]   ;;  %v10547_v34 = vld [vmem:[#allocation10 + $0x9a4] ss:$16 sps:$4 sm:$0xff]  }
 0x303   :  { %5099 = vmatprep.subr.bf16.mxu0 %v10469_v35  ;;  %5468 = vmatprep.subr.bf16.mxu1 %v10472_v36  ;;  %v10550_v35 = vld [vmem:[#allocation10 + $0x9ac] ss:$16 sps:$4 sm:$0xff]   ;;  %v10545_v36 = vld [vmem:[#allocation10 + $0x9a0] ss:$16 sps:$4 sm:$0xff]  }
 0x305   :  { %5091 = vmatmul.mubr.bf16.vlgmr.msra.gmra.mrb[8].mxu0 %v8777_v37  ;;  %5460 = vmatmul.mubr.bf16.vlgmr.msra.gmra.mrb[8].mxu1 %v8777_v37  ;;  %v10548_v37 = vld [vmem:[#allocation10 + $0x9a8] ss:$16 sps:$4 sm:$0xff]  }
 0x306   :  { %5100 = vmatpush1.bf16.msra.mxu0 %v10467_v40  ;;  %5469 = vmatpush1.bf16.msra.mxu1 %v10470_v41  ;;  %v10553_v40 = vld [vmem:[#allocation10 + $0x9c4] ss:$16 sps:$4 sm:$0xff]   ;;  %v10556_v41 = vld [vmem:[#allocation10 + $0x9cc] ss:$16 sps:$4 sm:$0xff]  }
 0x307   :  { %5101 = vmatprep.subr.bf16.mxu0 %v10475_v42  ;;  %5470 = vmatprep.subr.bf16.mxu1 %v10478_v44  ;;  %v10551_v42 = vld [vmem:[#allocation10 + $0x9c0] ss:$16 sps:$4 sm:$0xff]   ;;  %v10554_v44 = vld [vmem:[#allocation10 + $0x9c8] ss:$16 sps:$4 sm:$0xff]  }
 0x308   :  { %5131 = vmatprep.mubr.bf16.mxu0 %v8780_v45  ;;  %5500 = vmatprep.mubr.bf16.mxu1 %v8780_v45  ;;  %v10559_v45 = vld [vmem:[#allocation10 + $0x9e4] ss:$16 sps:$4 sm:$0xff]  }
 0x30a   :  { %5102 = vmatpush1.bf16.msra.mxu0 %v10473_v15  ;;  %5471 = vmatpush1.bf16.msra.mxu1 %v10476_v46  ;;  %v10562_v15 = vld [vmem:[#allocation10 + $0x9ec] ss:$16 sps:$4 sm:$0xff]   ;;  %v10557_v46 = vld [vmem:[#allocation10 + $0x9e0] ss:$16 sps:$4 sm:$0xff]  }
 0x30b   :  { %5103 = vmatprep.subr.bf16.mxu0 %v10481_v47  ;;  %5472 = vmatprep.subr.bf16.mxu1 %v10484_v24  ;;  %v10560_v47 = vld [vmem:[#allocation10 + $0x9e8] ss:$16 sps:$4 sm:$0xff]   ;;  %v10567_v24 = vld [vmem:[#allocation10 + $0xa04] ss:$16 sps:$4 sm:$0xff]  }
 0x30e   :  { %5104 = vmatpush1.bf16.msra.mxu0 %v10479_v49  ;;  %5473 = vmatpush1.bf16.msra.mxu1 %v10482_v53  ;;  %v10570_v49 = vld [vmem:[#allocation10 + $0xa0c] ss:$16 sps:$4 sm:$0xff]   ;;  %v8779_v53 = vcombine.low %v12183_v39, %v12183_v39  ;;  %v10571_v39 = vld [vmem:[#allocation10 + $0xa20] ss:$16 sps:$4 sm:$0xff]  }
 0x30f   :  { %5105 = vmatprep.subr.bf16.mxu0 %v10487_v26  ;;  %5474 = vmatprep.subr.bf16.mxu1 %v10490_v54  ;;  %v12192_v26 = vld [vmem:[%s12324_s1 + $0x28] sm:$0xff] }
 0x310   :  { %v10565_v54 = vld [vmem:[#allocation10 + $0xa00] ss:$16 sps:$4 sm:$0xff]  }
 0x312   :  { %5106 = vmatpush1.bf16.msra.mxu0 %v10485_v55  ;;  %5475 = vmatpush1.bf16.msra.mxu1 %v10488_v56  ;;  %v10568_v55 = vld [vmem:[#allocation10 + $0xa08] ss:$16 sps:$4 sm:$0xff]   ;;  %v10573_v56 = vld [vmem:[#allocation10 + $0xa24] ss:$16 sps:$4 sm:$0xff]  }
 0x313   :  { %5107 = vmatprep.subr.bf16.mxu0 %v10493_v57  ;;  %5476 = vmatprep.subr.bf16.mxu1 %v10496_v58  ;;  %v10576_v57 = vld [vmem:[#allocation10 + $0xa2c] ss:$16 sps:$4 sm:$0xff]   ;;  %v8782_v58 = vcombine.high %v12192_v26, %v12192_v26 }
 0x316   :  { %5108 = vmatpush1.bf16.msra.mxu0 %v10491_v59  ;;  %5477 = vmatpush1.bf16.msra.mxu1 %v10494_v60  ;;  %v10574_v59 = vld [vmem:[#allocation10 + $0xa28] ss:$16 sps:$4 sm:$0xff]   ;;  %v10579_v60 = vld [vmem:[#allocation10 + $0xa44] ss:$16 sps:$4 sm:$0xff]  }
 0x317   :  { %5109 = vmatprep.subr.bf16.mxu0 %v10499_v61  ;;  %5478 = vmatprep.subr.bf16.mxu1 %v10502_v62  ;;  %v10582_v61 = vld [vmem:[#allocation10 + $0xa4c] ss:$16 sps:$4 sm:$0xff]   ;;  %v10577_v62 = vld [vmem:[#allocation10 + $0xa40] ss:$16 sps:$4 sm:$0xff]  }
 0x31a   :  { %5110 = vmatpush1.bf16.msra.mxu0 %v10497_v63  ;;  %5479 = vmatpush1.bf16.msra.mxu1 %v10500_v1  ;;  %v10580_v63 = vld [vmem:[#allocation10 + $0xa48] ss:$16 sps:$4 sm:$0xff]   ;;  %v10585_v1 = vld [vmem:[#allocation10 + $0xa64] ss:$16 sps:$4 sm:$0xff]  }
 0x31b   :  { %5111 = vmatprep.subr.bf16.mxu0 %v10505_v2  ;;  %5480 = vmatprep.subr.bf16.mxu1 %v10508_v3  ;;  %v10588_v2 = vld [vmem:[#allocation10 + $0xa6c] ss:$16 sps:$4 sm:$0xff]   ;;  %v10583_v3 = vld [vmem:[#allocation10 + $0xa60] ss:$16 sps:$4 sm:$0xff]  }
 0x31e   :  { %5112 = vmatpush1.bf16.msra.mxu0 %v10503_v4  ;;  %5481 = vmatpush1.bf16.msra.mxu1 %v10506_v5  ;;  %v10586_v4 = vld [vmem:[#allocation10 + $0xa68] ss:$16 sps:$4 sm:$0xff]   ;;  %v10591_v5 = vld [vmem:[#allocation10 + $0xa84] ss:$16 sps:$4 sm:$0xff]  }
 0x31f   :  { %5113 = vmatprep.subr.bf16.mxu0 %v10511_v6  ;;  %5482 = vmatprep.subr.bf16.mxu1 %v10514_v7  ;;  %v10594_v6 = vld [vmem:[#allocation10 + $0xa8c] ss:$16 sps:$4 sm:$0xff]   ;;  %v10589_v7 = vld [vmem:[#allocation10 + $0xa80] ss:$16 sps:$4 sm:$0xff]  }
 0x322   :  { %5114 = vmatpush1.bf16.msra.mxu0 %v10509_v43  ;;  %5483 = vmatpush1.bf16.msra.mxu1 %v10512_v9  ;;  %v10592_v43 = vld [vmem:[#allocation10 + $0xa88] ss:$16 sps:$4 sm:$0xff]   ;;  %v10597_v9 = vld [vmem:[#allocation10 + $0xaa4] ss:$16 sps:$4 sm:$0xff]  }
 0x323   :  { %5115 = vmatprep.subr.bf16.mxu0 %v10517_v10  ;;  %5484 = vmatprep.subr.bf16.mxu1 %v10520_v11  ;;  %v10600_v10 = vld [vmem:[#allocation10 + $0xaac] ss:$16 sps:$4 sm:$0xff]   ;;  %v10595_v11 = vld [vmem:[#allocation10 + $0xaa0] ss:$16 sps:$4 sm:$0xff]  }
 0x326   :  { %5116 = vmatpush1.bf16.msra.mxu0 %v10515_v12  ;;  %5485 = vmatpush1.bf16.msra.mxu1 %v10518_v13  ;;  %v10598_v12 = vld [vmem:[#allocation10 + $0xaa8] ss:$16 sps:$4 sm:$0xff]   ;;  %v10603_v13 = vld [vmem:[#allocation10 + $0xac4] ss:$16 sps:$4 sm:$0xff]  }
 0x327   :  { %5117 = vmatprep.subr.bf16.mxu0 %v10523_v14  ;;  %5486 = vmatprep.subr.bf16.mxu1 %v10526_v0  ;;  %v10606_v14 = vld [vmem:[#allocation10 + $0xacc] ss:$16 sps:$4 sm:$0xff]   ;;  %v10601_v0 = vld [vmem:[#allocation10 + $0xac0] ss:$16 sps:$4 sm:$0xff]  }
 0x32a   :  { %5118 = vmatpush1.bf16.msra.mxu0 %v10521_v16  ;;  %5487 = vmatpush1.bf16.msra.mxu1 %v10524_v17  ;;  %v10604_v16 = vld [vmem:[#allocation10 + $0xac8] ss:$16 sps:$4 sm:$0xff]   ;;  %v10609_v17 = vld [vmem:[#allocation10 + $0xae4] ss:$16 sps:$4 sm:$0xff]  }
 0x32b   :  { %5119 = vmatprep.subr.bf16.mxu0 %v10529_v18  ;;  %5488 = vmatprep.subr.bf16.mxu1 %v10532_v19  ;;  %v10612_v18 = vld [vmem:[#allocation10 + $0xaec] ss:$16 sps:$4 sm:$0xff]   ;;  %v10607_v19 = vld [vmem:[#allocation10 + $0xae0] ss:$16 sps:$4 sm:$0xff]  }
 0x32e   :  { %5120 = vmatpush1.bf16.msra.mxu0 %v10527_v20  ;;  %5489 = vmatpush1.bf16.msra.mxu1 %v10530_v21  ;;  %v10610_v20 = vld [vmem:[#allocation10 + $0xae8] ss:$16 sps:$4 sm:$0xff]   ;;  %v10615_v21 = vld [vmem:[#allocation10 + $0xb04] ss:$16 sps:$4 sm:$0xff]  }
 0x32f   :  { %5121 = vmatprep.subr.bf16.mxu0 %v10535_v22  ;;  %5490 = vmatprep.subr.bf16.mxu1 %v10538_v8  ;;  %v10618_v22 = vld [vmem:[#allocation10 + $0xb0c] ss:$16 sps:$4 sm:$0xff]   ;;  %v10613_v8 = vld [vmem:[#allocation10 + $0xb00] ss:$16 sps:$4 sm:$0xff]  }
 0x332   :  { %5122 = vmatpush1.bf16.msra.mxu0 %v10533_v23  ;;  %5491 = vmatpush1.bf16.msra.mxu1 %v10536_v28  ;;  %v10616_v23 = vld [vmem:[#allocation10 + $0xb08] ss:$16 sps:$4 sm:$0xff]   ;;  %v10621_v28 = vld [vmem:[#allocation10 + $0xb24] ss:$16 sps:$4 sm:$0xff]  }
 0x333   :  { %5123 = vmatprep.subr.bf16.mxu0 %v10541_v29  ;;  %5492 = vmatprep.subr.bf16.mxu1 %v10544_v30  ;;  %v10624_v29 = vld [vmem:[#allocation10 + $0xb2c] ss:$16 sps:$4 sm:$0xff]   ;;  %v10619_v30 = vld [vmem:[#allocation10 + $0xb20] ss:$16 sps:$4 sm:$0xff]  }
 0x336   :  { %5124 = vmatpush1.bf16.msra.mxu0 %v10539_v32  ;;  %5493 = vmatpush1.bf16.msra.mxu1 %v10542_v33  ;;  %v10622_v32 = vld [vmem:[#allocation10 + $0xb28] ss:$16 sps:$4 sm:$0xff]   ;;  %v10627_v33 = vld [vmem:[#allocation10 + $0xb44] ss:$16 sps:$4 sm:$0xff]  }
 0x337   :  { %5125 = vmatprep.subr.bf16.mxu0 %v10547_v34  ;;  %5494 = vmatprep.subr.bf16.mxu1 %v10550_v35  ;;  %v10630_v34 = vld [vmem:[#allocation10 + $0xb4c] ss:$16 sps:$4 sm:$0xff]   ;;  %v10625_v35 = vld [vmem:[#allocation10 + $0xb40] ss:$16 sps:$4 sm:$0xff]  }
 0x33a   :  { %5126 = vmatpush1.bf16.msra.mxu0 %v10545_v36  ;;  %5495 = vmatpush1.bf16.msra.mxu1 %v10548_v37  ;;  %v10628_v36 = vld [vmem:[#allocation10 + $0xb48] ss:$16 sps:$4 sm:$0xff]   ;;  %v10633_v37 = vld [vmem:[#allocation10 + $0xb64] ss:$16 sps:$4 sm:$0xff]  }
 0x33b   :  { %5127 = vmatprep.subr.bf16.mxu0 %v10553_v40  ;;  %5496 = vmatprep.subr.bf16.mxu1 %v10556_v41  ;;  %v10636_v40 = vld [vmem:[#allocation10 + $0xb6c] ss:$16 sps:$4 sm:$0xff]   ;;  %v10631_v41 = vld [vmem:[#allocation10 + $0xb60] ss:$16 sps:$4 sm:$0xff]  }
 0x33e   :  { %5128 = vmatpush1.bf16.msra.mxu0 %v10551_v42  ;;  %5497 = vmatpush1.bf16.msra.mxu1 %v10554_v44  ;;  %v10634_v42 = vld [vmem:[#allocation10 + $0xb68] ss:$16 sps:$4 sm:$0xff]   ;;  %v10639_v44 = vld [vmem:[#allocation10 + $0xb84] ss:$16 sps:$4 sm:$0xff]  }
 0x33f   :  { %5129 = vmatprep.subr.bf16.mxu0 %v10559_v45  ;;  %5498 = vmatprep.subr.bf16.mxu1 %v10562_v15  ;;  %v10642_v45 = vld [vmem:[#allocation10 + $0xb8c] ss:$16 sps:$4 sm:$0xff]   ;;  %v10637_v15 = vld [vmem:[#allocation10 + $0xb80] ss:$16 sps:$4 sm:$0xff]  }
 0x342   :  { %5130 = vmatpush1.bf16.msra.mxu0 %v10557_v46  ;;  %5499 = vmatpush1.bf16.msra.mxu1 %v10560_v47  ;;  %v10640_v46 = vld [vmem:[#allocation10 + $0xb88] ss:$16 sps:$4 sm:$0xff]   ;;  %v10645_v47 = vld [vmem:[#allocation10 + $0xba4] ss:$16 sps:$4 sm:$0xff]  }
 0x343   :  { %5140 = vmatprep.subr.bf16.mxu0 %v10567_v24  ;;  %5509 = vmatprep.subr.bf16.mxu1 %v10570_v49  ;;  %v10648_v24 = vld [vmem:[#allocation10 + $0xbac] ss:$16 sps:$4 sm:$0xff]   ;;  %v10643_v49 = vld [vmem:[#allocation10 + $0xba0] ss:$16 sps:$4 sm:$0xff]  }
 0x345   :  { %5132 = vmatmul.mubr.bf16.vlgmr.msra.gmra.mrb[8].mxu0 %v8779_v53  ;;  %5501 = vmatmul.mubr.bf16.vlgmr.msra.gmra.mrb[8].mxu1 %v8779_v53  ;;  %v10646_v53 = vld [vmem:[#allocation10 + $0xba8] ss:$16 sps:$4 sm:$0xff]  }
 0x346   :  { %5141 = vmatpush1.bf16.msra.mxu0 %v10565_v54  ;;  %5510 = vmatpush1.bf16.msra.mxu1 %v10568_v55  ;;  %v10651_v54 = vld [vmem:[#allocation10 + $0xbc4] ss:$16 sps:$4 sm:$0xff]   ;;  %v10654_v55 = vld [vmem:[#allocation10 + $0xbcc] ss:$16 sps:$4 sm:$0xff]  }
 0x347   :  { %5142 = vmatprep.subr.bf16.mxu0 %v10573_v56  ;;  %5511 = vmatprep.subr.bf16.mxu1 %v10576_v57  ;;  %v10649_v56 = vld [vmem:[#allocation10 + $0xbc0] ss:$16 sps:$4 sm:$0xff]   ;;  %v10652_v57 = vld [vmem:[#allocation10 + $0xbc8] ss:$16 sps:$4 sm:$0xff]  }
 0x348   :  { %5172 = vmatprep.mubr.bf16.mxu0 %v8782_v58  ;;  %5541 = vmatprep.mubr.bf16.mxu1 %v8782_v58  ;;  %v10657_v58 = vld [vmem:[#allocation10 + $0xbe4] ss:$16 sps:$4 sm:$0xff]  }
 0x34a   :  { %5143 = vmatpush1.bf16.msra.mxu0 %v10571_v39  ;;  %5512 = vmatpush1.bf16.msra.mxu1 %v10574_v59  ;;  %v10660_v39 = vld [vmem:[#allocation10 + $0xbec] ss:$16 sps:$4 sm:$0xff]   ;;  %v10655_v59 = vld [vmem:[#allocation10 + $0xbe0] ss:$16 sps:$4 sm:$0xff]  }
 0x34b   :  { %5144 = vmatprep.subr.bf16.mxu0 %v10579_v60  ;;  %5513 = vmatprep.subr.bf16.mxu1 %v10582_v61  ;;  %v10658_v60 = vld [vmem:[#allocation10 + $0xbe8] ss:$16 sps:$4 sm:$0xff]   ;;  %v10665_v61 = vld [vmem:[#allocation10 + $0xc04] ss:$16 sps:$4 sm:$0xff]  }
 0x34e   :  { %5145 = vmatpush1.bf16.msra.mxu0 %v10577_v62  ;;  %5514 = vmatpush1.bf16.msra.mxu1 %v10580_v63  ;;  %v10668_v62 = vld [vmem:[#allocation10 + $0xc0c] ss:$16 sps:$4 sm:$0xff]   ;;  %v8781_v63 = vcombine.low %v12192_v26, %v12192_v26  ;;  %v10669_v26 = vld [vmem:[#allocation10 + $0xc20] ss:$16 sps:$4 sm:$0xff]  }
 0x34f   :  { %5146 = vmatprep.subr.bf16.mxu0 %v10585_v1  ;;  %5515 = vmatprep.subr.bf16.mxu1 %v10588_v2  ;;  %v12201_v1 = vld [vmem:[%s12324_s1 + $0x30] sm:$0xff]  ;;  %v10663_v2 = vld [vmem:[#allocation10 + $0xc00] ss:$16 sps:$4 sm:$0xff]  }
 0x352   :  { %5147 = vmatpush1.bf16.msra.mxu0 %v10583_v3  ;;  %5516 = vmatpush1.bf16.msra.mxu1 %v10586_v4  ;;  %v10666_v3 = vld [vmem:[#allocation10 + $0xc08] ss:$16 sps:$4 sm:$0xff]   ;;  %v10671_v4 = vld [vmem:[#allocation10 + $0xc24] ss:$16 sps:$4 sm:$0xff]  }
 0x353   :  { %5148 = vmatprep.subr.bf16.mxu0 %v10591_v5  ;;  %5517 = vmatprep.subr.bf16.mxu1 %v10594_v6  ;;  %v10674_v5 = vld [vmem:[#allocation10 + $0xc2c] ss:$16 sps:$4 sm:$0xff]   ;;  %v8784_v6 = vcombine.high %v12201_v1, %v12201_v1 }
 0x356   :  { %5149 = vmatpush1.bf16.msra.mxu0 %v10589_v7  ;;  %5518 = vmatpush1.bf16.msra.mxu1 %v10592_v43  ;;  %v10672_v7 = vld [vmem:[#allocation10 + $0xc28] ss:$16 sps:$4 sm:$0xff]   ;;  %v10677_v43 = vld [vmem:[#allocation10 + $0xc44] ss:$16 sps:$4 sm:$0xff]  }
 0x357   :  { %5150 = vmatprep.subr.bf16.mxu0 %v10597_v9  ;;  %5519 = vmatprep.subr.bf16.mxu1 %v10600_v10  ;;  %v10680_v9 = vld [vmem:[#allocation10 + $0xc4c] ss:$16 sps:$4 sm:$0xff]   ;;  %v10675_v10 = vld [vmem:[#allocation10 + $0xc40] ss:$16 sps:$4 sm:$0xff]  }
 0x35a   :  { %5151 = vmatpush1.bf16.msra.mxu0 %v10595_v11  ;;  %5520 = vmatpush1.bf16.msra.mxu1 %v10598_v12  ;;  %v10678_v11 = vld [vmem:[#allocation10 + $0xc48] ss:$16 sps:$4 sm:$0xff]   ;;  %v10683_v12 = vld [vmem:[#allocation10 + $0xc64] ss:$16 sps:$4 sm:$0xff]  }
 0x35b   :  { %5152 = vmatprep.subr.bf16.mxu0 %v10603_v13  ;;  %5521 = vmatprep.subr.bf16.mxu1 %v10606_v14  ;;  %v10686_v13 = vld [vmem:[#allocation10 + $0xc6c] ss:$16 sps:$4 sm:$0xff]   ;;  %v10681_v14 = vld [vmem:[#allocation10 + $0xc60] ss:$16 sps:$4 sm:$0xff]  }
 0x35e   :  { %5153 = vmatpush1.bf16.msra.mxu0 %v10601_v0  ;;  %5522 = vmatpush1.bf16.msra.mxu1 %v10604_v16  ;;  %v10684_v0 = vld [vmem:[#allocation10 + $0xc68] ss:$16 sps:$4 sm:$0xff]   ;;  %v10689_v16 = vld [vmem:[#allocation10 + $0xc84] ss:$16 sps:$4 sm:$0xff]  }
 0x35f   :  { %5154 = vmatprep.subr.bf16.mxu0 %v10609_v17  ;;  %5523 = vmatprep.subr.bf16.mxu1 %v10612_v18  ;;  %v10692_v17 = vld [vmem:[#allocation10 + $0xc8c] ss:$16 sps:$4 sm:$0xff]   ;;  %v10687_v18 = vld [vmem:[#allocation10 + $0xc80] ss:$16 sps:$4 sm:$0xff]  }
 0x362   :  { %5155 = vmatpush1.bf16.msra.mxu0 %v10607_v19  ;;  %5524 = vmatpush1.bf16.msra.mxu1 %v10610_v20  ;;  %v10690_v19 = vld [vmem:[#allocation10 + $0xc88] ss:$16 sps:$4 sm:$0xff]   ;;  %v10695_v20 = vld [vmem:[#allocation10 + $0xca4] ss:$16 sps:$4 sm:$0xff]  }
 0x363   :  { %5156 = vmatprep.subr.bf16.mxu0 %v10615_v21  ;;  %5525 = vmatprep.subr.bf16.mxu1 %v10618_v22  ;;  %v10698_v21 = vld [vmem:[#allocation10 + $0xcac] ss:$16 sps:$4 sm:$0xff]   ;;  %v10693_v22 = vld [vmem:[#allocation10 + $0xca0] ss:$16 sps:$4 sm:$0xff]  }
 0x366   :  { %5157 = vmatpush1.bf16.msra.mxu0 %v10613_v8  ;;  %5526 = vmatpush1.bf16.msra.mxu1 %v10616_v23  ;;  %v10696_v8 = vld [vmem:[#allocation10 + $0xca8] ss:$16 sps:$4 sm:$0xff]   ;;  %v10701_v23 = vld [vmem:[#allocation10 + $0xcc4] ss:$16 sps:$4 sm:$0xff]  }
 0x367   :  { %5158 = vmatprep.subr.bf16.mxu0 %v10621_v28  ;;  %5527 = vmatprep.subr.bf16.mxu1 %v10624_v29  ;;  %v10704_v28 = vld [vmem:[#allocation10 + $0xccc] ss:$16 sps:$4 sm:$0xff]   ;;  %v10699_v29 = vld [vmem:[#allocation10 + $0xcc0] ss:$16 sps:$4 sm:$0xff]  }
 0x36a   :  { %5159 = vmatpush1.bf16.msra.mxu0 %v10619_v30  ;;  %5528 = vmatpush1.bf16.msra.mxu1 %v10622_v32  ;;  %v10702_v30 = vld [vmem:[#allocation10 + $0xcc8] ss:$16 sps:$4 sm:$0xff]   ;;  %v10707_v32 = vld [vmem:[#allocation10 + $0xce4] ss:$16 sps:$4 sm:$0xff]  }
 0x36b   :  { %5160 = vmatprep.subr.bf16.mxu0 %v10627_v33  ;;  %5529 = vmatprep.subr.bf16.mxu1 %v10630_v34  ;;  %v10710_v33 = vld [vmem:[#allocation10 + $0xcec] ss:$16 sps:$4 sm:$0xff]   ;;  %v10705_v34 = vld [vmem:[#allocation10 + $0xce0] ss:$16 sps:$4 sm:$0xff]  }
 0x36e   :  { %5161 = vmatpush1.bf16.msra.mxu0 %v10625_v35  ;;  %5530 = vmatpush1.bf16.msra.mxu1 %v10628_v36  ;;  %v10708_v35 = vld [vmem:[#allocation10 + $0xce8] ss:$16 sps:$4 sm:$0xff]   ;;  %v10713_v36 = vld [vmem:[#allocation10 + $0xd04] ss:$16 sps:$4 sm:$0xff]  }
 0x36f   :  { %5162 = vmatprep.subr.bf16.mxu0 %v10633_v37  ;;  %5531 = vmatprep.subr.bf16.mxu1 %v10636_v40  ;;  %v10716_v37 = vld [vmem:[#allocation10 + $0xd0c] ss:$16 sps:$4 sm:$0xff]   ;;  %v10711_v40 = vld [vmem:[#allocation10 + $0xd00] ss:$16 sps:$4 sm:$0xff]  }
 0x372   :  { %5163 = vmatpush1.bf16.msra.mxu0 %v10631_v41  ;;  %5532 = vmatpush1.bf16.msra.mxu1 %v10634_v42  ;;  %v10714_v41 = vld [vmem:[#allocation10 + $0xd08] ss:$16 sps:$4 sm:$0xff]   ;;  %v10719_v42 = vld [vmem:[#allocation10 + $0xd24] ss:$16 sps:$4 sm:$0xff]  }
 0x373   :  { %5164 = vmatprep.subr.bf16.mxu0 %v10639_v44  ;;  %5533 = vmatprep.subr.bf16.mxu1 %v10642_v45  ;;  %v10722_v44 = vld [vmem:[#allocation10 + $0xd2c] ss:$16 sps:$4 sm:$0xff]   ;;  %v10717_v45 = vld [vmem:[#allocation10 + $0xd20] ss:$16 sps:$4 sm:$0xff]  }
 0x376   :  { %5165 = vmatpush1.bf16.msra.mxu0 %v10637_v15  ;;  %5534 = vmatpush1.bf16.msra.mxu1 %v10640_v46  ;;  %v10720_v15 = vld [vmem:[#allocation10 + $0xd28] ss:$16 sps:$4 sm:$0xff]   ;;  %v10725_v46 = vld [vmem:[#allocation10 + $0xd44] ss:$16 sps:$4 sm:$0xff]  }
 0x377   :  { %5166 = vmatprep.subr.bf16.mxu0 %v10645_v47  ;;  %5535 = vmatprep.subr.bf16.mxu1 %v10648_v24  ;;  %v10728_v47 = vld [vmem:[#allocation10 + $0xd4c] ss:$16 sps:$4 sm:$0xff]   ;;  %v10723_v24 = vld [vmem:[#allocation10 + $0xd40] ss:$16 sps:$4 sm:$0xff]  }
 0x37a   :  { %5167 = vmatpush1.bf16.msra.mxu0 %v10643_v49  ;;  %5536 = vmatpush1.bf16.msra.mxu1 %v10646_v53  ;;  %v10726_v49 = vld [vmem:[#allocation10 + $0xd48] ss:$16 sps:$4 sm:$0xff]   ;;  %v10731_v53 = vld [vmem:[#allocation10 + $0xd64] ss:$16 sps:$4 sm:$0xff]  }
 0x37b   :  { %5168 = vmatprep.subr.bf16.mxu0 %v10651_v54  ;;  %5537 = vmatprep.subr.bf16.mxu1 %v10654_v55  ;;  %v10734_v54 = vld [vmem:[#allocation10 + $0xd6c] ss:$16 sps:$4 sm:$0xff]   ;;  %v10729_v55 = vld [vmem:[#allocation10 + $0xd60] ss:$16 sps:$4 sm:$0xff]  }
 0x37e   :  { %5169 = vmatpush1.bf16.msra.mxu0 %v10649_v56  ;;  %5538 = vmatpush1.bf16.msra.mxu1 %v10652_v57  ;;  %v10732_v56 = vld [vmem:[#allocation10 + $0xd68] ss:$16 sps:$4 sm:$0xff]   ;;  %v10737_v57 = vld [vmem:[#allocation10 + $0xd84] ss:$16 sps:$4 sm:$0xff]  }
 0x37f   :  { %5170 = vmatprep.subr.bf16.mxu0 %v10657_v58  ;;  %5539 = vmatprep.subr.bf16.mxu1 %v10660_v39  ;;  %v10740_v58 = vld [vmem:[#allocation10 + $0xd8c] ss:$16 sps:$4 sm:$0xff]   ;;  %v10735_v39 = vld [vmem:[#allocation10 + $0xd80] ss:$16 sps:$4 sm:$0xff]  }
 0x382   :  { %5171 = vmatpush1.bf16.msra.mxu0 %v10655_v59  ;;  %5540 = vmatpush1.bf16.msra.mxu1 %v10658_v60  ;;  %v10738_v59 = vld [vmem:[#allocation10 + $0xd88] ss:$16 sps:$4 sm:$0xff]   ;;  %v10743_v60 = vld [vmem:[#allocation10 + $0xda4] ss:$16 sps:$4 sm:$0xff]  }
 0x383   :  { %5181 = vmatprep.subr.bf16.mxu0 %v10665_v61  ;;  %5550 = vmatprep.subr.bf16.mxu1 %v10668_v62  ;;  %v10746_v61 = vld [vmem:[#allocation10 + $0xdac] ss:$16 sps:$4 sm:$0xff]   ;;  %v10741_v62 = vld [vmem:[#allocation10 + $0xda0] ss:$16 sps:$4 sm:$0xff]  }
 0x385   :  { %5173 = vmatmul.mubr.bf16.vlgmr.msra.gmra.mrb[8].mxu0 %v8781_v63  ;;  %5542 = vmatmul.mubr.bf16.vlgmr.msra.gmra.mrb[8].mxu1 %v8781_v63  ;;  %v10744_v63 = vld [vmem:[#allocation10 + $0xda8] ss:$16 sps:$4 sm:$0xff]  }
 0x386   :  { %5182 = vmatpush1.bf16.msra.mxu0 %v10663_v2  ;;  %5551 = vmatpush1.bf16.msra.mxu1 %v10666_v3  ;;  %v10749_v2 = vld [vmem:[#allocation10 + $0xdc4] ss:$16 sps:$4 sm:$0xff]   ;;  %v10752_v3 = vld [vmem:[#allocation10 + $0xdcc] ss:$16 sps:$4 sm:$0xff]  }
 0x387   :  { %5183 = vmatprep.subr.bf16.mxu0 %v10671_v4  ;;  %5552 = vmatprep.subr.bf16.mxu1 %v10674_v5  ;;  %v10747_v4 = vld [vmem:[#allocation10 + $0xdc0] ss:$16 sps:$4 sm:$0xff]   ;;  %v10750_v5 = vld [vmem:[#allocation10 + $0xdc8] ss:$16 sps:$4 sm:$0xff]  }
 0x388   :  { %5213 = vmatprep.mubr.bf16.mxu0 %v8784_v6  ;;  %5582 = vmatprep.mubr.bf16.mxu1 %v8784_v6  ;;  %v10755_v6 = vld [vmem:[#allocation10 + $0xde4] ss:$16 sps:$4 sm:$0xff]  }
 0x38a   :  { %5184 = vmatpush1.bf16.msra.mxu0 %v10669_v26  ;;  %5553 = vmatpush1.bf16.msra.mxu1 %v10672_v7  ;;  %v10758_v26 = vld [vmem:[#allocation10 + $0xdec] ss:$16 sps:$4 sm:$0xff]   ;;  %v10753_v7 = vld [vmem:[#allocation10 + $0xde0] ss:$16 sps:$4 sm:$0xff]  }
 0x38b   :  { %5185 = vmatprep.subr.bf16.mxu0 %v10677_v43  ;;  %5554 = vmatprep.subr.bf16.mxu1 %v10680_v9  ;;  %v10756_v43 = vld [vmem:[#allocation10 + $0xde8] ss:$16 sps:$4 sm:$0xff]   ;;  %v10763_v9 = vld [vmem:[#allocation10 + $0xe04] ss:$16 sps:$4 sm:$0xff]  }
 0x38e   :  { %5186 = vmatpush1.bf16.msra.mxu0 %v10675_v10  ;;  %5555 = vmatpush1.bf16.msra.mxu1 %v10678_v11  ;;  %v10766_v10 = vld [vmem:[#allocation10 + $0xe0c] ss:$16 sps:$4 sm:$0xff]   ;;  %v8783_v11 = vcombine.low %v12201_v1, %v12201_v1  ;;  %v10767_v1 = vld [vmem:[#allocation10 + $0xe20] ss:$16 sps:$4 sm:$0xff]  }
 0x38f   :  { %5187 = vmatprep.subr.bf16.mxu0 %v10683_v12  ;;  %5556 = vmatprep.subr.bf16.mxu1 %v10686_v13  ;;  %v12210_v12 = vld [vmem:[%s12324_s1 + $0x38] sm:$0xff] }
 0x390   :  { %v10761_v13 = vld [vmem:[#allocation10 + $0xe00] ss:$16 sps:$4 sm:$0xff]  }
 0x392   :  { %5188 = vmatpush1.bf16.msra.mxu0 %v10681_v14  ;;  %5557 = vmatpush1.bf16.msra.mxu1 %v10684_v0  ;;  %v10764_v14 = vld [vmem:[#allocation10 + $0xe08] ss:$16 sps:$4 sm:$0xff]   ;;  %v10769_v0 = vld [vmem:[#allocation10 + $0xe24] ss:$16 sps:$4 sm:$0xff]  }
 0x393   :  { %5189 = vmatprep.subr.bf16.mxu0 %v10689_v16  ;;  %5558 = vmatprep.subr.bf16.mxu1 %v10692_v17  ;;  %v10772_v16 = vld [vmem:[#allocation10 + $0xe2c] ss:$16 sps:$4 sm:$0xff]   ;;  %v8786_v17 = vcombine.high %v12210_v12, %v12210_v12 }
 0x396   :  { %5190 = vmatpush1.bf16.msra.mxu0 %v10687_v18  ;;  %5559 = vmatpush1.bf16.msra.mxu1 %v10690_v19  ;;  %v10770_v18 = vld [vmem:[#allocation10 + $0xe28] ss:$16 sps:$4 sm:$0xff]   ;;  %v10775_v19 = vld [vmem:[#allocation10 + $0xe44] ss:$16 sps:$4 sm:$0xff]  }
 0x397   :  { %5191 = vmatprep.subr.bf16.mxu0 %v10695_v20  ;;  %5560 = vmatprep.subr.bf16.mxu1 %v10698_v21  ;;  %v10778_v20 = vld [vmem:[#allocation10 + $0xe4c] ss:$16 sps:$4 sm:$0xff]   ;;  %v10773_v21 = vld [vmem:[#allocation10 + $0xe40] ss:$16 sps:$4 sm:$0xff]  }
 0x39a   :  { %5192 = vmatpush1.bf16.msra.mxu0 %v10693_v22  ;;  %5561 = vmatpush1.bf16.msra.mxu1 %v10696_v8  ;;  %v10776_v22 = vld [vmem:[#allocation10 + $0xe48] ss:$16 sps:$4 sm:$0xff]   ;;  %v10781_v8 = vld [vmem:[#allocation10 + $0xe64] ss:$16 sps:$4 sm:$0xff]  }
 0x39b   :  { %5193 = vmatprep.subr.bf16.mxu0 %v10701_v23  ;;  %5562 = vmatprep.subr.bf16.mxu1 %v10704_v28  ;;  %v10784_v23 = vld [vmem:[#allocation10 + $0xe6c] ss:$16 sps:$4 sm:$0xff]   ;;  %v10779_v28 = vld [vmem:[#allocation10 + $0xe60] ss:$16 sps:$4 sm:$0xff]  }
 0x39e   :  { %5194 = vmatpush1.bf16.msra.mxu0 %v10699_v29  ;;  %5563 = vmatpush1.bf16.msra.mxu1 %v10702_v30  ;;  %v10782_v29 = vld [vmem:[#allocation10 + $0xe68] ss:$16 sps:$4 sm:$0xff]   ;;  %v10787_v30 = vld [vmem:[#allocation10 + $0xe84] ss:$16 sps:$4 sm:$0xff]  }
 0x39f   :  { %5195 = vmatprep.subr.bf16.mxu0 %v10707_v32  ;;  %5564 = vmatprep.subr.bf16.mxu1 %v10710_v33  ;;  %v10790_v32 = vld [vmem:[#allocation10 + $0xe8c] ss:$16 sps:$4 sm:$0xff]   ;;  %v10785_v33 = vld [vmem:[#allocation10 + $0xe80] ss:$16 sps:$4 sm:$0xff]  }
 0x3a2   :  { %5196 = vmatpush1.bf16.msra.mxu0 %v10705_v34  ;;  %5565 = vmatpush1.bf16.msra.mxu1 %v10708_v35  ;;  %v10788_v34 = vld [vmem:[#allocation10 + $0xe88] ss:$16 sps:$4 sm:$0xff]   ;;  %v10793_v35 = vld [vmem:[#allocation10 + $0xea4] ss:$16 sps:$4 sm:$0xff]  }
 0x3a3   :  { %5197 = vmatprep.subr.bf16.mxu0 %v10713_v36  ;;  %5566 = vmatprep.subr.bf16.mxu1 %v10716_v37  ;;  %v10796_v36 = vld [vmem:[#allocation10 + $0xeac] ss:$16 sps:$4 sm:$0xff]   ;;  %v10791_v37 = vld [vmem:[#allocation10 + $0xea0] ss:$16 sps:$4 sm:$0xff]  }
 0x3a6   :  { %5198 = vmatpush1.bf16.msra.mxu0 %v10711_v40  ;;  %5567 = vmatpush1.bf16.msra.mxu1 %v10714_v41  ;;  %v10794_v40 = vld [vmem:[#allocation10 + $0xea8] ss:$16 sps:$4 sm:$0xff]   ;;  %v10799_v41 = vld [vmem:[#allocation10 + $0xec4] ss:$16 sps:$4 sm:$0xff]  }
 0x3a7   :  { %5199 = vmatprep.subr.bf16.mxu0 %v10719_v42  ;;  %5568 = vmatprep.subr.bf16.mxu1 %v10722_v44  ;;  %v10802_v42 = vld [vmem:[#allocation10 + $0xecc] ss:$16 sps:$4 sm:$0xff]   ;;  %v10797_v44 = vld [vmem:[#allocation10 + $0xec0] ss:$16 sps:$4 sm:$0xff]  }
 0x3aa   :  { %5200 = vmatpush1.bf16.msra.mxu0 %v10717_v45  ;;  %5569 = vmatpush1.bf16.msra.mxu1 %v10720_v15  ;;  %v10800_v45 = vld [vmem:[#allocation10 + $0xec8] ss:$16 sps:$4 sm:$0xff]   ;;  %v10805_v15 = vld [vmem:[#allocation10 + $0xee4] ss:$16 sps:$4 sm:$0xff]  }
 0x3ab   :  { %5201 = vmatprep.subr.bf16.mxu0 %v10725_v46  ;;  %5570 = vmatprep.subr.bf16.mxu1 %v10728_v47  ;;  %v10808_v46 = vld [vmem:[#allocation10 + $0xeec] ss:$16 sps:$4 sm:$0xff]   ;;  %v10803_v47 = vld [vmem:[#allocation10 + $0xee0] ss:$16 sps:$4 sm:$0xff]  }
 0x3ae   :  { %5202 = vmatpush1.bf16.msra.mxu0 %v10723_v24  ;;  %5571 = vmatpush1.bf16.msra.mxu1 %v10726_v49  ;;  %v10806_v24 = vld [vmem:[#allocation10 + $0xee8] ss:$16 sps:$4 sm:$0xff]   ;;  %v10811_v49 = vld [vmem:[#allocation10 + $0xf04] ss:$16 sps:$4 sm:$0xff]  }
 0x3af   :  { %5203 = vmatprep.subr.bf16.mxu0 %v10731_v53  ;;  %5572 = vmatprep.subr.bf16.mxu1 %v10734_v54  ;;  %v10814_v53 = vld [vmem:[#allocation10 + $0xf0c] ss:$16 sps:$4 sm:$0xff]   ;;  %v10809_v54 = vld [vmem:[#allocation10 + $0xf00] ss:$16 sps:$4 sm:$0xff]  }
 0x3b2   :  { %5204 = vmatpush1.bf16.msra.mxu0 %v10729_v55  ;;  %5573 = vmatpush1.bf16.msra.mxu1 %v10732_v56  ;;  %v10812_v55 = vld [vmem:[#allocation10 + $0xf08] ss:$16 sps:$4 sm:$0xff]   ;;  %v10817_v56 = vld [vmem:[#allocation10 + $0xf24] ss:$16 sps:$4 sm:$0xff]  }
 0x3b3   :  { %5205 = vmatprep.subr.bf16.mxu0 %v10737_v57  ;;  %5574 = vmatprep.subr.bf16.mxu1 %v10740_v58  ;;  %v10820_v57 = vld [vmem:[#allocation10 + $0xf2c] ss:$16 sps:$4 sm:$0xff]   ;;  %v10815_v58 = vld [vmem:[#allocation10 + $0xf20] ss:$16 sps:$4 sm:$0xff]  }
 0x3b6   :  { %5206 = vmatpush1.bf16.msra.mxu0 %v10735_v39  ;;  %5575 = vmatpush1.bf16.msra.mxu1 %v10738_v59  ;;  %v10818_v39 = vld [vmem:[#allocation10 + $0xf28] ss:$16 sps:$4 sm:$0xff]   ;;  %v10823_v59 = vld [vmem:[#allocation10 + $0xf44] ss:$16 sps:$4 sm:$0xff]  }
 0x3b7   :  { %5207 = vmatprep.subr.bf16.mxu0 %v10743_v60  ;;  %5576 = vmatprep.subr.bf16.mxu1 %v10746_v61  ;;  %v10826_v60 = vld [vmem:[#allocation10 + $0xf4c] ss:$16 sps:$4 sm:$0xff]   ;;  %v10821_v61 = vld [vmem:[#allocation10 + $0xf40] ss:$16 sps:$4 sm:$0xff]  }
 0x3ba   :  { %5208 = vmatpush1.bf16.msra.mxu0 %v10741_v62  ;;  %5577 = vmatpush1.bf16.msra.mxu1 %v10744_v63  ;;  %v10824_v62 = vld [vmem:[#allocation10 + $0xf48] ss:$16 sps:$4 sm:$0xff]   ;;  %v10829_v63 = vld [vmem:[#allocation10 + $0xf64] ss:$16 sps:$4 sm:$0xff]  }
 0x3bb   :  { %5209 = vmatprep.subr.bf16.mxu0 %v10749_v2  ;;  %5578 = vmatprep.subr.bf16.mxu1 %v10752_v3  ;;  %v10832_v2 = vld [vmem:[#allocation10 + $0xf6c] ss:$16 sps:$4 sm:$0xff]   ;;  %v10827_v3 = vld [vmem:[#allocation10 + $0xf60] ss:$16 sps:$4 sm:$0xff]  }
 0x3be   :  { %5210 = vmatpush1.bf16.msra.mxu0 %v10747_v4  ;;  %5579 = vmatpush1.bf16.msra.mxu1 %v10750_v5  ;;  %v10830_v4 = vld [vmem:[#allocation10 + $0xf68] ss:$16 sps:$4 sm:$0xff]   ;;  %v10835_v5 = vld [vmem:[#allocation10 + $0xf84] ss:$16 sps:$4 sm:$0xff]  }
 0x3bf   :  { %5211 = vmatprep.subr.bf16.mxu0 %v10755_v6  ;;  %5580 = vmatprep.subr.bf16.mxu1 %v10758_v26  ;;  %v10838_v6 = vld [vmem:[#allocation10 + $0xf8c] ss:$16 sps:$4 sm:$0xff]   ;;  %v10833_v26 = vld [vmem:[#allocation10 + $0xf80] ss:$16 sps:$4 sm:$0xff]  }
 0x3c2   :  { %5212 = vmatpush1.bf16.msra.mxu0 %v10753_v7  ;;  %5581 = vmatpush1.bf16.msra.mxu1 %v10756_v43  ;;  %v10836_v7 = vld [vmem:[#allocation10 + $0xf88] ss:$16 sps:$4 sm:$0xff]   ;;  %v10841_v43 = vld [vmem:[#allocation10 + $0xfa4] ss:$16 sps:$4 sm:$0xff]  }
 0x3c3   :  { %5222 = vmatprep.subr.bf16.mxu0 %v10763_v9  ;;  %5591 = vmatprep.subr.bf16.mxu1 %v10766_v10  ;;  %v10844_v9 = vld [vmem:[#allocation10 + $0xfac] ss:$16 sps:$4 sm:$0xff]   ;;  %v10839_v10 = vld [vmem:[#allocation10 + $0xfa0] ss:$16 sps:$4 sm:$0xff]  }
 0x3c5   :  { %5214 = vmatmul.mubr.bf16.vlgmr.msra.gmra.mrb[8].mxu0 %v8783_v11  ;;  %5583 = vmatmul.mubr.bf16.vlgmr.msra.gmra.mrb[8].mxu1 %v8783_v11  ;;  %v10842_v11 = vld [vmem:[#allocation10 + $0xfa8] ss:$16 sps:$4 sm:$0xff]  }
 0x3c6   :  { %5223 = vmatpush1.bf16.msra.mxu0 %v10761_v13  ;;  %5592 = vmatpush1.bf16.msra.mxu1 %v10764_v14  ;;  %v10847_v13 = vld [vmem:[#allocation10 + $0xfc4] ss:$16 sps:$4 sm:$0xff]   ;;  %v10850_v14 = vld [vmem:[#allocation10 + $0xfcc] ss:$16 sps:$4 sm:$0xff]  }
 0x3c7   :  { %5224 = vmatprep.subr.bf16.mxu0 %v10769_v0  ;;  %5593 = vmatprep.subr.bf16.mxu1 %v10772_v16  ;;  %v10845_v0 = vld [vmem:[#allocation10 + $0xfc0] ss:$16 sps:$4 sm:$0xff]   ;;  %v10848_v16 = vld [vmem:[#allocation10 + $0xfc8] ss:$16 sps:$4 sm:$0xff]  }
 0x3c8   :  { %5254 = vmatprep.mubr.bf16.mxu0 %v8786_v17  ;;  %5623 = vmatprep.mubr.bf16.mxu1 %v8786_v17  ;;  %v10853_v17 = vld [vmem:[#allocation10 + $0xfe4] ss:$16 sps:$4 sm:$0xff]  }
 0x3ca   :  { %5225 = vmatpush1.bf16.msra.mxu0 %v10767_v1  ;;  %5594 = vmatpush1.bf16.msra.mxu1 %v10770_v18  ;;  %v10856_v1 = vld [vmem:[#allocation10 + $0xfec] ss:$16 sps:$4 sm:$0xff]   ;;  %v10851_v18 = vld [vmem:[#allocation10 + $0xfe0] ss:$16 sps:$4 sm:$0xff]  }
 0x3cb   :  { %5226 = vmatprep.subr.bf16.mxu0 %v10775_v19  ;;  %5595 = vmatprep.subr.bf16.mxu1 %v10778_v20  ;;  %v10854_v19 = vld [vmem:[#allocation10 + $0xfe8] ss:$16 sps:$4 sm:$0xff]   ;;  %v10861_v20 = vld [vmem:[#allocation10 + $0x1004] ss:$16 sps:$4 sm:$0xff]  }
 0x3ce   :  { %5227 = vmatpush1.bf16.msra.mxu0 %v10773_v21  ;;  %5596 = vmatpush1.bf16.msra.mxu1 %v10776_v22  ;;  %v10864_v21 = vld [vmem:[#allocation10 + $0x100c] ss:$16 sps:$4 sm:$0xff]   ;;  %v8785_v22 = vcombine.low %v12210_v12, %v12210_v12  ;;  %v10865_v12 = vld [vmem:[#allocation10 + $0x1020] ss:$16 sps:$4 sm:$0xff]  }
 0x3cf   :  { %5228 = vmatprep.subr.bf16.mxu0 %v10781_v8  ;;  %5597 = vmatprep.subr.bf16.mxu1 %v10784_v23  ;;  %v12219_v8 = vld [vmem:[%s12324_s1 + $0x40] sm:$0xff]  ;;  %v10859_v23 = vld [vmem:[#allocation10 + $0x1000] ss:$16 sps:$4 sm:$0xff]  }
 0x3d2   :  { %5229 = vmatpush1.bf16.msra.mxu0 %v10779_v28  ;;  %5598 = vmatpush1.bf16.msra.mxu1 %v10782_v29  ;;  %v10862_v28 = vld [vmem:[#allocation10 + $0x1008] ss:$16 sps:$4 sm:$0xff]   ;;  %v10867_v29 = vld [vmem:[#allocation10 + $0x1024] ss:$16 sps:$4 sm:$0xff]  }
 0x3d3   :  { %5230 = vmatprep.subr.bf16.mxu0 %v10787_v30  ;;  %5599 = vmatprep.subr.bf16.mxu1 %v10790_v32  ;;  %v10870_v30 = vld [vmem:[#allocation10 + $0x102c] ss:$16 sps:$4 sm:$0xff]   ;;  %v8788_v32 = vcombine.high %v12219_v8, %v12219_v8 }
 0x3d6   :  { %5231 = vmatpush1.bf16.msra.mxu0 %v10785_v33  ;;  %5600 = vmatpush1.bf16.msra.mxu1 %v10788_v34  ;;  %v10868_v33 = vld [vmem:[#allocation10 + $0x1028] ss:$16 sps:$4 sm:$0xff]   ;;  %v10873_v34 = vld [vmem:[#allocation10 + $0x1044] ss:$16 sps:$4 sm:$0xff]  }
 0x3d7   :  { %5232 = vmatprep.subr.bf16.mxu0 %v10793_v35  ;;  %5601 = vmatprep.subr.bf16.mxu1 %v10796_v36  ;;  %v10876_v35 = vld [vmem:[#allocation10 + $0x104c] ss:$16 sps:$4 sm:$0xff]   ;;  %v10871_v36 = vld [vmem:[#allocation10 + $0x1040] ss:$16 sps:$4 sm:$0xff]  }
 0x3da   :  { %5233 = vmatpush1.bf16.msra.mxu0 %v10791_v37  ;;  %5602 = vmatpush1.bf16.msra.mxu1 %v10794_v40  ;;  %v10874_v37 = vld [vmem:[#allocation10 + $0x1048] ss:$16 sps:$4 sm:$0xff]   ;;  %v10879_v40 = vld [vmem:[#allocation10 + $0x1064] ss:$16 sps:$4 sm:$0xff]  }
 0x3db   :  { %5234 = vmatprep.subr.bf16.mxu0 %v10799_v41  ;;  %5603 = vmatprep.subr.bf16.mxu1 %v10802_v42  ;;  %v10882_v41 = vld [vmem:[#allocation10 + $0x106c] ss:$16 sps:$4 sm:$0xff]   ;;  %v10877_v42 = vld [vmem:[#allocation10 + $0x1060] ss:$16 sps:$4 sm:$0xff]  }
 0x3de   :  { %5235 = vmatpush1.bf16.msra.mxu0 %v10797_v44  ;;  %5604 = vmatpush1.bf16.msra.mxu1 %v10800_v45  ;;  %v10880_v44 = vld [vmem:[#allocation10 + $0x1068] ss:$16 sps:$4 sm:$0xff]   ;;  %v10885_v45 = vld [vmem:[#allocation10 + $0x1084] ss:$16 sps:$4 sm:$0xff]  }
 0x3df   :  { %5236 = vmatprep.subr.bf16.mxu0 %v10805_v15  ;;  %5605 = vmatprep.subr.bf16.mxu1 %v10808_v46  ;;  %v10888_v15 = vld [vmem:[#allocation10 + $0x108c] ss:$16 sps:$4 sm:$0xff]   ;;  %v10883_v46 = vld [vmem:[#allocation10 + $0x1080] ss:$16 sps:$4 sm:$0xff]  }
 0x3e2   :  { %5237 = vmatpush1.bf16.msra.mxu0 %v10803_v47  ;;  %5606 = vmatpush1.bf16.msra.mxu1 %v10806_v24  ;;  %v10886_v47 = vld [vmem:[#allocation10 + $0x1088] ss:$16 sps:$4 sm:$0xff]   ;;  %v10891_v24 = vld [vmem:[#allocation10 + $0x10a4] ss:$16 sps:$4 sm:$0xff]  }
 0x3e3   :  { %5238 = vmatprep.subr.bf16.mxu0 %v10811_v49  ;;  %5607 = vmatprep.subr.bf16.mxu1 %v10814_v53  ;;  %v10894_v49 = vld [vmem:[#allocation10 + $0x10ac] ss:$16 sps:$4 sm:$0xff]   ;;  %v10889_v53 = vld [vmem:[#allocation10 + $0x10a0] ss:$16 sps:$4 sm:$0xff]  }
 0x3e6   :  { %5239 = vmatpush1.bf16.msra.mxu0 %v10809_v54  ;;  %5608 = vmatpush1.bf16.msra.mxu1 %v10812_v55  ;;  %v10892_v54 = vld [vmem:[#allocation10 + $0x10a8] ss:$16 sps:$4 sm:$0xff]   ;;  %v10897_v55 = vld [vmem:[#allocation10 + $0x10c4] ss:$16 sps:$4 sm:$0xff]  }
 0x3e7   :  { %5240 = vmatprep.subr.bf16.mxu0 %v10817_v56  ;;  %5609 = vmatprep.subr.bf16.mxu1 %v10820_v57  ;;  %v10900_v56 = vld [vmem:[#allocation10 + $0x10cc] ss:$16 sps:$4 sm:$0xff]   ;;  %v10895_v57 = vld [vmem:[#allocation10 + $0x10c0] ss:$16 sps:$4 sm:$0xff]  }
 0x3ea   :  { %5241 = vmatpush1.bf16.msra.mxu0 %v10815_v58  ;;  %5610 = vmatpush1.bf16.msra.mxu1 %v10818_v39  ;;  %v10898_v58 = vld [vmem:[#allocation10 + $0x10c8] ss:$16 sps:$4 sm:$0xff]   ;;  %v10903_v39 = vld [vmem:[#allocation10 + $0x10e4] ss:$16 sps:$4 sm:$0xff]  }
 0x3eb   :  { %5242 = vmatprep.subr.bf16.mxu0 %v10823_v59  ;;  %5611 = vmatprep.subr.bf16.mxu1 %v10826_v60  ;;  %v10906_v59 = vld [vmem:[#allocation10 + $0x10ec] ss:$16 sps:$4 sm:$0xff]   ;;  %v10901_v60 = vld [vmem:[#allocation10 + $0x10e0] ss:$16 sps:$4 sm:$0xff]  }
 0x3ee   :  { %5243 = vmatpush1.bf16.msra.mxu0 %v10821_v61  ;;  %5612 = vmatpush1.bf16.msra.mxu1 %v10824_v62  ;;  %v10904_v61 = vld [vmem:[#allocation10 + $0x10e8] ss:$16 sps:$4 sm:$0xff]   ;;  %v10909_v62 = vld [vmem:[#allocation10 + $0x1104] ss:$16 sps:$4 sm:$0xff]  }
 0x3ef   :  { %5244 = vmatprep.subr.bf16.mxu0 %v10829_v63  ;;  %5613 = vmatprep.subr.bf16.mxu1 %v10832_v2  ;;  %v10912_v63 = vld [vmem:[#allocation10 + $0x110c] ss:$16 sps:$4 sm:$0xff]   ;;  %v10907_v2 = vld [vmem:[#allocation10 + $0x1100] ss:$16 sps:$4 sm:$0xff]  }
 0x3f2   :  { %5245 = vmatpush1.bf16.msra.mxu0 %v10827_v3  ;;  %5614 = vmatpush1.bf16.msra.mxu1 %v10830_v4  ;;  %v10910_v3 = vld [vmem:[#allocation10 + $0x1108] ss:$16 sps:$4 sm:$0xff]   ;;  %v10915_v4 = vld [vmem:[#allocation10 + $0x1124] ss:$16 sps:$4 sm:$0xff]  }
 0x3f3   :  { %5246 = vmatprep.subr.bf16.mxu0 %v10835_v5  ;;  %5615 = vmatprep.subr.bf16.mxu1 %v10838_v6  ;;  %v10918_v5 = vld [vmem:[#allocation10 + $0x112c] ss:$16 sps:$4 sm:$0xff]   ;;  %v10913_v6 = vld [vmem:[#allocation10 + $0x1120] ss:$16 sps:$4 sm:$0xff]  }
 0x3f6   :  { %5247 = vmatpush1.bf16.msra.mxu0 %v10833_v26  ;;  %5616 = vmatpush1.bf16.msra.mxu1 %v10836_v7  ;;  %v10916_v26 = vld [vmem:[#allocation10 + $0x1128] ss:$16 sps:$4 sm:$0xff]   ;;  %v10921_v7 = vld [vmem:[#allocation10 + $0x1144] ss:$16 sps:$4 sm:$0xff]  }
 0x3f7   :  { %5248 = vmatprep.subr.bf16.mxu0 %v10841_v43  ;;  %5617 = vmatprep.subr.bf16.mxu1 %v10844_v9  ;;  %v10924_v43 = vld [vmem:[#allocation10 + $0x114c] ss:$16 sps:$4 sm:$0xff]   ;;  %v10919_v9 = vld [vmem:[#allocation10 + $0x1140] ss:$16 sps:$4 sm:$0xff]  }
 0x3fa   :  { %5249 = vmatpush1.bf16.msra.mxu0 %v10839_v10  ;;  %5618 = vmatpush1.bf16.msra.mxu1 %v10842_v11  ;;  %v10922_v10 = vld [vmem:[#allocation10 + $0x1148] ss:$16 sps:$4 sm:$0xff]   ;;  %v10927_v11 = vld [vmem:[#allocation10 + $0x1164] ss:$16 sps:$4 sm:$0xff]  }
 0x3fb   :  { %5250 = vmatprep.subr.bf16.mxu0 %v10847_v13  ;;  %5619 = vmatprep.subr.bf16.mxu1 %v10850_v14  ;;  %v10930_v13 = vld [vmem:[#allocation10 + $0x116c] ss:$16 sps:$4 sm:$0xff]   ;;  %v10925_v14 = vld [vmem:[#allocation10 + $0x1160] ss:$16 sps:$4 sm:$0xff]  }
 0x3fe   :  { %5251 = vmatpush1.bf16.msra.mxu0 %v10845_v0  ;;  %5620 = vmatpush1.bf16.msra.mxu1 %v10848_v16  ;;  %v10928_v0 = vld [vmem:[#allocation10 + $0x1168] ss:$16 sps:$4 sm:$0xff]   ;;  %v10933_v16 = vld [vmem:[#allocation10 + $0x1184] ss:$16 sps:$4 sm:$0xff]  }
 0x3ff   :  { %5252 = vmatprep.subr.bf16.mxu0 %v10853_v17  ;;  %5621 = vmatprep.subr.bf16.mxu1 %v10856_v1  ;;  %v10936_v17 = vld [vmem:[#allocation10 + $0x118c] ss:$16 sps:$4 sm:$0xff]   ;;  %v10931_v1 = vld [vmem:[#allocation10 + $0x1180] ss:$16 sps:$4 sm:$0xff]  }
 0x402   :  { %5253 = vmatpush1.bf16.msra.mxu0 %v10851_v18  ;;  %5622 = vmatpush1.bf16.msra.mxu1 %v10854_v19  ;;  %v10934_v18 = vld [vmem:[#allocation10 + $0x1188] ss:$16 sps:$4 sm:$0xff]   ;;  %v10939_v19 = vld [vmem:[#allocation10 + $0x11a4] ss:$16 sps:$4 sm:$0xff]  }
 0x403   :  { %5263 = vmatprep.subr.bf16.mxu0 %v10861_v20  ;;  %5632 = vmatprep.subr.bf16.mxu1 %v10864_v21  ;;  %v10942_v20 = vld [vmem:[#allocation10 + $0x11ac] ss:$16 sps:$4 sm:$0xff]   ;;  %v10937_v21 = vld [vmem:[#allocation10 + $0x11a0] ss:$16 sps:$4 sm:$0xff]  }
 0x405   :  { %5255 = vmatmul.mubr.bf16.vlgmr.msra.gmra.mrb[8].mxu0 %v8785_v22  ;;  %5624 = vmatmul.mubr.bf16.vlgmr.msra.gmra.mrb[8].mxu1 %v8785_v22  ;;  %v10940_v22 = vld [vmem:[#allocation10 + $0x11a8] ss:$16 sps:$4 sm:$0xff]  }
 0x406   :  { %5264 = vmatpush1.bf16.msra.mxu0 %v10859_v23  ;;  %5633 = vmatpush1.bf16.msra.mxu1 %v10862_v28  ;;  %v10945_v23 = vld [vmem:[#allocation10 + $0x11c4] ss:$16 sps:$4 sm:$0xff]   ;;  %v10948_v28 = vld [vmem:[#allocation10 + $0x11cc] ss:$16 sps:$4 sm:$0xff]  }
 0x407   :  { %5265 = vmatprep.subr.bf16.mxu0 %v10867_v29  ;;  %5634 = vmatprep.subr.bf16.mxu1 %v10870_v30  ;;  %v10943_v29 = vld [vmem:[#allocation10 + $0x11c0] ss:$16 sps:$4 sm:$0xff]   ;;  %v10946_v30 = vld [vmem:[#allocation10 + $0x11c8] ss:$16 sps:$4 sm:$0xff]  }
 0x408   :  { %5295 = vmatprep.mubr.bf16.mxu0 %v8788_v32  ;;  %5664 = vmatprep.mubr.bf16.mxu1 %v8788_v32  ;;  %v10951_v32 = vld [vmem:[#allocation10 + $0x11e4] ss:$16 sps:$4 sm:$0xff]  }
 0x40a   :  { %5266 = vmatpush1.bf16.msra.mxu0 %v10865_v12  ;;  %5635 = vmatpush1.bf16.msra.mxu1 %v10868_v33  ;;  %v10954_v12 = vld [vmem:[#allocation10 + $0x11ec] ss:$16 sps:$4 sm:$0xff]   ;;  %v10949_v33 = vld [vmem:[#allocation10 + $0x11e0] ss:$16 sps:$4 sm:$0xff]  }
 0x40b   :  { %5267 = vmatprep.subr.bf16.mxu0 %v10873_v34  ;;  %5636 = vmatprep.subr.bf16.mxu1 %v10876_v35  ;;  %v10952_v34 = vld [vmem:[#allocation10 + $0x11e8] ss:$16 sps:$4 sm:$0xff]  }
 0x40c   :  { %v10959_v35 = vld [vmem:[#allocation13 + $0x4] ss:$16 sps:$4 sm:$0xff]  }
 0x40e   :  { %5268 = vmatpush1.bf16.msra.mxu0 %v10871_v36  ;;  %5637 = vmatpush1.bf16.msra.mxu1 %v10874_v37  ;;  %v10962_v36 = vld [vmem:[#allocation13 + $0xc] ss:$16 sps:$4 sm:$0xff]   ;;  %v8787_v37 = vcombine.low %v12219_v8, %v12219_v8  ;;  %v10969_v8 = vld [vmem:[#allocation13 + $0x40] ss:$16 sps:$4 sm:$0xff]  }
 0x40f   :  { %5269 = vmatprep.subr.bf16.mxu0 %v10879_v40  ;;  %5638 = vmatprep.subr.bf16.mxu1 %v10882_v41  ;;  %v10957_v40 = vld [vmem:[#allocation13] ss:$16 sps:$4 sm:$0xff]   ;;  %v10960_v41 = vld [vmem:[#allocation13 + $0x8] ss:$16 sps:$4 sm:$0xff]  }
 0x412   :  { %5270 = vmatpush1.bf16.msra.mxu0 %v10877_v42  ;;  %5639 = vmatpush1.bf16.msra.mxu1 %v10880_v44  ;;  %v10965_v42 = vld [vmem:[#allocation13 + $0x24] ss:$16 sps:$4 sm:$0xff]   ;;  %v10968_v44 = vld [vmem:[#allocation13 + $0x2c] ss:$16 sps:$4 sm:$0xff]  }
 0x413   :  { %5271 = vmatprep.subr.bf16.mxu0 %v10885_v45  ;;  %5640 = vmatprep.subr.bf16.mxu1 %v10888_v15  ;;  %v10963_v45 = vld [vmem:[#allocation13 + $0x20] ss:$16 sps:$4 sm:$0xff]   ;;  %v10966_v15 = vld [vmem:[#allocation13 + $0x28] ss:$16 sps:$4 sm:$0xff]  }
 0x416   :  { %5272 = vmatpush1.bf16.msra.mxu0 %v10883_v46  ;;  %5641 = vmatpush1.bf16.msra.mxu1 %v10886_v47  ;;  %v10971_v46 = vld [vmem:[#allocation13 + $0x44] ss:$16 sps:$4 sm:$0xff]   ;;  %v10974_v47 = vld [vmem:[#allocation13 + $0x4c] ss:$16 sps:$4 sm:$0xff]  }
 0x417   :  { %5273 = vmatprep.subr.bf16.mxu0 %v10891_v24  ;;  %5642 = vmatprep.subr.bf16.mxu1 %v10894_v49  ;;  %v10972_v24 = vld [vmem:[#allocation13 + $0x48] ss:$16 sps:$4 sm:$0xff]   ;;  %v10977_v49 = vld [vmem:[#allocation13 + $0x64] ss:$16 sps:$4 sm:$0xff]  }
 0x41a   :  { %5274 = vmatpush1.bf16.msra.mxu0 %v10889_v53  ;;  %5643 = vmatpush1.bf16.msra.mxu1 %v10892_v54  ;;  %v10980_v53 = vld [vmem:[#allocation13 + $0x6c] ss:$16 sps:$4 sm:$0xff]   ;;  %v10975_v54 = vld [vmem:[#allocation13 + $0x60] ss:$16 sps:$4 sm:$0xff]  }
 0x41b   :  { %5275 = vmatprep.subr.bf16.mxu0 %v10897_v55  ;;  %5644 = vmatprep.subr.bf16.mxu1 %v10900_v56  ;;  %v10978_v55 = vld [vmem:[#allocation13 + $0x68] ss:$16 sps:$4 sm:$0xff]   ;;  %v10983_v56 = vld [vmem:[#allocation13 + $0x84] ss:$16 sps:$4 sm:$0xff]  }
 0x41e   :  { %5276 = vmatpush1.bf16.msra.mxu0 %v10895_v57  ;;  %5645 = vmatpush1.bf16.msra.mxu1 %v10898_v58  ;;  %v10986_v57 = vld [vmem:[#allocation13 + $0x8c] ss:$16 sps:$4 sm:$0xff]   ;;  %v10981_v58 = vld [vmem:[#allocation13 + $0x80] ss:$16 sps:$4 sm:$0xff]  }
 0x41f   :  { %5277 = vmatprep.subr.bf16.mxu0 %v10903_v39  ;;  %5646 = vmatprep.subr.bf16.mxu1 %v10906_v59  ;;  %v10984_v39 = vld [vmem:[#allocation13 + $0x88] ss:$16 sps:$4 sm:$0xff]   ;;  %v10989_v59 = vld [vmem:[#allocation13 + $0xa4] ss:$16 sps:$4 sm:$0xff]  }
 0x422   :  { %5278 = vmatpush1.bf16.msra.mxu0 %v10901_v60  ;;  %5647 = vmatpush1.bf16.msra.mxu1 %v10904_v61  ;;  %v10992_v60 = vld [vmem:[#allocation13 + $0xac] ss:$16 sps:$4 sm:$0xff]   ;;  %v10987_v61 = vld [vmem:[#allocation13 + $0xa0] ss:$16 sps:$4 sm:$0xff]  }
 0x423   :  { %5279 = vmatprep.subr.bf16.mxu0 %v10909_v62  ;;  %5648 = vmatprep.subr.bf16.mxu1 %v10912_v63  ;;  %v10990_v62 = vld [vmem:[#allocation13 + $0xa8] ss:$16 sps:$4 sm:$0xff]   ;;  %v10995_v63 = vld [vmem:[#allocation13 + $0xc4] ss:$16 sps:$4 sm:$0xff]  }
 0x426   :  { %5280 = vmatpush1.bf16.msra.mxu0 %v10907_v2  ;;  %5649 = vmatpush1.bf16.msra.mxu1 %v10910_v3  ;;  %v10998_v2 = vld [vmem:[#allocation13 + $0xcc] ss:$16 sps:$4 sm:$0xff]   ;;  %v10993_v3 = vld [vmem:[#allocation13 + $0xc0] ss:$16 sps:$4 sm:$0xff]  }
 0x427   :  { %5281 = vmatprep.subr.bf16.mxu0 %v10915_v4  ;;  %5650 = vmatprep.subr.bf16.mxu1 %v10918_v5  ;;  %v10996_v4 = vld [vmem:[#allocation13 + $0xc8] ss:$16 sps:$4 sm:$0xff]   ;;  %v11001_v5 = vld [vmem:[#allocation13 + $0xe4] ss:$16 sps:$4 sm:$0xff]  }
 0x42a   :  { %5282 = vmatpush1.bf16.msra.mxu0 %v10913_v6  ;;  %5651 = vmatpush1.bf16.msra.mxu1 %v10916_v26  ;;  %v11004_v6 = vld [vmem:[#allocation13 + $0xec] ss:$16 sps:$4 sm:$0xff]   ;;  %v10999_v26 = vld [vmem:[#allocation13 + $0xe0] ss:$16 sps:$4 sm:$0xff]  }
 0x42b   :  { %5283 = vmatprep.subr.bf16.mxu0 %v10921_v7  ;;  %5652 = vmatprep.subr.bf16.mxu1 %v10924_v43  ;;  %v11002_v7 = vld [vmem:[#allocation13 + $0xe8] ss:$16 sps:$4 sm:$0xff]   ;;  %v11007_v43 = vld [vmem:[#allocation13 + $0x104] ss:$16 sps:$4 sm:$0xff]  }
 0x42e   :  { %5284 = vmatpush1.bf16.msra.mxu0 %v10919_v9  ;;  %5653 = vmatpush1.bf16.msra.mxu1 %v10922_v10  ;;  %v11010_v9 = vld [vmem:[#allocation13 + $0x10c] ss:$16 sps:$4 sm:$0xff]   ;;  %v11005_v10 = vld [vmem:[#allocation13 + $0x100] ss:$16 sps:$4 sm:$0xff]  }
 0x42f   :  { %5285 = vmatprep.subr.bf16.mxu0 %v10927_v11  ;;  %5654 = vmatprep.subr.bf16.mxu1 %v10930_v13  ;;  %v11008_v11 = vld [vmem:[#allocation13 + $0x108] ss:$16 sps:$4 sm:$0xff]   ;;  %v11013_v13 = vld [vmem:[#allocation13 + $0x124] ss:$16 sps:$4 sm:$0xff]  }
 0x432   :  { %5286 = vmatpush1.bf16.msra.mxu0 %v10925_v14  ;;  %5655 = vmatpush1.bf16.msra.mxu1 %v10928_v0  ;;  %v11016_v14 = vld [vmem:[#allocation13 + $0x12c] ss:$16 sps:$4 sm:$0xff]   ;;  %v11011_v0 = vld [vmem:[#allocation13 + $0x120] ss:$16 sps:$4 sm:$0xff]  }
 0x433   :  { %5287 = vmatprep.subr.bf16.mxu0 %v10933_v16  ;;  %5656 = vmatprep.subr.bf16.mxu1 %v10936_v17  ;;  %v11014_v16 = vld [vmem:[#allocation13 + $0x128] ss:$16 sps:$4 sm:$0xff]   ;;  %v11019_v17 = vld [vmem:[#allocation13 + $0x144] ss:$16 sps:$4 sm:$0xff]  }
 0x436   :  { %5288 = vmatpush1.bf16.msra.mxu0 %v10931_v1  ;;  %5657 = vmatpush1.bf16.msra.mxu1 %v10934_v18  ;;  %v11022_v1 = vld [vmem:[#allocation13 + $0x14c] ss:$16 sps:$4 sm:$0xff]   ;;  %v11017_v18 = vld [vmem:[#allocation13 + $0x140] ss:$16 sps:$4 sm:$0xff]  }
 0x437   :  { %5289 = vmatprep.subr.bf16.mxu0 %v10939_v19  ;;  %5658 = vmatprep.subr.bf16.mxu1 %v10942_v20  ;;  %v11020_v19 = vld [vmem:[#allocation13 + $0x148] ss:$16 sps:$4 sm:$0xff]   ;;  %v11025_v20 = vld [vmem:[#allocation13 + $0x164] ss:$16 sps:$4 sm:$0xff]  }
 0x43a   :  { %5290 = vmatpush1.bf16.msra.mxu0 %v10937_v21  ;;  %5659 = vmatpush1.bf16.msra.mxu1 %v10940_v22  ;;  %v11028_v21 = vld [vmem:[#allocation13 + $0x16c] ss:$16 sps:$4 sm:$0xff]   ;;  %v11023_v22 = vld [vmem:[#allocation13 + $0x160] ss:$16 sps:$4 sm:$0xff]  }
 0x43b   :  { %5291 = vmatprep.subr.bf16.mxu0 %v10945_v23  ;;  %5660 = vmatprep.subr.bf16.mxu1 %v10948_v28  ;;  %v11026_v23 = vld [vmem:[#allocation13 + $0x168] ss:$16 sps:$4 sm:$0xff]   ;;  %v11031_v28 = vld [vmem:[#allocation13 + $0x184] ss:$16 sps:$4 sm:$0xff]  }
 0x43e   :  { %5292 = vmatpush1.bf16.msra.mxu0 %v10943_v29  ;;  %5661 = vmatpush1.bf16.msra.mxu1 %v10946_v30  ;;  %v11034_v29 = vld [vmem:[#allocation13 + $0x18c] ss:$16 sps:$4 sm:$0xff]   ;;  %v11029_v30 = vld [vmem:[#allocation13 + $0x180] ss:$16 sps:$4 sm:$0xff]  }
 0x43f   :  { %5293 = vmatprep.subr.bf16.mxu0 %v10951_v32  ;;  %5662 = vmatprep.subr.bf16.mxu1 %v10954_v12  ;;  %v11032_v32 = vld [vmem:[#allocation13 + $0x188] ss:$16 sps:$4 sm:$0xff]   ;;  %v11037_v12 = vld [vmem:[#allocation13 + $0x1a4] ss:$16 sps:$4 sm:$0xff]  }
 0x442   :  { %5294 = vmatpush1.bf16.msra.mxu0 %v10949_v33  ;;  %5663 = vmatpush1.bf16.msra.mxu1 %v10952_v34  ;;  %v11040_v33 = vld [vmem:[#allocation13 + $0x1ac] ss:$16 sps:$4 sm:$0xff]   ;;  %v11035_v34 = vld [vmem:[#allocation13 + $0x1a0] ss:$16 sps:$4 sm:$0xff]  }
 0x443   :  { %6471 = vmatprep.subr.bf16.mxu0 %v10959_v35  ;;  %6553 = vmatprep.subr.bf16.mxu1 %v10962_v36  ;;  %v11038_v35 = vld [vmem:[#allocation13 + $0x1a8] ss:$16 sps:$4 sm:$0xff]   ;;  %v11043_v36 = vld [vmem:[#allocation13 + $0x1c4] ss:$16 sps:$4 sm:$0xff]  }
 0x445   :  { %5296 = vmatmul.mubr.bf16.vlgmr.msra.gmra.mrb[8].mxu0 %v8787_v37  ;;  %5665 = vmatmul.mubr.bf16.vlgmr.msra.gmra.mrb[8].mxu1 %v8787_v37  ;;  %v11046_v37 = vld [vmem:[#allocation13 + $0x1cc] ss:$16 sps:$4 sm:$0xff]  }
 0x446   :  { %6472 = vmatpush1.bf16.msra.mxu0 %v10957_v40  ;;  %6554 = vmatpush1.bf16.msra.mxu1 %v10960_v41  ;;  %v11041_v40 = vld [vmem:[#allocation13 + $0x1c0] ss:$16 sps:$4 sm:$0xff]   ;;  %v11044_v41 = vld [vmem:[#allocation13 + $0x1c8] ss:$16 sps:$4 sm:$0xff]  }
 0x447   :  { %6473 = vmatprep.subr.bf16.mxu0 %v10965_v42  ;;  %6555 = vmatprep.subr.bf16.mxu1 %v10968_v44  ;;  %v11049_v42 = vld [vmem:[#allocation13 + $0x1e4] ss:$16 sps:$4 sm:$0xff]   ;;  %v11052_v44 = vld [vmem:[#allocation13 + $0x1ec] ss:$16 sps:$4 sm:$0xff]  }
 0x44a   :  { %6474 = vmatpush1.bf16.msra.mxu0 %v10963_v45  ;;  %6556 = vmatpush1.bf16.msra.mxu1 %v10966_v15  ;;  %v11047_v45 = vld [vmem:[#allocation13 + $0x1e0] ss:$16 sps:$4 sm:$0xff]   ;;  %v11050_v15 = vld [vmem:[#allocation13 + $0x1e8] ss:$16 sps:$4 sm:$0xff]  }
 0x44b   :  { %6475 = vmatprep.subr.bf16.mxu0 %v10971_v46  ;;  %6557 = vmatprep.subr.bf16.mxu1 %v10974_v47  ;;  %v11055_v46 = vld [vmem:[#allocation13 + $0x204] ss:$16 sps:$4 sm:$0xff]   ;;  %v11058_v47 = vld [vmem:[#allocation13 + $0x20c] ss:$16 sps:$4 sm:$0xff]  }
 0x44e   :  { %6476 = vmatpush1.bf16.msra.mxu0 %v10969_v8  ;;  %6558 = vmatpush1.bf16.msra.mxu1 %v10972_v24  ;;  %v12225_v8 = vld [vmem:[#allocation11] sm:$0xf] }
 0x44f   :  { %6477 = vmatprep.subr.bf16.mxu0 %v10977_v49  ;;  %6559 = vmatprep.subr.bf16.mxu1 %v10980_v53  ;;  %v1975_v24 = vrot.slane %v12225_v8, %v12111_v25  ;;  %v1979_v49 = vrot.slane %v12225_v8, %v12116_v27  ;;  %v1987_v53 = vrot.slane %v12225_v8, %v12123_v31 }
 0x452   :  { %6478 = vmatpush1.bf16.msra.mxu0 %v10975_v54  ;;  %6560 = vmatpush1.bf16.msra.mxu1 %v10978_v55 }
 0x453   :  { %6479 = vmatprep.subr.bf16.mxu0 %v10983_v56  ;;  %6561 = vmatprep.subr.bf16.mxu1 %v10986_v57 }
 0x456   :  { %6480 = vmatpush1.bf16.msra.mxu0 %v10981_v58  ;;  %6562 = vmatpush1.bf16.msra.mxu1 %v10984_v39 }
 0x457   :  { %6481 = vmatprep.subr.bf16.mxu0 %v10989_v59  ;;  %6563 = vmatprep.subr.bf16.mxu1 %v10992_v60 }
 0x45a   :  { %6482 = vmatpush1.bf16.msra.mxu0 %v10987_v61  ;;  %6564 = vmatpush1.bf16.msra.mxu1 %v10990_v62 }
 0x45b   :  { %6483 = vmatprep.subr.bf16.mxu0 %v10995_v63  ;;  %6565 = vmatprep.subr.bf16.mxu1 %v10998_v2 }
 0x45e   :  { %6484 = vmatpush1.bf16.msra.mxu0 %v10993_v3  ;;  %6566 = vmatpush1.bf16.msra.mxu1 %v10996_v4 }
 0x45f   :  { %6485 = vmatprep.subr.bf16.mxu0 %v11001_v5  ;;  %6567 = vmatprep.subr.bf16.mxu1 %v11004_v6  ;;  %v11053_v6 = vld [vmem:[#allocation13 + $0x200] ss:$16 sps:$4 sm:$0xff]  }
 0x462   :  { %6486 = vmatpush1.bf16.msra.mxu0 %v10999_v26  ;;  %6568 = vmatpush1.bf16.msra.mxu1 %v11002_v7  ;;  %v11056_v26 = vld [vmem:[#allocation13 + $0x208] ss:$16 sps:$4 sm:$0xff]  }
 0x463   :  { %6487 = vmatprep.subr.bf16.mxu0 %v11007_v43  ;;  %6569 = vmatprep.subr.bf16.mxu1 %v11010_v9  ;;  %v11061_v43 = vld [vmem:[#allocation13 + $0x224] ss:$16 sps:$4 sm:$0xff]   ;;  %v11064_v9 = vld [vmem:[#allocation13 + $0x22c] ss:$16 sps:$4 sm:$0xff]  }
 0x466   :  { %6488 = vmatpush1.bf16.msra.mxu0 %v11005_v10  ;;  %6570 = vmatpush1.bf16.msra.mxu1 %v11008_v11  ;;  %v11059_v11 = vld [vmem:[#allocation13 + $0x220] ss:$16 sps:$4 sm:$0xff]  }
 0x467   :  { %6489 = vmatprep.subr.bf16.mxu0 %v11013_v13  ;;  %6571 = vmatprep.subr.bf16.mxu1 %v11016_v14  ;;  %v11062_v13 = vld [vmem:[#allocation13 + $0x228] ss:$16 sps:$4 sm:$0xff]  }
 0x468   :  { %v6895_v14 = vld [vmem:[%s12325_s2] sm:$0xff] }
 0x469   :  { %6899 = vperm.xlu0 %9858, %v6895_v14  }
 0x46a   :  { %6490 = vmatpush1.bf16.msra.mxu0 %v11011_v0  ;;  %6572 = vmatpush1.bf16.msra.mxu1 %v11014_v16  ;;  %v11067_v0 = vld [vmem:[#allocation13 + $0x244] ss:$16 sps:$4 sm:$0xff]   ;;  %v11070_v16 = vld [vmem:[#allocation13 + $0x24c] ss:$16 sps:$4 sm:$0xff]  }
 0x46b   :  { %6491 = vmatprep.subr.bf16.mxu0 %v11019_v17  ;;  %6573 = vmatprep.subr.bf16.mxu1 %v11022_v1  ;;  %v11065_v17 = vld [vmem:[#allocation13 + $0x240] ss:$16 sps:$4 sm:$0xff]   ;;  %v11068_v1 = vld [vmem:[#allocation13 + $0x248] ss:$16 sps:$4 sm:$0xff]  }
 0x46e   :  { %6492 = vmatpush1.bf16.msra.mxu0 %v11017_v18  ;;  %6574 = vmatpush1.bf16.msra.mxu1 %v11020_v19  ;;  %v11073_v18 = vld [vmem:[#allocation13 + $0x264] ss:$16 sps:$4 sm:$0xff]   ;;  %v11076_v19 = vld [vmem:[#allocation13 + $0x26c] ss:$16 sps:$4 sm:$0xff]  }
 0x46f   :  { %6493 = vmatprep.subr.bf16.mxu0 %v11025_v20  ;;  %6575 = vmatprep.subr.bf16.mxu1 %v11028_v21  ;;  %v11071_v20 = vld [vmem:[#allocation13 + $0x260] ss:$16 sps:$4 sm:$0xff]   ;;  %v11074_v21 = vld [vmem:[#allocation13 + $0x268] ss:$16 sps:$4 sm:$0xff]  }
 0x472   :  { %6494 = vmatpush1.bf16.msra.mxu0 %v11023_v22  ;;  %6576 = vmatpush1.bf16.msra.mxu1 %v11026_v23  ;;  %v11079_v22 = vld [vmem:[#allocation13 + $0x284] ss:$16 sps:$4 sm:$0xff]   ;;  %v11082_v23 = vld [vmem:[#allocation13 + $0x28c] ss:$16 sps:$4 sm:$0xff]  }
 0x473   :  { %6495 = vmatprep.subr.bf16.mxu0 %v11031_v28  ;;  %6577 = vmatprep.subr.bf16.mxu1 %v11034_v29  ;;  %v11077_v28 = vld [vmem:[#allocation13 + $0x280] ss:$16 sps:$4 sm:$0xff]   ;;  %v11080_v29 = vld [vmem:[#allocation13 + $0x288] ss:$16 sps:$4 sm:$0xff]  }
 0x476   :  { %6496 = vmatpush1.bf16.msra.mxu0 %v11029_v30  ;;  %6578 = vmatpush1.bf16.msra.mxu1 %v11032_v32  ;;  %v11085_v30 = vld [vmem:[#allocation13 + $0x2a4] ss:$16 sps:$4 sm:$0xff]   ;;  %v11088_v32 = vld [vmem:[#allocation13 + $0x2ac] ss:$16 sps:$4 sm:$0xff]  }
 0x477   :  { %6497 = vmatprep.subr.bf16.mxu0 %v11037_v12  ;;  %6579 = vmatprep.subr.bf16.mxu1 %v11040_v33  ;;  %v11083_v12 = vld [vmem:[#allocation13 + $0x2a0] ss:$16 sps:$4 sm:$0xff]   ;;  %v11086_v33 = vld [vmem:[#allocation13 + $0x2a8] ss:$16 sps:$4 sm:$0xff]  }
 0x47a   :  { %6498 = vmatpush1.bf16.msra.mxu0 %v11035_v34  ;;  %6580 = vmatpush1.bf16.msra.mxu1 %v11038_v35  ;;  %v11091_v34 = vld [vmem:[#allocation13 + $0x2c4] ss:$16 sps:$4 sm:$0xff]   ;;  %v11094_v35 = vld [vmem:[#allocation13 + $0x2cc] ss:$16 sps:$4 sm:$0xff]  }
 0x47b   :  { %6499 = vmatprep.subr.bf16.mxu0 %v11043_v36  ;;  %6581 = vmatprep.subr.bf16.mxu1 %v11046_v37  ;;  %v11089_v36 = vld [vmem:[#allocation13 + $0x2c0] ss:$16 sps:$4 sm:$0xff]   ;;  %v11092_v37 = vld [vmem:[#allocation13 + $0x2c8] ss:$16 sps:$4 sm:$0xff]  }
 0x47e   :  { %6500 = vmatpush1.bf16.msra.mxu0 %v11041_v40  ;;  %6582 = vmatpush1.bf16.msra.mxu1 %v11044_v41  ;;  %v11097_v40 = vld [vmem:[#allocation13 + $0x2e4] ss:$16 sps:$4 sm:$0xff]   ;;  %v11100_v41 = vld [vmem:[#allocation13 + $0x2ec] ss:$16 sps:$4 sm:$0xff]  }
 0x47f   :  { %6501 = vmatprep.subr.bf16.mxu0 %v11049_v42  ;;  %6583 = vmatprep.subr.bf16.mxu1 %v11052_v44  ;;  %v11095_v42 = vld [vmem:[#allocation13 + $0x2e0] ss:$16 sps:$4 sm:$0xff]   ;;  %v11098_v44 = vld [vmem:[#allocation13 + $0x2e8] ss:$16 sps:$4 sm:$0xff]  }
 0x482   :  { %6502 = vmatpush1.bf16.msra.mxu0 %v11047_v45  ;;  %6584 = vmatpush1.bf16.msra.mxu1 %v11050_v15  ;;  %v11103_v45 = vld [vmem:[#allocation13 + $0x304] ss:$16 sps:$4 sm:$0xff]   ;;  %v11106_v15 = vld [vmem:[#allocation13 + $0x30c] ss:$16 sps:$4 sm:$0xff]  }
 0x483   :  { %6512 = vmatprep.subr.bf16.mxu0 %v11055_v46  ;;  %6594 = vmatprep.subr.bf16.mxu1 %v11058_v47  ;;  %v11101_v46 = vld [vmem:[#allocation13 + $0x300] ss:$16 sps:$4 sm:$0xff]   ;;  %v11104_v47 = vld [vmem:[#allocation13 + $0x308] ss:$16 sps:$4 sm:$0xff]  }
 0x518   :  { %v5297_v54 = vpop.f32.mrb[8].mxu0  ;;  %v12233_v55 = vpop.f32.mrb[8].mxu1 }
 0x519   :  { %v9755_v56 = vadd.f32 %v5297_v54, %v1975_v24  ;;  %v5299_v57 = vpop.f32.mrb[9].mxu0  ;;  %v5668_v58 = vpop.f32.mrb[9].mxu1  ;;  %v11109_v24 = vld [vmem:[#allocation13 + $0x324] ss:$16 sps:$4 sm:$0xff]   ;;  %v11110_v54 = vld [vmem:[#allocation13 + $0x328] ss:$16 sps:$4 sm:$0xff]  }
 0x51a   :  { %v9756_v39 = vadd.f32 %v5299_v57, %v1979_v49  ;;  %v9758_v59 = vadd.f32 %v5668_v58, %v1987_v53  ;;  %v5301_v60 = vpop.f32.mrb[10].mxu0  ;;  %v5670_v61 = vpop.f32.mrb[10].mxu1  ;;  %v11112_v49 = vld [vmem:[#allocation13 + $0x32c] ss:$16 sps:$4 sm:$0xff]   ;;  %v11107_v53 = vld [vmem:[#allocation13 + $0x320] ss:$16 sps:$4 sm:$0xff]  }
 0x51b   :  { %v5673_v62 = vmax.f32 %v9755_v56, 0.0  ;;  %v5302_v63 = vpop.f32.mrb[11].mxu0  ;;  %v5671_v2 = vpop.f32.mrb[11].mxu1  ;;  %v11115_v56 = vld [vmem:[#allocation13 + $0x344] ss:$16 sps:$4 sm:$0xff]  }
 0x51c   :  { %v5674_v3 = vmax.f32 %v9756_v39, 0.0  ;;  %v5676_v4 = vmax.f32 %v9758_v59, 0.0  ;;  %v11118_v57 = vld [vmem:[#allocation13 + $0x34c] ss:$16 sps:$4 sm:$0xff]   ;;  %v11113_v58 = vld [vmem:[#allocation13 + $0x340] ss:$16 sps:$4 sm:$0xff]  }
 0x51d   :  { %v5677_v7 = vpack.c.bf16 %v5673_v62, %v5673_v62  ;;  %v11116_v39 = vld [vmem:[#allocation13 + $0x348] ss:$16 sps:$4 sm:$0xff]   ;;  %v11121_v59 = vld [vmem:[#allocation13 + $0x364] ss:$16 sps:$4 sm:$0xff]   ;;  %v11124_v60 = vld [vmem:[#allocation13 + $0x36c] ss:$16 sps:$4 sm:$0xff]  }
 0x51e   :  { %v5678_v5 = vpack.c.bf16 %v5674_v3, %v5674_v3  ;;  %v5680_v10 = vpack.c.bf16 %v5676_v4, %v5676_v4  ;;  %v11119_v61 = vld [vmem:[#allocation13 + $0x360] ss:$16 sps:$4 sm:$0xff]   ;;  %v11122_v62 = vld [vmem:[#allocation13 + $0x368] ss:$16 sps:$4 sm:$0xff]   ;;  %v11127_v63 = vld [vmem:[#allocation13 + $0x384] ss:$16 sps:$4 sm:$0xff]  }
 0x51f   :  { %v11130_v2 = vld [vmem:[#allocation13 + $0x38c] ss:$16 sps:$4 sm:$0xff]   ;;  %v11125_v3 = vld [vmem:[#allocation13 + $0x380] ss:$16 sps:$4 sm:$0xff]   ;;  %v11128_v4 = vld [vmem:[#allocation13 + $0x388] ss:$16 sps:$4 sm:$0xff]  }
 0x520   :  { %6503 = vmatprep.mubr.bf16.mxu0 %v5678_v5  ;;  %6585 = vmatprep.mubr.bf16.mxu1 %v5678_v5  ;;  %v11133_v5 = vld [vmem:[#allocation13 + $0x3a4] ss:$16 sps:$4 sm:$0xff]  }
 0x521   :  { %6504 = vmatmul.mubr.bf16.vlgmr.msra.gmra.mrb[12].mxu0 %v5677_v7  ;;  %6586 = vmatmul.mubr.bf16.vlgmr.msra.gmra.mrb[12].mxu1 %v5677_v7  ;;  %v11134_v7 = vld [vmem:[#allocation13 + $0x3a8] ss:$16 sps:$4 sm:$0xff]  }
 0x522   :  { %6513 = vmatpush1.bf16.msra.mxu0 %v11053_v6  ;;  %6595 = vmatpush1.bf16.msra.mxu1 %v11056_v26  ;;  %v11136_v6 = vld [vmem:[#allocation13 + $0x3ac] ss:$16 sps:$4 sm:$0xff]   ;;  %v11131_v26 = vld [vmem:[#allocation13 + $0x3a0] ss:$16 sps:$4 sm:$0xff]  }
 0x523   :  { %6544 = vmatprep.mubr.bf16.mxu0 %v5680_v10  ;;  %6626 = vmatprep.mubr.bf16.mxu1 %v5680_v10  ;;  %v11142_v10 = vld [vmem:[#allocation13 + $0x3cc] ss:$16 sps:$4 sm:$0xff]  }
 0x524   :  { %6514 = vmatprep.subr.bf16.mxu0 %v11061_v43  ;;  %6596 = vmatprep.subr.bf16.mxu1 %v11064_v9  ;;  %v1983_v43 = vrot.slane %v12225_v8, %v12130_v38  ;;  %v11139_v9 = vld [vmem:[#allocation13 + $0x3c4] ss:$16 sps:$4 sm:$0xff]  }
 0x526   :  { %6515 = vmatpush1.bf16.msra.mxu0 %v11059_v11  ;;  %6597 = vmatpush1.bf16.msra.mxu1 %v11062_v13  ;;  %v11137_v11 = vld [vmem:[#allocation13 + $0x3c0] ss:$16 sps:$4 sm:$0xff]   ;;  %v11140_v13 = vld [vmem:[#allocation13 + $0x3c8] ss:$16 sps:$4 sm:$0xff]   ;;  %v9757_v14 = vadd.f32 %v12233_v55, %v1983_v43  ;;  %v11206_v43 = vld [vmem:[#allocation16 + $0x320] ss:$16 sps:$4 sm:$0xff]  }
 0x527   :  { %6516 = vmatprep.subr.bf16.mxu0 %v11067_v0  ;;  %6598 = vmatprep.subr.bf16.mxu1 %v11070_v16  ;;  %v11145_v0 = vld [vmem:[#allocation13 + $0x3e4] ss:$16 sps:$4 sm:$0xff]   ;;  %v11148_v16 = vld [vmem:[#allocation13 + $0x3ec] ss:$16 sps:$4 sm:$0xff]   ;;  %v11151_v55 = vld [vmem:[#allocation16 + $0x4] ss:$16 sps:$4 sm:$0xff]  }
 0x52a   :  { %6517 = vmatpush1.bf16.msra.mxu0 %v11065_v17  ;;  %6599 = vmatpush1.bf16.msra.mxu1 %v11068_v1  ;;  %v12241_v17 = vld [vmem:[#allocation8] sm:$0xf] }
 0x52b   :  { %6518 = vmatprep.subr.bf16.mxu0 %v11073_v18  ;;  %6600 = vmatprep.subr.bf16.mxu1 %v11076_v19  ;;  %v564_v1 = vrot.slane %v12241_v17, %v12116_v27  ;;  %v572_v8 = vrot.slane %v12241_v17, %v12123_v31  ;;  %v11143_v18 = vld [vmem:[#allocation13 + $0x3e0] ss:$16 sps:$4 sm:$0xff]   ;;  %v11146_v19 = vld [vmem:[#allocation13 + $0x3e8] ss:$16 sps:$4 sm:$0xff]  }
 0x52e   :  { %6519 = vmatpush1.bf16.msra.mxu0 %v11071_v20  ;;  %6601 = vmatpush1.bf16.msra.mxu1 %v11074_v21  ;;  %v5675_v20 = vmax.f32 %v9757_v14, 0.0  ;;  %v11154_v21 = vld [vmem:[#allocation16 + $0x204] ss:$16 sps:$4 sm:$0xff]  }
 0x52f   :  { %6520 = vmatprep.subr.bf16.mxu0 %v11079_v22  ;;  %6602 = vmatprep.subr.bf16.mxu1 %v11082_v23  ;;  %v9752_v22 = vadd.f32 %v12174_v51, %v564_v1  ;;  %v9754_v23 = vadd.f32 %v12176_v52, %v572_v8  ;;  %v11155_v51 = vld [vmem:[#allocation16 + $0x20] ss:$16 sps:$4 sm:$0xff]   ;;  %v11217_v14 = vld [vmem:[#allocation16 + $0x164] ss:$16 sps:$4 sm:$0xff]  }
 0x530   :  { %v11158_v52 = vld [vmem:[#allocation16 + $0x220] ss:$16 sps:$4 sm:$0xff]   ;;  %v11223_v8 = vld [vmem:[#allocation16 + $0x184] ss:$16 sps:$4 sm:$0xff]  }
 0x531   :  { %v11218_v1 = vld [vmem:[#allocation16 + $0x360] ss:$16 sps:$4 sm:$0xff]  }
 0x532   :  { %6521 = vmatpush1.bf16.msra.mxu0 %v11077_v28  ;;  %6603 = vmatpush1.bf16.msra.mxu1 %v11080_v29  ;;  %v11149_v28 = vld [vmem:[#allocation16] ss:$16 sps:$4 sm:$0xff]   ;;  %v5679_v29 = vpack.c.bf16 %v5675_v20, %v5675_v20 }
 0x533   :  { %6522 = vmatprep.subr.bf16.mxu0 %v11085_v30  ;;  %6604 = vmatprep.subr.bf16.mxu1 %v11088_v32  ;;  %v11152_v30 = vld [vmem:[#allocation16 + $0x200] ss:$16 sps:$4 sm:$0xff]   ;;  %v12249_v32 = vpack.c.bf16 %v9752_v22, %v9752_v22 }
 0x534   :  { %v11224_v20 = vld [vmem:[#allocation16 + $0x380] ss:$16 sps:$4 sm:$0xff]  }
 0x535   :  { %v11227_v22 = vld [vmem:[#allocation16 + $0x1a0] ss:$16 sps:$4 sm:$0xff]  }
 0x536   :  { %6523 = vmatpush1.bf16.msra.mxu0 %v11083_v12  ;;  %6605 = vmatpush1.bf16.msra.mxu1 %v11086_v33  ;;  %v11157_v12 = vld [vmem:[#allocation16 + $0x24] ss:$16 sps:$4 sm:$0xff]  }
 0x537   :  { %6524 = vmatprep.subr.bf16.mxu0 %v11091_v34  ;;  %6606 = vmatprep.subr.bf16.mxu1 %v11094_v35  ;;  %v11160_v33 = vld [vmem:[#allocation16 + $0x224] ss:$16 sps:$4 sm:$0xff]   ;;  %v12251_v34 = vpack.c.bf16 %v9754_v23, %v9754_v23  ;;  %v11230_v23 = vld [vmem:[#allocation16 + $0x3a0] ss:$16 sps:$4 sm:$0xff]  }
 0x538   :  { %v11163_v35 = vld [vmem:[#allocation16 + $0x44] ss:$16 sps:$4 sm:$0xff]  }
 0x53a   :  { %6525 = vmatpush1.bf16.msra.mxu0 %v11089_v36  ;;  %6607 = vmatpush1.bf16.msra.mxu1 %v11092_v37  ;;  %v11166_v36 = vld [vmem:[#allocation16 + $0x244] ss:$16 sps:$4 sm:$0xff]   ;;  %v11161_v37 = vld [vmem:[#allocation16 + $0x40] ss:$16 sps:$4 sm:$0xff]  }
 0x53b   :  { %6526 = vmatprep.subr.bf16.mxu0 %v11097_v40  ;;  %6608 = vmatprep.subr.bf16.mxu1 %v11100_v41  ;;  %v11164_v40 = vld [vmem:[#allocation16 + $0x240] ss:$16 sps:$4 sm:$0xff]   ;;  %v11169_v41 = vld [vmem:[#allocation16 + $0x64] ss:$16 sps:$4 sm:$0xff]  }
 0x53e   :  { %6527 = vmatpush1.bf16.msra.mxu0 %v11095_v42  ;;  %6609 = vmatpush1.bf16.msra.mxu1 %v11098_v44  ;;  %v11172_v42 = vld [vmem:[#allocation16 + $0x264] ss:$16 sps:$4 sm:$0xff]   ;;  %v11167_v44 = vld [vmem:[#allocation16 + $0x60] ss:$16 sps:$4 sm:$0xff]  }
 0x53f   :  { %6528 = vmatprep.subr.bf16.mxu0 %v11103_v45  ;;  %6610 = vmatprep.subr.bf16.mxu1 %v11106_v15  ;;  %v11170_v45 = vld [vmem:[#allocation16 + $0x260] ss:$16 sps:$4 sm:$0xff]   ;;  %v11175_v15 = vld [vmem:[#allocation16 + $0x84] ss:$16 sps:$4 sm:$0xff]  }
 0x542   :  { %6529 = vmatpush1.bf16.msra.mxu0 %v11101_v46  ;;  %6611 = vmatpush1.bf16.msra.mxu1 %v11104_v47  ;;  %v11178_v46 = vld [vmem:[#allocation16 + $0x284] ss:$16 sps:$4 sm:$0xff]   ;;  %v11173_v47 = vld [vmem:[#allocation16 + $0x80] ss:$16 sps:$4 sm:$0xff]  }
 0x543   :  { %6530 = vmatprep.subr.bf16.mxu0 %v11109_v24  ;;  %6612 = vmatprep.subr.bf16.mxu1 %v11112_v49  ;;  %v11176_v24 = vld [vmem:[#allocation16 + $0x280] ss:$16 sps:$4 sm:$0xff]   ;;  %v11181_v49 = vld [vmem:[#allocation16 + $0xa4] ss:$16 sps:$4 sm:$0xff]  }
 0x546   :  { %6531 = vmatpush1.bf16.msra.mxu0 %v11107_v53  ;;  %6613 = vmatpush1.bf16.msra.mxu1 %v11110_v54  ;;  %v11184_v53 = vld [vmem:[#allocation16 + $0x2a4] ss:$16 sps:$4 sm:$0xff]   ;;  %v11179_v54 = vld [vmem:[#allocation16 + $0xa0] ss:$16 sps:$4 sm:$0xff]  }
 0x547   :  { %6532 = vmatprep.subr.bf16.mxu0 %v11115_v56  ;;  %6614 = vmatprep.subr.bf16.mxu1 %v11118_v57  ;;  %v11182_v56 = vld [vmem:[#allocation16 + $0x2a0] ss:$16 sps:$4 sm:$0xff]   ;;  %v11187_v57 = vld [vmem:[#allocation16 + $0xc4] ss:$16 sps:$4 sm:$0xff]  }
 0x54a   :  { %6533 = vmatpush1.bf16.msra.mxu0 %v11113_v58  ;;  %6615 = vmatpush1.bf16.msra.mxu1 %v11116_v39  ;;  %v11190_v58 = vld [vmem:[#allocation16 + $0x2c4] ss:$16 sps:$4 sm:$0xff]   ;;  %v11185_v39 = vld [vmem:[#allocation16 + $0xc0] ss:$16 sps:$4 sm:$0xff]  }
 0x54b   :  { %6534 = vmatprep.subr.bf16.mxu0 %v11121_v59  ;;  %6616 = vmatprep.subr.bf16.mxu1 %v11124_v60  ;;  %v11188_v59 = vld [vmem:[#allocation16 + $0x2c0] ss:$16 sps:$4 sm:$0xff]   ;;  %v11193_v60 = vld [vmem:[#allocation16 + $0xe4] ss:$16 sps:$4 sm:$0xff]  }
 0x54e   :  { %6535 = vmatpush1.bf16.msra.mxu0 %v11119_v61  ;;  %6617 = vmatpush1.bf16.msra.mxu1 %v11122_v62  ;;  %v11196_v61 = vld [vmem:[#allocation16 + $0x2e4] ss:$16 sps:$4 sm:$0xff]   ;;  %v11191_v62 = vld [vmem:[#allocation16 + $0xe0] ss:$16 sps:$4 sm:$0xff]  }
 0x54f   :  { %6536 = vmatprep.subr.bf16.mxu0 %v11127_v63  ;;  %6618 = vmatprep.subr.bf16.mxu1 %v11130_v2  ;;  %v11194_v63 = vld [vmem:[#allocation16 + $0x2e0] ss:$16 sps:$4 sm:$0xff]   ;;  %v11199_v2 = vld [vmem:[#allocation16 + $0x104] ss:$16 sps:$4 sm:$0xff]  }
 0x552   :  { %6537 = vmatpush1.bf16.msra.mxu0 %v11125_v3  ;;  %6619 = vmatpush1.bf16.msra.mxu1 %v11128_v4  ;;  %v11202_v3 = vld [vmem:[#allocation16 + $0x304] ss:$16 sps:$4 sm:$0xff]   ;;  %v11197_v4 = vld [vmem:[#allocation16 + $0x100] ss:$16 sps:$4 sm:$0xff]  }
 0x553   :  { %6538 = vmatprep.subr.bf16.mxu0 %v11133_v5  ;;  %6620 = vmatprep.subr.bf16.mxu1 %v11136_v6  ;;  %v11200_v5 = vld [vmem:[#allocation16 + $0x300] ss:$16 sps:$4 sm:$0xff]   ;;  %v11205_v6 = vld [vmem:[#allocation16 + $0x124] ss:$16 sps:$4 sm:$0xff]  }
 0x556   :  { %6539 = vmatpush1.bf16.msra.mxu0 %v11131_v26  ;;  %6621 = vmatpush1.bf16.msra.mxu1 %v11134_v7  ;;  %v11208_v26 = vld [vmem:[#allocation16 + $0x324] ss:$16 sps:$4 sm:$0xff]   ;;  %v11203_v7 = vld [vmem:[#allocation16 + $0x120] ss:$16 sps:$4 sm:$0xff]  }
 0x557   :  { %6540 = vmatprep.subr.bf16.mxu0 %v11139_v9  ;;  %6622 = vmatprep.subr.bf16.mxu1 %v11142_v10  ;;  %v11211_v9 = vld [vmem:[#allocation16 + $0x144] ss:$16 sps:$4 sm:$0xff]  }
 0x558   :  { %v11214_v10 = vld [vmem:[#allocation16 + $0x344] ss:$16 sps:$4 sm:$0xff]  }
 0x55a   :  { %6541 = vmatpush1.bf16.msra.mxu0 %v11137_v11  ;;  %6623 = vmatpush1.bf16.msra.mxu1 %v11140_v13  ;;  %v11209_v11 = vld [vmem:[#allocation16 + $0x140] ss:$16 sps:$4 sm:$0xff]  }
 0x55b   :  { %6542 = vmatprep.subr.bf16.mxu0 %v11145_v0  ;;  %6624 = vmatprep.subr.bf16.mxu1 %v11148_v16  ;;  %v11212_v13 = vld [vmem:[#allocation16 + $0x340] ss:$16 sps:$4 sm:$0xff]   ;;  %v11220_v0 = vld [vmem:[#allocation16 + $0x364] ss:$16 sps:$4 sm:$0xff]  }
 0x55c   :  { %v11215_v16 = vld [vmem:[#allocation16 + $0x160] ss:$16 sps:$4 sm:$0xff]  }
 0x55e   :  { %6543 = vmatpush1.bf16.msra.mxu0 %v11143_v18  ;;  %6625 = vmatpush1.bf16.msra.mxu1 %v11146_v19  ;;  %v11226_v18 = vld [vmem:[#allocation16 + $0x384] ss:$16 sps:$4 sm:$0xff]   ;;  %v11221_v19 = vld [vmem:[#allocation16 + $0x180] ss:$16 sps:$4 sm:$0xff]  }
 0x55f   :  { %8207 = vmatprep.subr.bf16.mxu0 %v11151_v55  ;;  %8248 = vmatprep.subr.bf16.mxu1 %v11154_v21  ;;  %v11229_v55 = vld [vmem:[#allocation16 + $0x1a4] ss:$16 sps:$4 sm:$0xff]  }
 0x560   :  { %v11232_v21 = vld [vmem:[#allocation16 + $0x3a4] ss:$16 sps:$4 sm:$0xff]  }
 0x561   :  { %6545 = vmatmul.mubr.bf16.vlgmr.msra.gmra.mrb[12].mxu0 %v5679_v29  ;;  %6627 = vmatmul.mubr.bf16.vlgmr.msra.gmra.mrb[12].mxu1 %v5679_v29  ;;  %v11238_v29 = vld [vmem:[#allocation16 + $0x3c4] ss:$16 sps:$4 sm:$0xff]  }
 0x562   :  { %8208 = vmatpush1.bf16.msra.mxu0 %v11149_v28  ;;  %8239 = vmatprep.mubr.bf16.mxu0 %v12249_v32  ;;  %v11235_v28 = vld [vmem:[#allocation16 + $0x1c4] ss:$16 sps:$4 sm:$0xff]  }
 0x563   :  { %8249 = vmatpush1.bf16.msra.mxu1 %v11152_v30  ;;  %8280 = vmatprep.mubr.bf16.mxu1 %v12251_v34  ;;  %v11233_v30 = vld [vmem:[#allocation16 + $0x1c0] ss:$16 sps:$4 sm:$0xff]  }
 0x564   :  { %8209 = vmatprep.subr.bf16.mxu0 %v11157_v12  ;;  %8250 = vmatprep.subr.bf16.mxu1 %v11160_v33  ;;  %v560_v12 = vrot.slane %v12241_v17, %v12111_v25  ;;  %v11236_v33 = vld [vmem:[#allocation16 + $0x3c0] ss:$16 sps:$4 sm:$0xff]  }
 0x565   :  { %v11248_v17 = vld [vmem:[#allocation16 + $0x600] ss:$16 sps:$4 sm:$0xff]  }
 0x566   :  { %8210 = vmatpush1.bf16.msra.mxu0 %v11155_v51  ;;  %v11241_v51 = vld [vmem:[#allocation16 + $0x1e4] ss:$16 sps:$4 sm:$0xff]  }
 0x567   :  { %8251 = vmatpush1.bf16.msra.mxu1 %v11158_v52  ;;  %8211 = vmatprep.subr.bf16.mxu0 %v11163_v35  ;;  %v11244_v52 = vld [vmem:[#allocation16 + $0x3e4] ss:$16 sps:$4 sm:$0xff]   ;;  %v11239_v35 = vld [vmem:[#allocation16 + $0x1e0] ss:$16 sps:$4 sm:$0xff]  }
 0x568   :  { %8252 = vmatprep.subr.bf16.mxu1 %v11166_v36  ;;  %v9751_v36 = vadd.f32 %v12170_v48, %v560_v12  ;;  %v11256_v48 = vld [vmem:[#allocation16 + $0x624] ss:$16 sps:$4 sm:$0xff]  }
 0x569   :  { %v11322_v12 = vld [vmem:[#allocation16 + $0x784] ss:$16 sps:$4 sm:$0xff]  }
 0x56a   :  { %8212 = vmatpush1.bf16.msra.mxu0 %v11161_v37  ;;  %v11242_v37 = vld [vmem:[#allocation16 + $0x3e0] ss:$16 sps:$4 sm:$0xff]  }
 0x56b   :  { %8253 = vmatpush1.bf16.msra.mxu1 %v11164_v40  ;;  %8213 = vmatprep.subr.bf16.mxu0 %v11169_v41  ;;  %v11247_v40 = vld [vmem:[#allocation16 + $0x404] ss:$16 sps:$4 sm:$0xff]  }
 0x56c   :  { %8254 = vmatprep.subr.bf16.mxu1 %v11172_v42  ;;  %v11250_v41 = vld [vmem:[#allocation16 + $0x604] ss:$16 sps:$4 sm:$0xff]   ;;  %v11245_v42 = vld [vmem:[#allocation16 + $0x400] ss:$16 sps:$4 sm:$0xff]  }
 0x56e   :  { %8214 = vmatpush1.bf16.msra.mxu0 %v11167_v44  ;;  %v12258_v44 = vpack.c.bf16 %v9751_v36, %v9751_v36  ;;  %v11323_v36 = vld [vmem:[#allocation16 + $0x5a0] ss:$16 sps:$4 sm:$0xff]  }
 0x56f   :  { %8255 = vmatpush1.bf16.msra.mxu1 %v11170_v45  ;;  %8215 = vmatprep.subr.bf16.mxu0 %v11175_v15  ;;  %v11253_v45 = vld [vmem:[#allocation16 + $0x424] ss:$16 sps:$4 sm:$0xff]   ;;  %v12262_v15 = vpack.c.bf16 %v12172_v50, %v12172_v50  ;;  %v11260_v50 = vld [vmem:[#allocation16 + $0x640] ss:$16 sps:$4 sm:$0xff]  }
 0x570   :  { %8256 = vmatprep.subr.bf16.mxu1 %v11178_v46  ;;  %v11251_v46 = vld [vmem:[#allocation16 + $0x420] ss:$16 sps:$4 sm:$0xff]  }
 0x572   :  { %8216 = vmatpush1.bf16.msra.mxu0 %v11173_v47  ;;  %v11254_v47 = vld [vmem:[#allocation16 + $0x620] ss:$16 sps:$4 sm:$0xff]  }
 0x573   :  { %8257 = vmatpush1.bf16.msra.mxu1 %v11176_v24  ;;  %8217 = vmatprep.subr.bf16.mxu0 %v11181_v49  ;;  %v11259_v24 = vld [vmem:[#allocation16 + $0x444] ss:$16 sps:$4 sm:$0xff]  }
 0x574   :  { %8258 = vmatprep.subr.bf16.mxu1 %v11184_v53  ;;  %v11262_v49 = vld [vmem:[#allocation16 + $0x644] ss:$16 sps:$4 sm:$0xff]   ;;  %v11257_v53 = vld [vmem:[#allocation16 + $0x440] ss:$16 sps:$4 sm:$0xff]  }
 0x576   :  { %8218 = vmatpush1.bf16.msra.mxu0 %v11179_v54  ;;  %v11265_v54 = vld [vmem:[#allocation16 + $0x464] ss:$16 sps:$4 sm:$0xff]  }
 0x577   :  { %8259 = vmatpush1.bf16.msra.mxu1 %v11182_v56  ;;  %8219 = vmatprep.subr.bf16.mxu0 %v11187_v57  ;;  %v11268_v56 = vld [vmem:[#allocation16 + $0x664] ss:$16 sps:$4 sm:$0xff]   ;;  %v11263_v57 = vld [vmem:[#allocation16 + $0x460] ss:$16 sps:$4 sm:$0xff]  }
 0x578   :  { %8260 = vmatprep.subr.bf16.mxu1 %v11190_v58  ;;  %v11266_v58 = vld [vmem:[#allocation16 + $0x660] ss:$16 sps:$4 sm:$0xff]  }
 0x57a   :  { %8220 = vmatpush1.bf16.msra.mxu0 %v11185_v39  ;;  %v11271_v39 = vld [vmem:[#allocation16 + $0x484] ss:$16 sps:$4 sm:$0xff]  }
 0x57b   :  { %8261 = vmatpush1.bf16.msra.mxu1 %v11188_v59  ;;  %8221 = vmatprep.subr.bf16.mxu0 %v11193_v60  ;;  %v11274_v59 = vld [vmem:[#allocation16 + $0x684] ss:$16 sps:$4 sm:$0xff]   ;;  %v11269_v60 = vld [vmem:[#allocation16 + $0x480] ss:$16 sps:$4 sm:$0xff]  }
 0x57c   :  { %8262 = vmatprep.subr.bf16.mxu1 %v11196_v61  ;;  %v11272_v61 = vld [vmem:[#allocation16 + $0x680] ss:$16 sps:$4 sm:$0xff]  }
 0x57e   :  { %8222 = vmatpush1.bf16.msra.mxu0 %v11191_v62  ;;  %v11277_v62 = vld [vmem:[#allocation16 + $0x4a4] ss:$16 sps:$4 sm:$0xff]  }
 0x57f   :  { %8263 = vmatpush1.bf16.msra.mxu1 %v11194_v63  ;;  %8223 = vmatprep.subr.bf16.mxu0 %v11199_v2  ;;  %v11280_v63 = vld [vmem:[#allocation16 + $0x6a4] ss:$16 sps:$4 sm:$0xff]   ;;  %v11275_v2 = vld [vmem:[#allocation16 + $0x4a0] ss:$16 sps:$4 sm:$0xff]  }
 0x580   :  { %8264 = vmatprep.subr.bf16.mxu1 %v11202_v3  ;;  %v11278_v3 = vld [vmem:[#allocation16 + $0x6a0] ss:$16 sps:$4 sm:$0xff]  }
 0x582   :  { %8224 = vmatpush1.bf16.msra.mxu0 %v11197_v4  ;;  %v11283_v4 = vld [vmem:[#allocation16 + $0x4c4] ss:$16 sps:$4 sm:$0xff]  }
 0x583   :  { %8265 = vmatpush1.bf16.msra.mxu1 %v11200_v5  ;;  %8225 = vmatprep.subr.bf16.mxu0 %v11205_v6  ;;  %v11286_v5 = vld [vmem:[#allocation16 + $0x6c4] ss:$16 sps:$4 sm:$0xff]   ;;  %v11281_v6 = vld [vmem:[#allocation16 + $0x4c0] ss:$16 sps:$4 sm:$0xff]  }
 0x584   :  { %8266 = vmatprep.subr.bf16.mxu1 %v11208_v26  ;;  %v11284_v26 = vld [vmem:[#allocation16 + $0x6c0] ss:$16 sps:$4 sm:$0xff]  }
 0x586   :  { %8226 = vmatpush1.bf16.msra.mxu0 %v11203_v7  ;;  %v11289_v7 = vld [vmem:[#allocation16 + $0x4e4] ss:$16 sps:$4 sm:$0xff]  }
 0x587   :  { %8267 = vmatpush1.bf16.msra.mxu1 %v11206_v43  ;;  %8227 = vmatprep.subr.bf16.mxu0 %v11211_v9  ;;  %v11292_v43 = vld [vmem:[#allocation16 + $0x6e4] ss:$16 sps:$4 sm:$0xff]   ;;  %v11287_v9 = vld [vmem:[#allocation16 + $0x4e0] ss:$16 sps:$4 sm:$0xff]  }
 0x588   :  { %8268 = vmatprep.subr.bf16.mxu1 %v11214_v10  ;;  %v11290_v10 = vld [vmem:[#allocation16 + $0x6e0] ss:$16 sps:$4 sm:$0xff]  }
 0x58a   :  { %8228 = vmatpush1.bf16.msra.mxu0 %v11209_v11  ;;  %v11295_v11 = vld [vmem:[#allocation16 + $0x504] ss:$16 sps:$4 sm:$0xff]  }
 0x58b   :  { %8269 = vmatpush1.bf16.msra.mxu1 %v11212_v13  ;;  %8229 = vmatprep.subr.bf16.mxu0 %v11217_v14  ;;  %v11298_v13 = vld [vmem:[#allocation16 + $0x704] ss:$16 sps:$4 sm:$0xff]   ;;  %v11293_v14 = vld [vmem:[#allocation16 + $0x500] ss:$16 sps:$4 sm:$0xff]  }
 0x58c   :  { %8270 = vmatprep.subr.bf16.mxu1 %v11220_v0  ;;  %v11296_v0 = vld [vmem:[#allocation16 + $0x700] ss:$16 sps:$4 sm:$0xff]  }
 0x58e   :  { %8230 = vmatpush1.bf16.msra.mxu0 %v11215_v16  ;;  %v11301_v16 = vld [vmem:[#allocation16 + $0x524] ss:$16 sps:$4 sm:$0xff]  }
 0x58f   :  { %8271 = vmatpush1.bf16.msra.mxu1 %v11218_v1  ;;  %8231 = vmatprep.subr.bf16.mxu0 %v11223_v8  ;;  %v11304_v1 = vld [vmem:[#allocation16 + $0x724] ss:$16 sps:$4 sm:$0xff]   ;;  %v11299_v8 = vld [vmem:[#allocation16 + $0x520] ss:$16 sps:$4 sm:$0xff]  }
 0x590   :  { %8272 = vmatprep.subr.bf16.mxu1 %v11226_v18  ;;  %v11302_v18 = vld [vmem:[#allocation16 + $0x720] ss:$16 sps:$4 sm:$0xff]  }
 0x592   :  { %8232 = vmatpush1.bf16.msra.mxu0 %v11221_v19  ;;  %v11307_v19 = vld [vmem:[#allocation16 + $0x544] ss:$16 sps:$4 sm:$0xff]  }
 0x593   :  { %8273 = vmatpush1.bf16.msra.mxu1 %v11224_v20  ;;  %8233 = vmatprep.subr.bf16.mxu0 %v11229_v55  ;;  %v11310_v20 = vld [vmem:[#allocation16 + $0x744] ss:$16 sps:$4 sm:$0xff]   ;;  %v11305_v55 = vld [vmem:[#allocation16 + $0x540] ss:$16 sps:$4 sm:$0xff]  }
 0x594   :  { %8274 = vmatprep.subr.bf16.mxu1 %v11232_v21  ;;  %v11308_v21 = vld [vmem:[#allocation16 + $0x740] ss:$16 sps:$4 sm:$0xff]  }
 0x596   :  { %8234 = vmatpush1.bf16.msra.mxu0 %v11227_v22  ;;  %v11313_v22 = vld [vmem:[#allocation16 + $0x564] ss:$16 sps:$4 sm:$0xff]  }
 0x597   :  { %8275 = vmatpush1.bf16.msra.mxu1 %v11230_v23  ;;  %8235 = vmatprep.subr.bf16.mxu0 %v11235_v28  ;;  %v11316_v23 = vld [vmem:[#allocation16 + $0x764] ss:$16 sps:$4 sm:$0xff]   ;;  %v11311_v28 = vld [vmem:[#allocation16 + $0x560] ss:$16 sps:$4 sm:$0xff]  }
 0x598   :  { %8276 = vmatprep.subr.bf16.mxu1 %v11238_v29  ;;  %v11314_v29 = vld [vmem:[#allocation16 + $0x760] ss:$16 sps:$4 sm:$0xff]  }
 0x59a   :  { %8236 = vmatpush1.bf16.msra.mxu0 %v11233_v30  ;;  %v11319_v30 = vld [vmem:[#allocation16 + $0x584] ss:$16 sps:$4 sm:$0xff]  }
 0x59b   :  { %8277 = vmatpush1.bf16.msra.mxu1 %v11236_v33  ;;  %8237 = vmatprep.subr.bf16.mxu0 %v11241_v51  ;;  %v11317_v33 = vld [vmem:[#allocation16 + $0x580] ss:$16 sps:$4 sm:$0xff]  }
 0x59c   :  { %8278 = vmatprep.subr.bf16.mxu1 %v11244_v52  ;;  %v11320_v51 = vld [vmem:[#allocation16 + $0x780] ss:$16 sps:$4 sm:$0xff]   ;;  %v11325_v52 = vld [vmem:[#allocation16 + $0x5a4] ss:$16 sps:$4 sm:$0xff]  }
 0x59e   :  { %8238 = vmatpush1.bf16.msra.mxu0 %v11239_v35  ;;  %v11328_v35 = vld [vmem:[#allocation16 + $0x7a4] ss:$16 sps:$4 sm:$0xff]  }
 0x59f   :  { %8279 = vmatpush1.bf16.msra.mxu1 %v11242_v37  ;;  %8289 = vmatprep.subr.bf16.mxu0 %v11247_v40  ;;  %v11326_v37 = vld [vmem:[#allocation16 + $0x7a0] ss:$16 sps:$4 sm:$0xff]   ;;  %v11331_v40 = vld [vmem:[#allocation16 + $0x5c4] ss:$16 sps:$4 sm:$0xff]  }
 0x5a0   :  { %8330 = vmatprep.subr.bf16.mxu1 %v11250_v41  ;;  %v11334_v41 = vld [vmem:[#allocation16 + $0x7c4] ss:$16 sps:$4 sm:$0xff]  }
 0x5a1   :  { %8240 = vmatmul.mubr.bf16.vlgmr.msra.gmra.mrb[16].mxu0 %v12258_v44 }
 0x5a2   :  { %8281 = vmatmul.mubr.bf16.vlgmr.msra.gmra.mrb[16].mxu1 %v12262_v15  ;;  %8290 = vmatpush1.bf16.msra.mxu0 %v11245_v42  ;;  %v11329_v42 = vld [vmem:[#allocation16 + $0x5c0] ss:$16 sps:$4 sm:$0xff]  }
 0x5a3   :  { %8331 = vmatpush1.bf16.msra.mxu1 %v11248_v17  ;;  %8291 = vmatprep.subr.bf16.mxu0 %v11253_v45  ;;  %v11332_v17 = vld [vmem:[#allocation16 + $0x7c0] ss:$16 sps:$4 sm:$0xff]   ;;  %v11337_v45 = vld [vmem:[#allocation16 + $0x5e4] ss:$16 sps:$4 sm:$0xff]  }
 0x5a4   :  { %8332 = vmatprep.subr.bf16.mxu1 %v11256_v48  ;;  %v11340_v48 = vld [vmem:[#allocation16 + $0x7e4] ss:$16 sps:$4 sm:$0xff]  }
 0x5a6   :  { %8292 = vmatpush1.bf16.msra.mxu0 %v11251_v46  ;;  %v11335_v46 = vld [vmem:[#allocation16 + $0x5e0] ss:$16 sps:$4 sm:$0xff]  }
 0x5a7   :  { %8333 = vmatpush1.bf16.msra.mxu1 %v11254_v47  ;;  %8293 = vmatprep.subr.bf16.mxu0 %v11259_v24  ;;  %v11338_v47 = vld [vmem:[#allocation16 + $0x7e0] ss:$16 sps:$4 sm:$0xff]   ;;  %v11343_v24 = vld [vmem:[#allocation16 + $0xc] ss:$16 sps:$4 sm:$0xff]  }
 0x5a8   :  { %8334 = vmatprep.subr.bf16.mxu1 %v11262_v49  ;;  %v11346_v49 = vld [vmem:[#allocation16 + $0x20c] ss:$16 sps:$4 sm:$0xff]  }
 0x5aa   :  { %8294 = vmatpush1.bf16.msra.mxu0 %v11257_v53  ;;  %v5809_v53 = vld [vmem:[#allocation14] sm:$0xf] }
 0x5ab   :  { %8335 = vmatpush1.bf16.msra.mxu1 %v11260_v50  ;;  %8295 = vmatprep.subr.bf16.mxu0 %v11265_v54  ;;  %v5814_v50 = vrot.slane %v5809_v53, %v12111_v25  ;;  %v5822_v54 = vrot.slane %v5809_v53, %v12130_v38 }
 0x5ac   :  { %8336 = vmatprep.subr.bf16.mxu1 %v11268_v56  ;;  %v5818_v56 = vrot.slane %v5809_v53, %v12116_v27 }
 0x5ae   :  { %8296 = vmatpush1.bf16.msra.mxu0 %v11263_v57  ;;  %v5826_v57 = vrot.slane %v5809_v53, %v12123_v31  ;;  %v11398_v53 = vld [vmem:[#allocation16 + $0x328] ss:$16 sps:$4 sm:$0xff]  }
 0x5af   :  { %8337 = vmatpush1.bf16.msra.mxu1 %v11266_v58  ;;  %8297 = vmatprep.subr.bf16.mxu0 %v11271_v39 }
 0x5b0   :  { %8338 = vmatprep.subr.bf16.mxu1 %v11274_v59 }
 0x5b2   :  { %8298 = vmatpush1.bf16.msra.mxu0 %v11269_v60 }
 0x5b3   :  { %8339 = vmatpush1.bf16.msra.mxu1 %v11272_v61  ;;  %8299 = vmatprep.subr.bf16.mxu0 %v11277_v62 }
 0x5b4   :  { %8340 = vmatprep.subr.bf16.mxu1 %v11280_v63 }
 0x5b6   :  { %8300 = vmatpush1.bf16.msra.mxu0 %v11275_v2 }
 0x5b7   :  { %8341 = vmatpush1.bf16.msra.mxu1 %v11278_v3  ;;  %8301 = vmatprep.subr.bf16.mxu0 %v11283_v4 }
 0x5b8   :  { %8342 = vmatprep.subr.bf16.mxu1 %v11286_v5 }
 0x5ba   :  { %8302 = vmatpush1.bf16.msra.mxu0 %v11281_v6 }
 0x5bb   :  { %8343 = vmatpush1.bf16.msra.mxu1 %v11284_v26  ;;  %8303 = vmatprep.subr.bf16.mxu0 %v11289_v7 }
 0x5bc   :  { %8344 = vmatprep.subr.bf16.mxu1 %v11292_v43  ;;  %v11341_v43 = vld [vmem:[#allocation16 + $0x8] ss:$16 sps:$4 sm:$0xff]  }
 0x5be   :  { %8304 = vmatpush1.bf16.msra.mxu0 %v11287_v9  ;;  %v11344_v9 = vld [vmem:[#allocation16 + $0x208] ss:$16 sps:$4 sm:$0xff]  }
 0x5bf   :  { %8345 = vmatpush1.bf16.msra.mxu1 %v11290_v10  ;;  %8305 = vmatprep.subr.bf16.mxu0 %v11295_v11 }
 0x5c0   :  { %8346 = vmatprep.subr.bf16.mxu1 %v11298_v13  ;;  %v11349_v13 = vld [vmem:[#allocation16 + $0x2c] ss:$16 sps:$4 sm:$0xff]  }
 0x5c2   :  { %8306 = vmatpush1.bf16.msra.mxu0 %v11293_v14  ;;  %v11352_v14 = vld [vmem:[#allocation16 + $0x22c] ss:$16 sps:$4 sm:$0xff]  }
 0x5c3   :  { %8347 = vmatpush1.bf16.msra.mxu1 %v11296_v0  ;;  %8307 = vmatprep.subr.bf16.mxu0 %v11301_v16  ;;  %v11347_v0 = vld [vmem:[#allocation16 + $0x28] ss:$16 sps:$4 sm:$0xff]  }
 0x5c4   :  { %8348 = vmatprep.subr.bf16.mxu1 %v11304_v1  ;;  %v11350_v16 = vld [vmem:[#allocation16 + $0x228] ss:$16 sps:$4 sm:$0xff]   ;;  %v11355_v1 = vld [vmem:[#allocation16 + $0x4c] ss:$16 sps:$4 sm:$0xff]  }
 0x5c6   :  { %8308 = vmatpush1.bf16.msra.mxu0 %v11299_v8  ;;  %v11358_v8 = vld [vmem:[#allocation16 + $0x24c] ss:$16 sps:$4 sm:$0xff]  }
 0x5c7   :  { %8349 = vmatpush1.bf16.msra.mxu1 %v11302_v18  ;;  %8309 = vmatprep.subr.bf16.mxu0 %v11307_v19  ;;  %v11353_v18 = vld [vmem:[#allocation16 + $0x48] ss:$16 sps:$4 sm:$0xff]  }
 0x5c8   :  { %8350 = vmatprep.subr.bf16.mxu1 %v11310_v20  ;;  %v11356_v19 = vld [vmem:[#allocation16 + $0x248] ss:$16 sps:$4 sm:$0xff]   ;;  %v11361_v20 = vld [vmem:[#allocation16 + $0x6c] ss:$16 sps:$4 sm:$0xff]  }
 0x5ca   :  { %8310 = vmatpush1.bf16.msra.mxu0 %v11305_v55  ;;  %v11364_v55 = vld [vmem:[#allocation16 + $0x26c] ss:$16 sps:$4 sm:$0xff]  }
 0x5cb   :  { %8351 = vmatpush1.bf16.msra.mxu1 %v11308_v21  ;;  %8311 = vmatprep.subr.bf16.mxu0 %v11313_v22  ;;  %v11359_v21 = vld [vmem:[#allocation16 + $0x68] ss:$16 sps:$4 sm:$0xff]  }
 0x5cc   :  { %8352 = vmatprep.subr.bf16.mxu1 %v11316_v23  ;;  %v11362_v22 = vld [vmem:[#allocation16 + $0x268] ss:$16 sps:$4 sm:$0xff]  }
 0x5cd   :  { %v11365_v23 = vld [vmem:[#allocation16 + $0x88] ss:$16 sps:$4 sm:$0xff]  }
 0x5ce   :  { %8312 = vmatpush1.bf16.msra.mxu0 %v11311_v28  ;;  %v11368_v28 = vld [vmem:[#allocation16 + $0x288] ss:$16 sps:$4 sm:$0xff]  }
 0x5cf   :  { %8353 = vmatpush1.bf16.msra.mxu1 %v11314_v29  ;;  %8313 = vmatprep.subr.bf16.mxu0 %v11319_v30  ;;  %v11373_v29 = vld [vmem:[#allocation16 + $0xac] ss:$16 sps:$4 sm:$0xff]  }
 0x5d0   :  { %8354 = vmatprep.subr.bf16.mxu1 %v11322_v12  ;;  %v11376_v30 = vld [vmem:[#allocation16 + $0x2ac] ss:$16 sps:$4 sm:$0xff]   ;;  %v11371_v12 = vld [vmem:[#allocation16 + $0xa8] ss:$16 sps:$4 sm:$0xff]  }
 0x5d2   :  { %8314 = vmatpush1.bf16.msra.mxu0 %v11317_v33  ;;  %v11374_v33 = vld [vmem:[#allocation16 + $0x2a8] ss:$16 sps:$4 sm:$0xff]  }
 0x5d3   :  { %8355 = vmatpush1.bf16.msra.mxu1 %v11320_v51  ;;  %8315 = vmatprep.subr.bf16.mxu0 %v11325_v52  ;;  %v11379_v51 = vld [vmem:[#allocation16 + $0xcc] ss:$16 sps:$4 sm:$0xff]  }
 0x5d4   :  { %8356 = vmatprep.subr.bf16.mxu1 %v11328_v35  ;;  %v11382_v52 = vld [vmem:[#allocation16 + $0x2cc] ss:$16 sps:$4 sm:$0xff]   ;;  %v11377_v35 = vld [vmem:[#allocation16 + $0xc8] ss:$16 sps:$4 sm:$0xff]  }
 0x5d6   :  { %8316 = vmatpush1.bf16.msra.mxu0 %v11323_v36  ;;  %v11380_v36 = vld [vmem:[#allocation16 + $0x2c8] ss:$16 sps:$4 sm:$0xff]  }
 0x5d7   :  { %8357 = vmatpush1.bf16.msra.mxu1 %v11326_v37  ;;  %8317 = vmatprep.subr.bf16.mxu0 %v11331_v40  ;;  %v11385_v37 = vld [vmem:[#allocation16 + $0xec] ss:$16 sps:$4 sm:$0xff]  }
 0x5d8   :  { %8358 = vmatprep.subr.bf16.mxu1 %v11334_v41  ;;  %v11388_v40 = vld [vmem:[#allocation16 + $0x2ec] ss:$16 sps:$4 sm:$0xff]   ;;  %v11383_v41 = vld [vmem:[#allocation16 + $0xe8] ss:$16 sps:$4 sm:$0xff]  }
 0x5da   :  { %8318 = vmatpush1.bf16.msra.mxu0 %v11329_v42  ;;  %v11386_v42 = vld [vmem:[#allocation16 + $0x2e8] ss:$16 sps:$4 sm:$0xff]  }
 0x5db   :  { %8359 = vmatpush1.bf16.msra.mxu1 %v11332_v17  ;;  %8319 = vmatprep.subr.bf16.mxu0 %v11337_v45  ;;  %v11391_v17 = vld [vmem:[#allocation16 + $0x10c] ss:$16 sps:$4 sm:$0xff]  }
 0x5dc   :  { %8360 = vmatprep.subr.bf16.mxu1 %v11340_v48  ;;  %v11394_v45 = vld [vmem:[#allocation16 + $0x30c] ss:$16 sps:$4 sm:$0xff]   ;;  %v11389_v48 = vld [vmem:[#allocation16 + $0x108] ss:$16 sps:$4 sm:$0xff]  }
 0x5de   :  { %8320 = vmatpush1.bf16.msra.mxu0 %v11335_v46  ;;  %v11392_v46 = vld [vmem:[#allocation16 + $0x308] ss:$16 sps:$4 sm:$0xff]  }
 0x5df   :  { %8361 = vmatpush1.bf16.msra.mxu1 %v11338_v47  ;;  %8371 = vmatprep.subr.bf16.mxu0 %v11343_v24  ;;  %v11397_v47 = vld [vmem:[#allocation16 + $0x12c] ss:$16 sps:$4 sm:$0xff]  }
 0x5e0   :  { %8412 = vmatprep.subr.bf16.mxu1 %v11346_v49  ;;  %v11400_v24 = vld [vmem:[#allocation16 + $0x32c] ss:$16 sps:$4 sm:$0xff]   ;;  %v11395_v49 = vld [vmem:[#allocation16 + $0x128] ss:$16 sps:$4 sm:$0xff]  }
 0x634   :  { %v6546_v58 = vpop.f32.mrb[12].mxu0  ;;  %v6628_v39 = vpop.f32.mrb[12].mxu1 }
 0x635   :  { %v9759_v59 = vadd.f32 %v6546_v58, %v5814_v50  ;;  %v9761_v60 = vadd.f32 %v6628_v39, %v5822_v54  ;;  %v6548_v61 = vpop.f32.mrb[13].mxu0  ;;  %v6630_v62 = vpop.f32.mrb[13].mxu1  ;;  %v11403_v50 = vld [vmem:[#allocation16 + $0x14c] ss:$16 sps:$4 sm:$0xff]  }
 0x636   :  { %v9760_v63 = vadd.f32 %v6548_v61, %v5818_v56  ;;  %v9762_v2 = vadd.f32 %v6630_v62, %v5826_v57  ;;  %v6550_v3 = vpop.f32.mrb[14].mxu0  ;;  %v6632_v4 = vpop.f32.mrb[14].mxu1  ;;  %v11406_v54 = vld [vmem:[#allocation16 + $0x34c] ss:$16 sps:$4 sm:$0xff]   ;;  %v11401_v56 = vld [vmem:[#allocation16 + $0x148] ss:$16 sps:$4 sm:$0xff]  }
 0x637   :  { %v6551_v5 = vpop.f32.mrb[15].mxu0  ;;  %v6633_v6 = vpop.f32.mrb[15].mxu1  ;;  %v12274_v10 = vpack.c.bf16 %v9759_v59, %v9759_v59  ;;  %v12276_v11 = vpack.c.bf16 %v9761_v60, %v9761_v60  ;;  %v11404_v57 = vld [vmem:[#allocation16 + $0x348] ss:$16 sps:$4 sm:$0xff]   ;;  %v11409_v58 = vld [vmem:[#allocation16 + $0x16c] ss:$16 sps:$4 sm:$0xff]  }
 0x638   :  { %v12270_v26 = vpack.c.bf16 %v9760_v63, %v9760_v63  ;;  %v12272_v7 = vpack.c.bf16 %v9762_v2, %v9762_v2  ;;  %v11412_v39 = vld [vmem:[#allocation16 + $0x36c] ss:$16 sps:$4 sm:$0xff]   ;;  %v11407_v59 = vld [vmem:[#allocation16 + $0x168] ss:$16 sps:$4 sm:$0xff]   ;;  %v12284_v5 = vld [vmem:[#allocation17] sm:$0xf] }
 0x639   :  { %v11410_v60 = vld [vmem:[#allocation16 + $0x368] ss:$16 sps:$4 sm:$0xff]   ;;  %v11415_v61 = vld [vmem:[#allocation16 + $0x18c] ss:$16 sps:$4 sm:$0xff]  }
 0x63a   :  { %8321 = vmatprep.mubr.bf16.mxu0 %v12270_v26  ;;  %8362 = vmatprep.mubr.bf16.mxu1 %v12272_v7  ;;  %v11418_v62 = vld [vmem:[#allocation16 + $0x38c] ss:$16 sps:$4 sm:$0xff]   ;;  %v11413_v63 = vld [vmem:[#allocation16 + $0x188] ss:$16 sps:$4 sm:$0xff]  }
 0x63b   :  { %8322 = vmatmul.mubr.bf16.vlgmr.msra.gmra.mrb[20].mxu0 %v12274_v10  ;;  %8363 = vmatmul.mubr.bf16.vlgmr.msra.gmra.mrb[20].mxu1 %v12276_v11  ;;  %v11416_v2 = vld [vmem:[#allocation16 + $0x388] ss:$16 sps:$4 sm:$0xff]   ;;  %v11421_v3 = vld [vmem:[#allocation16 + $0x1ac] ss:$16 sps:$4 sm:$0xff]  }
 0x63c   :  { %8372 = vmatpush1.bf16.msra.mxu0 %v11341_v43  ;;  %8413 = vmatpush1.bf16.msra.mxu1 %v11344_v9  ;;  %v11424_v4 = vld [vmem:[#allocation16 + $0x3ac] ss:$16 sps:$4 sm:$0xff]   ;;  %v11419_v6 = vld [vmem:[#allocation16 + $0x1a8] ss:$16 sps:$4 sm:$0xff]  }
 0x63d   :  { %8403 = vmatprep.mubr.bf16.mxu0 %v12249_v32  ;;  %8444 = vmatprep.mubr.bf16.mxu1 %v12251_v34  ;;  %v11367_v32 = vld [vmem:[#allocation16 + $0x8c] ss:$16 sps:$4 sm:$0xff]   ;;  %v11422_v43 = vld [vmem:[#allocation16 + $0x3a8] ss:$16 sps:$4 sm:$0xff]  }
 0x63e   :  { %8373 = vmatprep.subr.bf16.mxu0 %v11349_v13  ;;  %8414 = vmatprep.subr.bf16.mxu1 %v11352_v14  ;;  %v11370_v34 = vld [vmem:[#allocation16 + $0x28c] ss:$16 sps:$4 sm:$0xff]   ;;  %v6906_v14 = vrot.slane %v12284_v5, %v12111_v25 }
 0x63f   :  { %v11427_v9 = vld [vmem:[#allocation16 + $0x1cc] ss:$16 sps:$4 sm:$0xff]  }
 0x640   :  { %8374 = vmatpush1.bf16.msra.mxu0 %v11347_v0  ;;  %8415 = vmatpush1.bf16.msra.mxu1 %v11350_v16  ;;  %v11430_v13 = vld [vmem:[#allocation16 + $0x3cc] ss:$16 sps:$4 sm:$0xff]   ;;  %v12288_v0 = vpop.permute.xlu0 %6899  ;;  %v6910_v16 = vrot.slane %v12284_v5, %v12116_v27 }
 0x641   :  { %8375 = vmatprep.subr.bf16.mxu0 %v11355_v1  ;;  %8416 = vmatprep.subr.bf16.mxu1 %v11358_v8  ;;  %v11425_v1 = vld [vmem:[#allocation16 + $0x1c8] ss:$16 sps:$4 sm:$0xff]  }
 0x642   :  { %v11428_v8 = vld [vmem:[#allocation16 + $0x3c8] ss:$16 sps:$4 sm:$0xff]  }
 0x644   :  { %8376 = vmatpush1.bf16.msra.mxu0 %v11353_v18  ;;  %8417 = vmatpush1.bf16.msra.mxu1 %v11356_v19  ;;  %v6923_v18 = vmul.f32 %v6906_v14, %v12288_v0  ;;  %v11433_v19 = vld [vmem:[#allocation16 + $0x1ec] ss:$16 sps:$4 sm:$0xff]   ;;  %v11485_v14 = vld [vmem:[#allocation16 + $0x508] ss:$16 sps:$4 sm:$0xff]  }
 0x645   :  { %8377 = vmatprep.subr.bf16.mxu0 %v11361_v20  ;;  %8418 = vmatprep.subr.bf16.mxu1 %v11364_v55  ;;  %v11436_v20 = vld [vmem:[#allocation16 + $0x3ec] ss:$16 sps:$4 sm:$0xff]   ;;  %v6924_v55 = vmul.f32 %v6910_v16, %v12288_v0  ;;  %v11488_v16 = vld [vmem:[#allocation16 + $0x708] ss:$16 sps:$4 sm:$0xff]  }
 0x648   :  { %8378 = vmatpush1.bf16.msra.mxu0 %v11359_v21  ;;  %8419 = vmatpush1.bf16.msra.mxu1 %v11362_v22  ;;  %v11431_v22 = vld [vmem:[#allocation16 + $0x1e8] ss:$16 sps:$4 sm:$0xff]  }
 0x649   :  { %8379 = vmatprep.subr.bf16.mxu0 %v11367_v32  ;;  %8420 = vmatprep.subr.bf16.mxu1 %v11370_v34  ;;  %v11434_v32 = vld [vmem:[#allocation16 + $0x3e8] ss:$16 sps:$4 sm:$0xff]  }
 0x64c   :  { %8380 = vmatpush1.bf16.msra.mxu0 %v11365_v23  ;;  %8421 = vmatpush1.bf16.msra.mxu1 %v11368_v28 }
 0x64d   :  { %8381 = vmatprep.subr.bf16.mxu0 %v11373_v29  ;;  %8422 = vmatprep.subr.bf16.mxu1 %v11376_v30  ;;  %v11439_v29 = vld [vmem:[#allocation16 + $0x40c] ss:$16 sps:$4 sm:$0xff]  }
 0x64e   :  { %v11442_v30 = vld [vmem:[#allocation16 + $0x60c] ss:$16 sps:$4 sm:$0xff]  }
 0x650   :  { %8382 = vmatpush1.bf16.msra.mxu0 %v11371_v12  ;;  %8423 = vmatpush1.bf16.msra.mxu1 %v11374_v33 }
 0x651   :  { %8383 = vmatprep.subr.bf16.mxu0 %v11379_v51  ;;  %8424 = vmatprep.subr.bf16.mxu1 %v11382_v52 }
 0x654   :  { %8384 = vmatpush1.bf16.msra.mxu0 %v11377_v35  ;;  %8425 = vmatpush1.bf16.msra.mxu1 %v11380_v36 }
 0x655   :  { %8385 = vmatprep.subr.bf16.mxu0 %v11385_v37  ;;  %8426 = vmatprep.subr.bf16.mxu1 %v11388_v40 }
 0x658   :  { %8386 = vmatpush1.bf16.msra.mxu0 %v11383_v41  ;;  %8427 = vmatpush1.bf16.msra.mxu1 %v11386_v42  ;;  %v11437_v41 = vld [vmem:[#allocation16 + $0x408] ss:$16 sps:$4 sm:$0xff]  }
 0x659   :  { %8387 = vmatprep.subr.bf16.mxu0 %v11391_v17  ;;  %8428 = vmatprep.subr.bf16.mxu1 %v11394_v45  ;;  %v11440_v42 = vld [vmem:[#allocation16 + $0x608] ss:$16 sps:$4 sm:$0xff]   ;;  %v11445_v17 = vld [vmem:[#allocation16 + $0x42c] ss:$16 sps:$4 sm:$0xff]  }
 0x65a   :  { %v11448_v45 = vld [vmem:[#allocation16 + $0x62c] ss:$16 sps:$4 sm:$0xff]  }
 0x65c   :  { %8388 = vmatpush1.bf16.msra.mxu0 %v11389_v48  ;;  %8429 = vmatpush1.bf16.msra.mxu1 %v11392_v46  ;;  %v11443_v48 = vld [vmem:[#allocation16 + $0x428] ss:$16 sps:$4 sm:$0xff]  }
 0x65d   :  { %8389 = vmatprep.subr.bf16.mxu0 %v11397_v47  ;;  %8430 = vmatprep.subr.bf16.mxu1 %v11400_v24  ;;  %v11446_v46 = vld [vmem:[#allocation16 + $0x628] ss:$16 sps:$4 sm:$0xff]   ;;  %v11451_v47 = vld [vmem:[#allocation16 + $0x44c] ss:$16 sps:$4 sm:$0xff]  }
 0x65e   :  { %v11454_v24 = vld [vmem:[#allocation16 + $0x64c] ss:$16 sps:$4 sm:$0xff]  }
 0x660   :  { %8390 = vmatpush1.bf16.msra.mxu0 %v11395_v49  ;;  %8431 = vmatpush1.bf16.msra.mxu1 %v11398_v53  ;;  %v11449_v49 = vld [vmem:[#allocation16 + $0x448] ss:$16 sps:$4 sm:$0xff]  }
 0x661   :  { %8391 = vmatprep.subr.bf16.mxu0 %v11403_v50  ;;  %8432 = vmatprep.subr.bf16.mxu1 %v11406_v54  ;;  %v11452_v53 = vld [vmem:[#allocation16 + $0x648] ss:$16 sps:$4 sm:$0xff]   ;;  %v11463_v54 = vld [vmem:[#allocation16 + $0x48c] ss:$16 sps:$4 sm:$0xff]  }
 0x662   :  { %v11455_v50 = vld [vmem:[#allocation16 + $0x468] ss:$16 sps:$4 sm:$0xff]  }
 0x664   :  { %8392 = vmatpush1.bf16.msra.mxu0 %v11401_v56  ;;  %8433 = vmatpush1.bf16.msra.mxu1 %v11404_v57  ;;  %v11461_v56 = vld [vmem:[#allocation16 + $0x488] ss:$16 sps:$4 sm:$0xff]  }
 0x665   :  { %8393 = vmatprep.subr.bf16.mxu0 %v11409_v58  ;;  %8434 = vmatprep.subr.bf16.mxu1 %v11412_v39  ;;  %v11464_v57 = vld [vmem:[#allocation16 + $0x688] ss:$16 sps:$4 sm:$0xff]   ;;  %v11469_v58 = vld [vmem:[#allocation16 + $0x4ac] ss:$16 sps:$4 sm:$0xff]  }
 0x666   :  { %v11472_v39 = vld [vmem:[#allocation16 + $0x6ac] ss:$16 sps:$4 sm:$0xff]  }
 0x668   :  { %8394 = vmatpush1.bf16.msra.mxu0 %v11407_v59  ;;  %8435 = vmatpush1.bf16.msra.mxu1 %v11410_v60  ;;  %v11467_v59 = vld [vmem:[#allocation16 + $0x4a8] ss:$16 sps:$4 sm:$0xff]  }
 0x669   :  { %8395 = vmatprep.subr.bf16.mxu0 %v11415_v61  ;;  %8436 = vmatprep.subr.bf16.mxu1 %v11418_v62  ;;  %v11470_v60 = vld [vmem:[#allocation16 + $0x6a8] ss:$16 sps:$4 sm:$0xff]   ;;  %v11475_v61 = vld [vmem:[#allocation16 + $0x4cc] ss:$16 sps:$4 sm:$0xff]  }
 0x66a   :  { %v11478_v62 = vld [vmem:[#allocation16 + $0x6cc] ss:$16 sps:$4 sm:$0xff]  }
 0x66c   :  { %8396 = vmatpush1.bf16.msra.mxu0 %v11413_v63  ;;  %8437 = vmatpush1.bf16.msra.mxu1 %v11416_v2  ;;  %v11473_v63 = vld [vmem:[#allocation16 + $0x4c8] ss:$16 sps:$4 sm:$0xff]  }
 0x66d   :  { %8397 = vmatprep.subr.bf16.mxu0 %v11421_v3  ;;  %8438 = vmatprep.subr.bf16.mxu1 %v11424_v4  ;;  %v11476_v2 = vld [vmem:[#allocation16 + $0x6c8] ss:$16 sps:$4 sm:$0xff]   ;;  %v11481_v3 = vld [vmem:[#allocation16 + $0x4ec] ss:$16 sps:$4 sm:$0xff]  }
 0x66e   :  { %v11484_v4 = vld [vmem:[#allocation16 + $0x6ec] ss:$16 sps:$4 sm:$0xff]  }
 0x670   :  { %8398 = vmatpush1.bf16.msra.mxu0 %v11419_v6  ;;  %8439 = vmatpush1.bf16.msra.mxu1 %v11422_v43  ;;  %v11479_v6 = vld [vmem:[#allocation16 + $0x4e8] ss:$16 sps:$4 sm:$0xff]  }
 0x671   :  { %8399 = vmatprep.subr.bf16.mxu0 %v11427_v9  ;;  %8440 = vmatprep.subr.bf16.mxu1 %v11430_v13  ;;  %v11482_v43 = vld [vmem:[#allocation16 + $0x6e8] ss:$16 sps:$4 sm:$0xff]   ;;  %v11487_v9 = vld [vmem:[#allocation16 + $0x50c] ss:$16 sps:$4 sm:$0xff]  }
 0x672   :  { %v11490_v13 = vld [vmem:[#allocation16 + $0x70c] ss:$16 sps:$4 sm:$0xff]  }
 0x674   :  { %8400 = vmatpush1.bf16.msra.mxu0 %v11425_v1  ;;  %8441 = vmatpush1.bf16.msra.mxu1 %v11428_v8  ;;  %v8241_v21 = vpop.f32.mrb[16].mxu0  ;;  %v11493_v1 = vld [vmem:[#allocation16 + $0x52c] ss:$16 sps:$4 sm:$0xff]  }
 0x675   :  { %v8242_v34 = vadd.f32 %v8241_v21, %v6923_v18  ;;  %v8282_v23 = vpop.f32.mrb[16].mxu1  ;;  %v8243_v28 = vpop.f32.mrb[17].mxu0  ;;  %8401 = vmatprep.subr.bf16.mxu0 %v11433_v19  ;;  %8442 = vmatprep.subr.bf16.mxu1 %v11436_v20  ;;  %v11496_v8 = vld [vmem:[#allocation16 + $0x72c] ss:$16 sps:$4 sm:$0xff]   ;;  %v11491_v18 = vld [vmem:[#allocation16 + $0x528] ss:$16 sps:$4 sm:$0xff]  }
 0x676   :  { %v8244_v12 = vadd.f32 %v8243_v28, %v6924_v55  ;;  %v8284_v33 = vpop.f32.mrb[17].mxu1  ;;  %v8245_v51 = vpop.f32.mrb[18].mxu0  ;;  %v11494_v19 = vld [vmem:[#allocation16 + $0x728] ss:$16 sps:$4 sm:$0xff]   ;;  %v11499_v20 = vld [vmem:[#allocation16 + $0x54c] ss:$16 sps:$4 sm:$0xff]  }
 0x677   :  { %v12294_v52 = vadd.f32 %v8282_v23, %v8242_v34  ;;  %v8286_v35 = vpop.f32.mrb[18].mxu1  ;;  %v8246_v36 = vpop.f32.mrb[19].mxu0  ;;  %v11502_v55 = vld [vmem:[#allocation16 + $0x74c] ss:$16 sps:$4 sm:$0xff]   ;;  %v11497_v21 = vld [vmem:[#allocation16 + $0x548] ss:$16 sps:$4 sm:$0xff]  }
 0x678   :  { %v12296_v37 = vadd.f32 %v8284_v33, %v8244_v12  ;;  %v8287_v40 = vpop.f32.mrb[19].mxu1  ;;  %8402 = vmatpush1.bf16.msra.mxu0 %v11431_v22  ;;  %8443 = vmatpush1.bf16.msra.mxu1 %v11434_v32  ;;  %v11500_v22 = vld [vmem:[#allocation16 + $0x748] ss:$16 sps:$4 sm:$0xff]   ;;  %v11505_v32 = vld [vmem:[#allocation16 + $0x56c] ss:$16 sps:$4 sm:$0xff]  }
 0x679   :  { %8453 = vmatprep.subr.bf16.mxu0 %v11439_v29  ;;  %8494 = vmatprep.subr.bf16.mxu1 %v11442_v30  ;;  %v11508_v34 = vld [vmem:[#allocation16 + $0x76c] ss:$16 sps:$4 sm:$0xff]   ;;  %v11503_v23 = vld [vmem:[#allocation16 + $0x568] ss:$16 sps:$4 sm:$0xff]  }
 0x67a   :  { %v11506_v28 = vld [vmem:[#allocation16 + $0x768] ss:$16 sps:$4 sm:$0xff]   ;;  %v11511_v29 = vld [vmem:[#allocation16 + $0x58c] ss:$16 sps:$4 sm:$0xff]  }
 0x67b   :  { %8404 = vmatmul.mubr.bf16.vlgmr.msra.gmra.mrb[24].mxu0 %v12258_v44  ;;  %8445 = vmatmul.mubr.bf16.vlgmr.msra.gmra.mrb[24].mxu1 %v12262_v15  ;;  %v11457_v44 = vld [vmem:[#allocation16 + $0x46c] ss:$16 sps:$4 sm:$0xff]   ;;  %v11509_v12 = vld [vmem:[#allocation16 + $0x588] ss:$16 sps:$4 sm:$0xff]  }
 0x67c   :  { %8454 = vmatpush1.bf16.msra.mxu0 %v11437_v41  ;;  %8485 = vmatprep.mubr.bf16.mxu0 %v12270_v26  ;;  %v11460_v15 = vld [vmem:[#allocation16 + $0x66c] ss:$16 sps:$4 sm:$0xff]   ;;  %v11458_v26 = vld [vmem:[#allocation16 + $0x668] ss:$16 sps:$4 sm:$0xff]  }
 0x67d   :  { %8495 = vmatpush1.bf16.msra.mxu1 %v11440_v42  ;;  %8526 = vmatprep.mubr.bf16.mxu1 %v12272_v7  ;;  %v11466_v7 = vld [vmem:[#allocation16 + $0x68c] ss:$16 sps:$4 sm:$0xff]   ;;  %v11512_v33 = vld [vmem:[#allocation16 + $0x788] ss:$16 sps:$4 sm:$0xff]  }
 0x67e   :  { %8455 = vmatprep.subr.bf16.mxu0 %v11445_v17  ;;  %8496 = vmatprep.subr.bf16.mxu1 %v11448_v45  ;;  %v11514_v30 = vld [vmem:[#allocation16 + $0x78c] ss:$16 sps:$4 sm:$0xff]   ;;  %v11515_v36 = vld [vmem:[#allocation16 + $0x5a8] ss:$16 sps:$4 sm:$0xff]  }
 0x67f   :  { %v11517_v51 = vld [vmem:[#allocation16 + $0x5ac] ss:$16 sps:$4 sm:$0xff]   ;;  %v11518_v40 = vld [vmem:[#allocation16 + $0x7a8] ss:$16 sps:$4 sm:$0xff]  }
 0x680   :  { %8456 = vmatpush1.bf16.msra.mxu0 %v11443_v48  ;;  %v11520_v35 = vld [vmem:[#allocation16 + $0x7ac] ss:$16 sps:$4 sm:$0xff]   ;;  %v11521_v17 = vld [vmem:[#allocation16 + $0x5c8] ss:$16 sps:$4 sm:$0xff]  }
 0x681   :  { %8497 = vmatpush1.bf16.msra.mxu1 %v11446_v46  ;;  %8457 = vmatprep.subr.bf16.mxu0 %v11451_v47  ;;  %v11523_v41 = vld [vmem:[#allocation16 + $0x5cc] ss:$16 sps:$4 sm:$0xff]   ;;  %v11524_v45 = vld [vmem:[#allocation16 + $0x7c8] ss:$16 sps:$4 sm:$0xff]  }
 0x682   :  { %8498 = vmatprep.subr.bf16.mxu1 %v11454_v24  ;;  %v11526_v42 = vld [vmem:[#allocation16 + $0x7cc] ss:$16 sps:$4 sm:$0xff]   ;;  %v11527_v47 = vld [vmem:[#allocation16 + $0x5e8] ss:$16 sps:$4 sm:$0xff]  }
 0x683   :  { %v11529_v48 = vld [vmem:[#allocation16 + $0x5ec] ss:$16 sps:$4 sm:$0xff]   ;;  %v11530_v24 = vld [vmem:[#allocation16 + $0x7e8] ss:$16 sps:$4 sm:$0xff]  }
 0x684   :  { %8458 = vmatpush1.bf16.msra.mxu0 %v11449_v49  ;;  %v11532_v46 = vld [vmem:[#allocation16 + $0x7ec] ss:$16 sps:$4 sm:$0xff]   ;;  %v8535_v49 = vld [vmem:[#allocation19] sm:$0xf] }
 0x685   :  { %8499 = vmatpush1.bf16.msra.mxu1 %v11452_v53  ;;  %8459 = vmatprep.subr.bf16.mxu0 %v11457_v44 }
 0x686   :  { %8500 = vmatprep.subr.bf16.mxu1 %v11460_v15 }
 0x688   :  { %8460 = vmatpush1.bf16.msra.mxu0 %v11455_v50  ;;  %v8540_v50 = vrot.slane %v8535_v49, %v12111_v25 }
 0x689   :  { %8501 = vmatpush1.bf16.msra.mxu1 %v11458_v26  ;;  %8461 = vmatprep.subr.bf16.mxu0 %v11463_v54 }
 0x68a   :  { %8502 = vmatprep.subr.bf16.mxu1 %v11466_v7  ;;  %v8565_v7 = vld [vmem:[#allocation20] sm:$0xf] }
 0x68c   :  { %8462 = vmatpush1.bf16.msra.mxu0 %v11461_v56 }
 0x68d   :  { %8503 = vmatpush1.bf16.msra.mxu1 %v11464_v57  ;;  %8463 = vmatprep.subr.bf16.mxu0 %v11469_v58  ;;  %v8544_v57 = vrot.slane %v8535_v49, %v12116_v27 }
 0x68e   :  { %8504 = vmatprep.subr.bf16.mxu1 %v11472_v39 }
 0x690   :  { %8464 = vmatpush1.bf16.msra.mxu0 %v11467_v59 }
 0x691   :  { %8505 = vmatpush1.bf16.msra.mxu1 %v11470_v60  ;;  %8465 = vmatprep.subr.bf16.mxu0 %v11475_v61 }
 0x692   :  { %8506 = vmatprep.subr.bf16.mxu1 %v11478_v62  ;;  %v8570_v62 = vrot.slane %v8565_v7, %v12111_v25 }
 0x694   :  { %8466 = vmatpush1.bf16.msra.mxu0 %v11473_v63 }
 0x695   :  { %8507 = vmatpush1.bf16.msra.mxu1 %v11476_v2  ;;  %8467 = vmatprep.subr.bf16.mxu0 %v11481_v3 }
 0x696   :  { %8508 = vmatprep.subr.bf16.mxu1 %v11484_v4 }
 0x698   :  { %8468 = vmatpush1.bf16.msra.mxu0 %v11479_v6 }
 0x699   :  { %8509 = vmatpush1.bf16.msra.mxu1 %v11482_v43  ;;  %8469 = vmatprep.subr.bf16.mxu0 %v11487_v9  ;;  %v6918_v9 = vrot.slane %v12284_v5, %v12123_v31 }
 0x69a   :  { %8510 = vmatprep.subr.bf16.mxu1 %v11490_v13 }
 0x69c   :  { %8470 = vmatpush1.bf16.msra.mxu0 %v11485_v14  ;;  %v6926_v14 = vmul.f32 %v6918_v9, %v12288_v0 }
 0x69d   :  { %8511 = vmatpush1.bf16.msra.mxu1 %v11488_v16  ;;  %8471 = vmatprep.subr.bf16.mxu0 %v11493_v1 }
 0x69e   :  { %8512 = vmatprep.subr.bf16.mxu1 %v11496_v8 }
 0x6a0   :  { %8472 = vmatpush1.bf16.msra.mxu0 %v11491_v18 }
 0x6a1   :  { %8513 = vmatpush1.bf16.msra.mxu1 %v11494_v19  ;;  %8473 = vmatprep.subr.bf16.mxu0 %v11499_v20 }
 0x6a2   :  { %8514 = vmatprep.subr.bf16.mxu1 %v11502_v55 }
 0x6a4   :  { %8474 = vmatpush1.bf16.msra.mxu0 %v11497_v21 }
 0x6a5   :  { %8515 = vmatpush1.bf16.msra.mxu1 %v11500_v22  ;;  %8475 = vmatprep.subr.bf16.mxu0 %v11505_v32 }
 0x6a6   :  { %8516 = vmatprep.subr.bf16.mxu1 %v11508_v34 }
 0x6a8   :  { %8476 = vmatpush1.bf16.msra.mxu0 %v11503_v23 }
 0x6a9   :  { %8517 = vmatpush1.bf16.msra.mxu1 %v11506_v28  ;;  %8477 = vmatprep.subr.bf16.mxu0 %v11511_v29 }
 0x6aa   :  { %8518 = vmatprep.subr.bf16.mxu1 %v11514_v30 }
 0x6ac   :  { %8478 = vmatpush1.bf16.msra.mxu0 %v11509_v12  ;;  %v8552_v12 = vrot.slane %v8535_v49, %v12123_v31 }
 0x6ad   :  { %8519 = vmatpush1.bf16.msra.mxu1 %v11512_v33  ;;  %8479 = vmatprep.subr.bf16.mxu0 %v11517_v51 }
 0x6ae   :  { %8520 = vmatprep.subr.bf16.mxu1 %v11520_v35 }
 0x6b0   :  { %8480 = vmatpush1.bf16.msra.mxu0 %v11515_v36 }
 0x6b1   :  { %8521 = vmatpush1.bf16.msra.mxu1 %v11518_v40  ;;  %8481 = vmatprep.subr.bf16.mxu0 %v11523_v41 }
 0x6b2   :  { %8522 = vmatprep.subr.bf16.mxu1 %v11526_v42 }
 0x6b4   :  { %8482 = vmatpush1.bf16.msra.mxu0 %v11521_v17  ;;  %v8578_v17 = vrot.slane %v8565_v7, %v12130_v38 }
 0x6b5   :  { %8523 = vmatpush1.bf16.msra.mxu1 %v11524_v45  ;;  %8483 = vmatprep.subr.bf16.mxu0 %v11529_v48  ;;  %v8582_v48 = vrot.slane %v8565_v7, %v12123_v31 }
 0x6b6   :  { %8524 = vmatprep.subr.bf16.mxu1 %v11532_v46 }
 0x6b8   :  { %8484 = vmatpush1.bf16.msra.mxu0 %v11527_v47 }
 0x6b9   :  { %8525 = vmatpush1.bf16.msra.mxu1 %v11530_v24 }
 0x6bb   :  { %8486 = vmatmul.mubr.bf16.vlgmr.msra.gmra.mrb[28].mxu0 %v12274_v10 }
 0x6bc   :  { %8527 = vmatmul.mubr.bf16.vlgmr.msra.gmra.mrb[28].mxu1 %v12276_v11 }
 0x70e   :  { %v8323_v53 = vpop.f32.mrb[20].mxu0  ;;  %v8364_v44 = vpop.f32.mrb[20].mxu1 }
 0x70f   :  { %v8324_v15 = vadd.f32 %v8323_v53, %v12294_v52  ;;  %v8325_v26 = vpop.f32.mrb[21].mxu0  ;;  %v8366_v54 = vpop.f32.mrb[21].mxu1  ;;  %v8574_v52 = vrot.slane %v8565_v7, %v12116_v27 }
 0x710   :  { %v8326_v56 = vadd.f32 %v8325_v26, %v12296_v37  ;;  %v8327_v58 = vpop.f32.mrb[22].mxu0  ;;  %v8368_v39 = vpop.f32.mrb[22].mxu1  ;;  %v6914_v37 = vrot.slane %v12284_v5, %v12130_v38  ;;  %v8548_v5 = vrot.slane %v8535_v49, %v12130_v38  ;;  %v9749_v49 = vld [vmem:[#allocation2] ss:$0 sm:$0xff] }
 0x711   :  { %v8365_v59 = vadd.f32 %v8364_v44, %v8324_v15  ;;  %v8328_v10 = vpop.f32.mrb[23].mxu0  ;;  %v8369_v60 = vpop.f32.mrb[23].mxu1 }
 0x712   :  { %v8367_v11 = vadd.f32 %v8366_v54, %v8326_v56  ;;  %v6925_v13 = vmul.f32 %v6914_v37, %v12288_v0 }
 0x713   :  { %v8557_v61 = vadd.f32 %v8540_v50, %v8365_v59 }
 0x714   :  { %v8558_v63 = vadd.f32 %v8544_v57, %v8367_v11 }
 0x715   :  { %v8561_v2 = vmax.f32 %v8557_v61, 0.0 }
 0x716   :  { %v8562_v3 = vmax.f32 %v8558_v63, 0.0 }
 0x717   :  { %v8587_v4 = vmul.f32 %v8570_v62, %v8561_v2 }
 0x718   :  { %v8588_v6 = vmul.f32 %v8574_v52, %v8562_v3 }
 0x71a   :  { %v8591_v43 = vadd.f32 %v8588_v6, %v8587_v4 }
 0x74e   :  { %v8405_v16 = vpop.f32.mrb[24].mxu0  ;;  %v8446_v25 = vpop.f32.mrb[24].mxu1 }
 0x74f   :  { %v8406_v1 = vadd.f32 %v8405_v16, %v6925_v13  ;;  %v8407_v8 = vpop.f32.mrb[25].mxu0  ;;  %v8448_v27 = vpop.f32.mrb[25].mxu1 }
 0x750   :  { %v8408_v18 = vadd.f32 %v8407_v8, %v6926_v14  ;;  %v8409_v19 = vpop.f32.mrb[26].mxu0  ;;  %v8450_v20 = vpop.f32.mrb[26].mxu1 }
 0x751   :  { %v8447_v55 = vadd.f32 %v8446_v25, %v8406_v1  ;;  %v8410_v21 = vpop.f32.mrb[27].mxu0  ;;  %v8451_v22 = vpop.f32.mrb[27].mxu1 }
 0x752   :  { %v8449_v32 = vadd.f32 %v8448_v27, %v8408_v18 }
 0x78e   :  { %v8487_v34 = vpop.f32.mrb[28].mxu0 }
 0x78f   :  { %v8488_v23 = vadd.f32 %v8487_v34, %v8447_v55  ;;  %v8528_v28 = vpop.f32.mrb[28].mxu1  ;;  %v8489_v29 = vpop.f32.mrb[29].mxu0 }
 0x790   :  { %v8490_v30 = vadd.f32 %v8489_v29, %v8449_v32  ;;  %v8530_v0 = vpop.f32.mrb[29].mxu1  ;;  %v8491_v33 = vpop.f32.mrb[30].mxu0 }
 0x791   :  { %v8529_v51 = vadd.f32 %v8528_v28, %v8488_v23  ;;  %v8532_v35 = vpop.f32.mrb[30].mxu1  ;;  %v8492_v36 = vpop.f32.mrb[31].mxu0 }
 0x792   :  { %v8531_v40 = vadd.f32 %v8530_v0, %v8490_v30  ;;  %v8533_v41 = vpop.f32.mrb[31].mxu1 }
 0x793   :  { %v8559_v42 = vadd.f32 %v8548_v5, %v8529_v51 }
 0x794   :  { %v8560_v45 = vadd.f32 %v8552_v12, %v8531_v40 }
 0x795   :  { %v8563_v46 = vmax.f32 %v8559_v42, 0.0 }
 0x796   :  { %v8564_v47 = vmax.f32 %v8560_v45, 0.0 }
 0x797   :  { %v8589_v24 = vmul.f32 %v8578_v17, %v8563_v46 }
 0x798   :  { %v8590_v53 = vmul.f32 %v8582_v48, %v8564_v47 }
 0x799   :  { %v8592_v44 = vadd.f32 %v8591_v43, %v8589_v24 }
 0x79b   :  { %v8593_v15 = vadd.f32 %v8592_v44, %v8590_v53 }
 0x79d   :  { %8594 = vadd.xlane.f32.xlu0 %v8593_v15 }
 0x82a   :  { %v8595_v50 = vpop.xlane.xlu0 %8594 }
 0x82b   :  { %v8603_v26 = vadd.f32 %v9749_v49, %v8595_v50 }
 0x82d   :  { %v9750_v54 = vmul.f32 -1.442695, %v8603_v26 }
 0x82f   :  { %11533 = vpow2.f32 %v9750_v54 }
 0x839   :  { %v11534_v56 = vpop.eup %11533 }
 0x83a   :  { %v8607_v57 = vadd.f32 1.0, %v11534_v56 }
 0x83c   :  { %11535 = vrcp.f32 %v8607_v57 }
 0x846   :  { %v11536_v38 = vpop.eup %11535 }
 0x847   :  { %8611 = vst.msk [vmem:[%s12339_s16] sm:$0xff] %vm8610_vm2, %v11536_v38 }
 0x848   :  { %8616 = vsyncpa [#allocation4], 1 }
 0x849   :  { %8617 = vsyncpa [#allocation6], 1 }
 0x84a   :  { %8618 = vsyncpa [#allocation9], 1 }
 0x84b   :  { %8619 = vsyncpa [#allocation12], 1 }
 0x84c   :  { %8620 = vsyncpa [#allocation15], 1 }
 0x84d   :  { %8621 = vsyncpa [#allocation18], 1 }
 0x84e   :  { %8622 = vsyncpa [#allocation21], 1 }

</bundles_post_ra>
